<compile_context>
chip_gen: v7x
topology: tpu7x:2x2x1
jax: 0.10.0
libtpu: 0.0.40
codegen_flags: <defaults>
</compile_context>

<pallas_src>
import jax
import jax.numpy as jnp
from jax.experimental import pallas as pl
from jax.experimental.pallas import tpu as pltpu


def _round_up(x, m):
    return (x + m - 1) // m * m


def _make_conv_stats_kernel(H, W, Wv, Wp, Cin, Cout, fuse_bn_relu, fuse_kw):
    """3x3 conv (padding=1) on one image + per-image BN partial stats.

    Activations are bf16 in "padded coords": rows [1, H+1) and columns [8, 8+W)
    hold data.  For pass 1 the pads are real zeros (wrapper jnp.pad); for the
    fused pass the producer never wrote the pads, so they are masked here after
    the BN1 affine + ReLU.
    """

    def kernel(*refs):
        if fuse_bn_relu:
            inp_ref, w_ref, scale_ref, shift_ref, y_ref, stats_ref = refs
        else:
            inp_ref, w_ref, y_ref, stats_ref = refs

        x = inp_ref[0].astype(jnp.float32)                      # (H+2, Wp, Cin)

        if fuse_bn_relu:
            x = jnp.maximum(x * scale_ref[...] + shift_ref[...], 0.0)
            row = jax.lax.broadcasted_iota(jnp.int32, (H + 2, Wp, 1), 0)
            col = jax.lax.broadcasted_iota(jnp.int32, (H + 2, Wp, 1), 1)
            valid = (row >= 1) & (row <= H) & (col >= 8) & (col < 8 + W)
            x = jnp.where(valid, x, 0.0)

        # Width taps: slice in f32 (plain sublane shift), then downcast per tap so
        # the MXU gets bf16 operands without packed-bf16 relayout shifts.
        taps = [x[:, 7 + k:7 + k + Wv, :].astype(jnp.bfloat16) for k in range(3)]

        if fuse_kw:
            # One K=3*Cin matmul per kh (lane-aligned concat; only for Cin%128==0).
            xf = jnp.concatenate(taps, axis=-1).reshape((H + 2) * Wv, 3 * Cin)
            acc = None
            for kh in range(3):
                d = jnp.dot(xf[kh * Wv:kh * Wv + H * Wv], w_ref[kh],
                            preferred_element_type=jnp.float32)
                acc = d if acc is None else acc + d
        else:
            # 9 taps, value-accumulated (no VMEM accumulator round trips).
            acc = None
            for kh in range(3):
                for kw in range(3):
                    lhs = taps[kw][kh:kh + H].reshape(H * Wv, Cin)
                    d = jnp.dot(lhs, w_ref[kh, kw],
                                preferred_element_type=jnp.float32)
                    acc = d if acc is None else acc + d

        y = acc.reshape(H, Wv, Cout)                            # f32

        # BN partial stats from the f32 value (before bf16 downcast), valid data
        # columns only.
        colv = jax.lax.broadcasted_iota(jnp.int32, (1, Wv, 1), 1)
        ym = jnp.where(colv < W, y, 0.0)
        s = jnp.sum(jnp.sum(ym, axis=0), axis=0, keepdims=True)         # (1, Cout)
        ss = jnp.sum(jnp.sum(ym * ym, axis=0), axis=0, keepdims=True)   # (1, Cout)
        # Two tiny (1, C) row stores (kept on the known-good masked-store path).
        stats_ref[0, 0:1, :] = s
        stats_ref[0, 1:2, :] = ss

        # Single 8-aligned store of the data region in bf16: rows [1, H+1),
        # columns [8, 8+Wv).  Pad region is never written; consumers mask it.
        y_ref[0, 1:1 + H, 8:8 + Wv, :] = y.astype(jnp.bfloat16)

    return kernel


def _make_finalize_kernel(H, Wv):
    """BN2 affine + residual add + ReLU; aligned reads, full-block aligned store."""

    def kernel(y_ref, x_ref, scale_ref, shift_ref, out_ref):
        y = y_ref[0, 1:1 + H, 8:8 + Wv, :].astype(jnp.float32)   # (H, Wv, C)
        xr = x_ref[0, 1:1 + H, 8:8 + Wv, :].astype(jnp.float32)
        out_ref[0] = jnp.maximum(y * scale_ref[...] + shift_ref[...] + xr, 0.0)

    return kernel


def _conv_stats_call(inp, w, scale, shift, *, H, W, Wv, Wp, Cin, Cout,
                     fuse_bn_relu, fuse_kw):
    N = inp.shape[0]
    kern = _make_conv_stats_kernel(H, W, Wv, Wp, Cin, Cout, fuse_bn_relu, fuse_kw)

    in_specs = [
        pl.BlockSpec((1, H + 2, Wp, Cin), lambda n: (n, 0, 0, 0)),
        pl.BlockSpec(w.shape, lambda n: (0,) * w.ndim),
    ]
    args = [inp, w]
    if fuse_bn_relu:
        in_specs += [pl.BlockSpec((1, Cin), lambda n: (0, 0)),
                     pl.BlockSpec((1, Cin), lambda n: (0, 0))]
        args += [scale, shift]

    y, stats = pl.pallas_call(
        kern,
        grid=(N,),
        in_specs=in_specs,
        out_specs=(pl.BlockSpec((1, H + 2, Wp, Cout), lambda n: (n, 0, 0, 0)),
                   pl.BlockSpec((1, 2, Cout), lambda n: (n, 0, 0))),
        out_shape=(jax.ShapeDtypeStruct((N, H + 2, Wp, Cout), jnp.bfloat16),
                   jax.ShapeDtypeStruct((N, 2, Cout), jnp.float32)),
        compiler_params=pltpu.CompilerParams(
            dimension_semantics=("parallel",),
            vmem_limit_bytes=64 * 1024 * 1024),
    )(*args)
    return y, stats


def basic_block_forward(x_nchw, params, eps=1e-5):
    N, Cin, H, W = x_nchw.shape
    Cout = params["w1"].shape[0]             # PyTorch conv weight is (Cout, Cin, 3, 3)
    assert Cin == Cout, "stride=1 / downsample=None path requires inplanes == planes"

    Wv = _round_up(W, 16)                    # aligned data width (bf16 sublane packing)
    Wp = Wv + 16                             # 8 zero cols left, >=8 right

    # NCHW -> NHWC, bf16 cast, and row/column padding fused into one relayout.
    x = jnp.transpose(x_nchw, (0, 2, 3, 1)).astype(jnp.bfloat16)
    x_p = jnp.pad(x, ((0, 0), (1, 1), (8, Wp - W - 8), (0, 0)))

    # Fold the per-output-channel sigmoid(info_filt) gate into the conv weights
    # (exact: the gate commutes into the conv since BN follows it).
    g1 = jax.nn.sigmoid(params["if1"]).reshape(1, 1, 1, -1)
    g2 = jax.nn.sigmoid(params["if2"]).reshape(1, 1, 1, -1)
    w1 = jnp.transpose(params["w1"], (2, 3, 1, 0)) * g1          # (3, 3, Cin, Cout)
    w2 = jnp.transpose(params["w2"], (2, 3, 1, 0)) * g2

    # Fused-K path only when the lane-axis concat of the kw taps is tile-aligned.
    fuse_kw = (Cin % 128 == 0)
    if fuse_kw:
        w1k = w1.reshape(3, 3 * Cin, Cout).astype(jnp.bfloat16)
        w2k = w2.reshape(3, 3 * Cout, Cout).astype(jnp.bfloat16)
    else:
        w1k = w1.astype(jnp.bfloat16)
        w2k = w2.astype(jnp.bfloat16)

    cnt = float(N * H * W)

    def bn_affine(stats, gamma, beta):
        s = jnp.sum(stats[:, 0, :], axis=0)
        ss = jnp.sum(stats[:, 1, :], axis=0)
        mean = s / cnt
        var = ss / cnt - mean * mean                              # biased variance
        scale = gamma * jax.lax.rsqrt(var + eps)
        shift = beta - mean * scale
        return scale.reshape(1, -1), shift.reshape(1, -1)

    # pass 1: conv1 (gate folded) + BN1 partial stats
    y1, st1 = _conv_stats_call(x_p, w1k, None, None, H=H, W=W, Wv=Wv, Wp=Wp,
                               Cin=Cin, Cout=Cout, fuse_bn_relu=False,
                               fuse_kw=fuse_kw)
    sc1, sh1 = bn_affine(st1, params["g1"], params["b1"])

    # pass 2: BN1 affine + ReLU fused, conv2, BN2 partial stats
    y2, st2 = _conv_stats_call(y1, w2k, sc1, sh1, H=H, W=W, Wv=Wv, Wp=Wp,
                               Cin=Cout, Cout=Cout, fuse_bn_relu=True,
                               fuse_kw=fuse_kw)
    sc2, sh2 = bn_affine(st2, params["g2"], params["b2"])

    # pass 3: BN2 affine + residual add + ReLU (aligned full-block f32 store)
    out_nhwc = pl.pallas_call(
        _make_finalize_kernel(H, Wv),
        grid=(N,),
        in_specs=[pl.BlockSpec((1, H + 2, Wp, Cout), lambda n: (n, 0, 0, 0)),
                  pl.BlockSpec((1, H + 2, Wp, Cin), lambda n: (n, 0, 0, 0)),
                  pl.BlockSpec((1, Cout), lambda n: (0, 0)),
                  pl.BlockSpec((1, Cout), lambda n: (0, 0))],
        out_specs=pl.BlockSpec((1, H, Wv, Cout), lambda n: (n, 0, 0, 0)),
        out_shape=jax.ShapeDtypeStruct((N, H, Wv, Cout), jnp.float32),
        compiler_params=pltpu.CompilerParams(
            dimension_semantics=("parallel",),
            vmem_limit_bytes=64 * 1024 * 1024),
    )(y2, x_p, sc2, sh2)

    # W-crop fused with the unavoidable NHWC -> NCHW relayout.
    return jnp.transpose(out_nhwc[:, :, :W, :], (0, 3, 1, 2))


# ------------------------- pure-JAX reference (for checking) -------------------------
def _conv_block_ref(x_nhwc, w_hwio, info_filt, gamma, beta, activation):
    y = jax.lax.conv_general_dilated(
        x_nhwc, w_hwio, window_strides=(1, 1), padding="SAME",
        dimension_numbers=("NHWC", "HWIO", "NHWC"))
    y = y * jax.nn.sigmoid(info_filt).reshape(1, 1, 1, -1)
    mean = y.mean(axis=(0, 1, 2), keepdims=True)
    var = ((y - mean) ** 2).mean(axis=(0, 1, 2), keepdims=True)
    y = (y - mean) / jnp.sqrt(var + 1e-5)
    y = y * gamma.reshape(1, 1, 1, -1) + beta.reshape(1, 1, 1, -1)
    if activation:
        y = jnp.maximum(y, 0.0)
    return y


def _basic_block_ref(x_nchw, p):
    x = jnp.transpose(x_nchw, (0, 2, 3, 1))
    w1 = jnp.transpose(p["w1"], (2, 3, 1, 0))
    w2 = jnp.transpose(p["w2"], (2, 3, 1, 0))
    o = _conv_block_ref(x, w1, p["if1"], p["g1"], p["b1"], activation=True)
    o = _conv_block_ref(o, w2, p["if2"], p["g2"], p["b2"], activation=False)
    o = jnp.maximum(o + x, 0.0)
    return jnp.transpose(o, (0, 3, 1, 2))


if __name__ == "__main__":
    # small shapes: batch=2, inplanes=planes=8, spatial=16x16 (stride=1, no downsample)
    N, C, H, W = 2, 8, 16, 16
    key = jax.random.PRNGKey(0)
    kx, kw1, kw2 = jax.random.split(key, 3)

    x = jax.random.normal(kx, (N, C, H, W), jnp.float32)

    params = {
        # nn.Conv2d(C, C, 3, padding=1, bias=False) weights -> deterministic normals
        "w1": 0.1 * jax.random.normal(kw1, (C, C, 3, 3), jnp.float32),
        "w2": 0.1 * jax.random.normal(kw2, (C, C, 3, 3), jnp.float32),
        # info_filt init: ones(1, C, 1, 1) * 10.0 (flattened to (C,))
        "if1": 10.0 * jnp.ones((C,), jnp.float32),
        "if2": 10.0 * jnp.ones((C,), jnp.float32),
        # BatchNorm2d affine init: weight=1, bias=0
        "g1": jnp.ones((C,), jnp.float32), "b1": jnp.zeros((C,), jnp.float32),
        "g2": jnp.ones((C,), jnp.float32), "b2": jnp.zeros((C,), jnp.float32),
    }

    fwd = jax.jit(basic_block_forward)
    out = jax.block_until_ready(fwd(x, params))

    ref = jax.block_until_ready(_basic_block_ref(x, params))
    assert out.shape == (N, C, H, W)

    # bf16 activations/weights inside the kernels (f32 accumulation/statistics):
    # tolerance sized for bf16 rounding; a structural bug would give O(1) errors.
    err = jnp.abs(out - ref)
    max_err = float(jnp.max(err))
    mean_err = float(jnp.mean(err))
    assert max_err < 7.5e-2, f"max abs err {max_err}"
    assert mean_err < 1e-2, f"mean abs err {mean_err}"

    print("KERNEL_OK")
</pallas_src>

<mosaic_0001>
module attributes {stable_mosaic.version = 11 : i64} {
  func.func @kernel(%arg0: i32, %arg1: memref<1x18x32x8xbf16, #tpu.memory_space<vmem>>, %arg2: memref<3x3x8x8xbf16, #tpu.memory_space<vmem>>, %arg3: memref<1x18x32x8xbf16, #tpu.memory_space<vmem>>, %arg4: memref<1x2x8xf32, #tpu.memory_space<vmem>>) attributes {dimension_semantics = [#tpu.dimension_semantics<parallel>], iteration_bounds = array<i64: 2>, scalar_prefetch = 0 : i64, scratch_operands = 0 : i64, tpu.core_type = #tpu.core_type<tc>, window_params = [{transform_indices = @transform_0, window_bounds = array<i64: 1, 18, 32, 8>}, {pipeline_mode = #tpu.pipeline_mode<synchronous>, transform_indices = @transform_1, window_bounds = array<i64: 3, 3, 8, 8>}, {transform_indices = @transform_2, window_bounds = array<i64: 1, 18, 32, 8>}, {transform_indices = @transform_3, window_bounds = array<i64: 1, 2, 8>}]} {
    %c0 = arith.constant 0 : index
    %c0_0 = arith.constant 0 : index
    %c0_1 = arith.constant 0 : index
    %c0_2 = arith.constant 0 : index
    %0 = vector.load %arg1[%c0, %c0_0, %c0_1, %c0_2] : memref<1x18x32x8xbf16, #tpu.memory_space<vmem>>, vector<1x18x32x8xbf16>
    %1 = vector.shape_cast %0 : vector<1x18x32x8xbf16> to vector<18x32x8xbf16>
    %2 = arith.extf %1 : vector<18x32x8xbf16> to vector<18x32x8xf32>
    %3 = vector.extract_strided_slice %2 {offsets = [0, 7, 0], sizes = [18, 16, 8], strides = [1, 1, 1]} : vector<18x32x8xf32> to vector<18x16x8xf32>
    %4 = arith.truncf %3 : vector<18x16x8xf32> to vector<18x16x8xbf16>
    %5 = vector.extract_strided_slice %2 {offsets = [0, 8, 0], sizes = [18, 16, 8], strides = [1, 1, 1]} : vector<18x32x8xf32> to vector<18x16x8xf32>
    %6 = arith.truncf %5 : vector<18x16x8xf32> to vector<18x16x8xbf16>
    %7 = vector.extract_strided_slice %2 {offsets = [0, 9, 0], sizes = [18, 16, 8], strides = [1, 1, 1]} : vector<18x32x8xf32> to vector<18x16x8xf32>
    %8 = arith.truncf %7 : vector<18x16x8xf32> to vector<18x16x8xbf16>
    %9 = vector.extract_strided_slice %4 {offsets = [0, 0, 0], sizes = [16, 16, 8], strides = [1, 1, 1]} : vector<18x16x8xbf16> to vector<16x16x8xbf16>
    %10 = vector.shape_cast %9 : vector<16x16x8xbf16> to vector<256x8xbf16>
    %c0_3 = arith.constant 0 : index
    %c0_4 = arith.constant 0 : index
    %c0_5 = arith.constant 0 : index
    %c0_6 = arith.constant 0 : index
    %11 = vector.load %arg2[%c0_3, %c0_4, %c0_5, %c0_6] : memref<3x3x8x8xbf16, #tpu.memory_space<vmem>>, vector<1x1x8x8xbf16>
    %12 = vector.shape_cast %11 : vector<1x1x8x8xbf16> to vector<8x8xbf16>
    %cst = arith.constant dense<0.000000e+00> : vector<256x8xf32>
    %13 = tpu.matmul %10, %12, %cst {dimension_numbers = #tpu.dot_dimension_numbers<[1], [0], [0], [1], [0, 0, 1, 1], [], []>} : vector<256x8xbf16>, vector<8x8xbf16>, vector<256x8xf32> -> vector<256x8xf32>
    %14 = vector.extract_strided_slice %6 {offsets = [0, 0, 0], sizes = [16, 16, 8], strides = [1, 1, 1]} : vector<18x16x8xbf16> to vector<16x16x8xbf16>
    %15 = vector.shape_cast %14 : vector<16x16x8xbf16> to vector<256x8xbf16>
    %c0_7 = arith.constant 0 : index
    %c1 = arith.constant 1 : index
    %c0_8 = arith.constant 0 : index
    %c0_9 = arith.constant 0 : index
    %16 = vector.load %arg2[%c0_7, %c1, %c0_8, %c0_9] : memref<3x3x8x8xbf16, #tpu.memory_space<vmem>>, vector<1x1x8x8xbf16>
    %17 = vector.shape_cast %16 : vector<1x1x8x8xbf16> to vector<8x8xbf16>
    %cst_10 = arith.constant dense<0.000000e+00> : vector<256x8xf32>
    %18 = tpu.matmul %15, %17, %cst_10 {dimension_numbers = #tpu.dot_dimension_numbers<[1], [0], [0], [1], [0, 0, 1, 1], [], []>} : vector<256x8xbf16>, vector<8x8xbf16>, vector<256x8xf32> -> vector<256x8xf32>
    %19 = arith.addf %13, %18 : vector<256x8xf32>
    %20 = vector.extract_strided_slice %8 {offsets = [0, 0, 0], sizes = [16, 16, 8], strides = [1, 1, 1]} : vector<18x16x8xbf16> to vector<16x16x8xbf16>
    %21 = vector.shape_cast %20 : vector<16x16x8xbf16> to vector<256x8xbf16>
    %c0_11 = arith.constant 0 : index
    %c2 = arith.constant 2 : index
    %c0_12 = arith.constant 0 : index
    %c0_13 = arith.constant 0 : index
    %22 = vector.load %arg2[%c0_11, %c2, %c0_12, %c0_13] : memref<3x3x8x8xbf16, #tpu.memory_space<vmem>>, vector<1x1x8x8xbf16>
    %23 = vector.shape_cast %22 : vector<1x1x8x8xbf16> to vector<8x8xbf16>
    %cst_14 = arith.constant dense<0.000000e+00> : vector<256x8xf32>
    %24 = tpu.matmul %21, %23, %cst_14 {dimension_numbers = #tpu.dot_dimension_numbers<[1], [0], [0], [1], [0, 0, 1, 1], [], []>} : vector<256x8xbf16>, vector<8x8xbf16>, vector<256x8xf32> -> vector<256x8xf32>
    %25 = arith.addf %19, %24 : vector<256x8xf32>
    %26 = vector.extract_strided_slice %4 {offsets = [1, 0, 0], sizes = [16, 16, 8], strides = [1, 1, 1]} : vector<18x16x8xbf16> to vector<16x16x8xbf16>
    %27 = vector.shape_cast %26 : vector<16x16x8xbf16> to vector<256x8xbf16>
    %c1_15 = arith.constant 1 : index
    %c0_16 = arith.constant 0 : index
    %c0_17 = arith.constant 0 : index
    %c0_18 = arith.constant 0 : index
    %28 = vector.load %arg2[%c1_15, %c0_16, %c0_17, %c0_18] : memref<3x3x8x8xbf16, #tpu.memory_space<vmem>>, vector<1x1x8x8xbf16>
    %29 = vector.shape_cast %28 : vector<1x1x8x8xbf16> to vector<8x8xbf16>
    %cst_19 = arith.constant dense<0.000000e+00> : vector<256x8xf32>
    %30 = tpu.matmul %27, %29, %cst_19 {dimension_numbers = #tpu.dot_dimension_numbers<[1], [0], [0], [1], [0, 0, 1, 1], [], []>} : vector<256x8xbf16>, vector<8x8xbf16>, vector<256x8xf32> -> vector<256x8xf32>
    %31 = arith.addf %25, %30 : vector<256x8xf32>
    %32 = vector.extract_strided_slice %6 {offsets = [1, 0, 0], sizes = [16, 16, 8], strides = [1, 1, 1]} : vector<18x16x8xbf16> to vector<16x16x8xbf16>
    %33 = vector.shape_cast %32 : vector<16x16x8xbf16> to vector<256x8xbf16>
    %c1_20 = arith.constant 1 : index
    %c1_21 = arith.constant 1 : index
    %c0_22 = arith.constant 0 : index
    %c0_23 = arith.constant 0 : index
    %34 = vector.load %arg2[%c1_20, %c1_21, %c0_22, %c0_23] : memref<3x3x8x8xbf16, #tpu.memory_space<vmem>>, vector<1x1x8x8xbf16>
    %35 = vector.shape_cast %34 : vector<1x1x8x8xbf16> to vector<8x8xbf16>
    %cst_24 = arith.constant dense<0.000000e+00> : vector<256x8xf32>
    %36 = tpu.matmul %33, %35, %cst_24 {dimension_numbers = #tpu.dot_dimension_numbers<[1], [0], [0], [1], [0, 0, 1, 1], [], []>} : vector<256x8xbf16>, vector<8x8xbf16>, vector<256x8xf32> -> vector<256x8xf32>
    %37 = arith.addf %31, %36 : vector<256x8xf32>
    %38 = vector.extract_strided_slice %8 {offsets = [1, 0, 0], sizes = [16, 16, 8], strides = [1, 1, 1]} : vector<18x16x8xbf16> to vector<16x16x8xbf16>
    %39 = vector.shape_cast %38 : vector<16x16x8xbf16> to vector<256x8xbf16>
    %c1_25 = arith.constant 1 : index
    %c2_26 = arith.constant 2 : index
    %c0_27 = arith.constant 0 : index
    %c0_28 = arith.constant 0 : index
    %40 = vector.load %arg2[%c1_25, %c2_26, %c0_27, %c0_28] : memref<3x3x8x8xbf16, #tpu.memory_space<vmem>>, vector<1x1x8x8xbf16>
    %41 = vector.shape_cast %40 : vector<1x1x8x8xbf16> to vector<8x8xbf16>
    %cst_29 = arith.constant dense<0.000000e+00> : vector<256x8xf32>
    %42 = tpu.matmul %39, %41, %cst_29 {dimension_numbers = #tpu.dot_dimension_numbers<[1], [0], [0], [1], [0, 0, 1, 1], [], []>} : vector<256x8xbf16>, vector<8x8xbf16>, vector<256x8xf32> -> vector<256x8xf32>
    %43 = arith.addf %37, %42 : vector<256x8xf32>
    %44 = vector.extract_strided_slice %4 {offsets = [2, 0, 0], sizes = [16, 16, 8], strides = [1, 1, 1]} : vector<18x16x8xbf16> to vector<16x16x8xbf16>
    %45 = vector.shape_cast %44 : vector<16x16x8xbf16> to vector<256x8xbf16>
    %c2_30 = arith.constant 2 : index
    %c0_31 = arith.constant 0 : index
    %c0_32 = arith.constant 0 : index
    %c0_33 = arith.constant 0 : index
    %46 = vector.load %arg2[%c2_30, %c0_31, %c0_32, %c0_33] : memref<3x3x8x8xbf16, #tpu.memory_space<vmem>>, vector<1x1x8x8xbf16>
    %47 = vector.shape_cast %46 : vector<1x1x8x8xbf16> to vector<8x8xbf16>
    %cst_34 = arith.constant dense<0.000000e+00> : vector<256x8xf32>
    %48 = tpu.matmul %45, %47, %cst_34 {dimension_numbers = #tpu.dot_dimension_numbers<[1], [0], [0], [1], [0, 0, 1, 1], [], []>} : vector<256x8xbf16>, vector<8x8xbf16>, vector<256x8xf32> -> vector<256x8xf32>
    %49 = arith.addf %43, %48 : vector<256x8xf32>
    %50 = vector.extract_strided_slice %6 {offsets = [2, 0, 0], sizes = [16, 16, 8], strides = [1, 1, 1]} : vector<18x16x8xbf16> to vector<16x16x8xbf16>
    %51 = vector.shape_cast %50 : vector<16x16x8xbf16> to vector<256x8xbf16>
    %c2_35 = arith.constant 2 : index
    %c1_36 = arith.constant 1 : index
    %c0_37 = arith.constant 0 : index
    %c0_38 = arith.constant 0 : index
    %52 = vector.load %arg2[%c2_35, %c1_36, %c0_37, %c0_38] : memref<3x3x8x8xbf16, #tpu.memory_space<vmem>>, vector<1x1x8x8xbf16>
    %53 = vector.shape_cast %52 : vector<1x1x8x8xbf16> to vector<8x8xbf16>
    %cst_39 = arith.constant dense<0.000000e+00> : vector<256x8xf32>
    %54 = tpu.matmul %51, %53, %cst_39 {dimension_numbers = #tpu.dot_dimension_numbers<[1], [0], [0], [1], [0, 0, 1, 1], [], []>} : vector<256x8xbf16>, vector<8x8xbf16>, vector<256x8xf32> -> vector<256x8xf32>
    %55 = arith.addf %49, %54 : vector<256x8xf32>
    %56 = vector.extract_strided_slice %8 {offsets = [2, 0, 0], sizes = [16, 16, 8], strides = [1, 1, 1]} : vector<18x16x8xbf16> to vector<16x16x8xbf16>
    %57 = vector.shape_cast %56 : vector<16x16x8xbf16> to vector<256x8xbf16>
    %c2_40 = arith.constant 2 : index
    %c2_41 = arith.constant 2 : index
    %c0_42 = arith.constant 0 : index
    %c0_43 = arith.constant 0 : index
    %58 = vector.load %arg2[%c2_40, %c2_41, %c0_42, %c0_43] : memref<3x3x8x8xbf16, #tpu.memory_space<vmem>>, vector<1x1x8x8xbf16>
    %59 = vector.shape_cast %58 : vector<1x1x8x8xbf16> to vector<8x8xbf16>
    %cst_44 = arith.constant dense<0.000000e+00> : vector<256x8xf32>
    %60 = tpu.matmul %57, %59, %cst_44 {dimension_numbers = #tpu.dot_dimension_numbers<[1], [0], [0], [1], [0, 0, 1, 1], [], []>} : vector<256x8xbf16>, vector<8x8xbf16>, vector<256x8xf32> -> vector<256x8xf32>
    %61 = arith.addf %55, %60 : vector<256x8xf32>
    %62 = vector.shape_cast %61 : vector<256x8xf32> to vector<16x16x8xf32>
    %63 = tpu.iota {dimensions = array<i32: 1>} : vector<1x16x1xi32>
    %c16_i32 = arith.constant 16 : i32
    %64 = vector.broadcast %c16_i32 : i32 to vector<1x16x1xi32>
    %65 = arith.cmpi slt, %63, %64 : vector<1x16x1xi32>
    %cst_45 = arith.constant 0.000000e+00 : f32
    %66 = vector.shape_cast %65 : vector<1x16x1xi1> to vector<1x16x1xi1>
    %67 = vector.broadcast %66 : vector<1x16x1xi1> to vector<16x16x8xi1>
    %68 = vector.broadcast %cst_45 : f32 to vector<16x16x8xf32>
    %69 = arith.select %67, %62, %68 : vector<16x16x8xi1>, vector<16x16x8xf32>
    %cst_46 = arith.constant dense<0.000000e+00> : vector<16x8xf32>
    %70 = vector.multi_reduction <add>, %69, %cst_46 [0] : vector<16x16x8xf32> to vector<16x8xf32>
    %cst_47 = arith.constant dense<0.000000e+00> : vector<8xf32>
    %71 = vector.multi_reduction <add>, %70, %cst_47 [0] : vector<16x8xf32> to vector<8xf32>
    %72 = vector.shape_cast %71 : vector<8xf32> to vector<1x8xf32>
    %73 = arith.mulf %69, %69 : vector<16x16x8xf32>
    %cst_48 = arith.constant dense<0.000000e+00> : vector<16x8xf32>
    %74 = vector.multi_reduction <add>, %73, %cst_48 [0] : vector<16x16x8xf32> to vector<16x8xf32>
    %cst_49 = arith.constant dense<0.000000e+00> : vector<8xf32>
    %75 = vector.multi_reduction <add>, %74, %cst_49 [0] : vector<16x8xf32> to vector<8xf32>
    %76 = vector.shape_cast %75 : vector<8xf32> to vector<1x8xf32>
    %c0_50 = arith.constant 0 : index
    %c0_51 = arith.constant 0 : index
    %c0_52 = arith.constant 0 : index
    %77 = vector.load %arg4[%c0_50, %c0_51, %c0_52] : memref<1x2x8xf32, #tpu.memory_space<vmem>>, vector<1x1x8xf32>
    %78 = vector.shape_cast %77 : vector<1x1x8xf32> to vector<1x8xf32>
    %79 = vector.shape_cast %72 : vector<1x8xf32> to vector<1x1x8xf32>
    tpu.vector_store %arg4[%c0_50, %c0_51, %c0_52], %79 {strides = array<i32>} : memref<1x2x8xf32, #tpu.memory_space<vmem>>, vector<1x1x8xf32>,
    %c0_53 = arith.constant 0 : index
    %c1_54 = arith.constant 1 : index
    %c0_55 = arith.constant 0 : index
    %80 = vector.load %arg4[%c0_53, %c1_54, %c0_55] : memref<1x2x8xf32, #tpu.memory_space<vmem>>, vector<1x1x8xf32>
    %81 = vector.shape_cast %80 : vector<1x1x8xf32> to vector<1x8xf32>
    %82 = vector.shape_cast %76 : vector<1x8xf32> to vector<1x1x8xf32>
    tpu.vector_store %arg4[%c0_53, %c1_54, %c0_55], %82 {strides = array<i32>} : memref<1x2x8xf32, #tpu.memory_space<vmem>>, vector<1x1x8xf32>,
    %83 = arith.truncf %62 : vector<16x16x8xf32> to vector<16x16x8xbf16>
    %c0_56 = arith.constant 0 : index
    %c1_57 = arith.constant 1 : index
    %c8 = arith.constant 8 : index
    %c0_58 = arith.constant 0 : index
    %84 = vector.load %arg3[%c0_56, %c1_57, %c8, %c0_58] : memref<1x18x32x8xbf16, #tpu.memory_space<vmem>>, vector<1x16x16x8xbf16>
    %85 = vector.shape_cast %84 : vector<1x16x16x8xbf16> to vector<16x16x8xbf16>
    %86 = vector.shape_cast %83 : vector<16x16x8xbf16> to vector<1x16x16x8xbf16>
    tpu.vector_store %arg3[%c0_56, %c1_57, %c8, %c0_58], %86 {strides = array<i32>} : memref<1x18x32x8xbf16, #tpu.memory_space<vmem>>, vector<1x16x16x8xbf16>,
    return
  }
  func.func @transform_0(%arg0: i32) -> (i32, i32, i32, i32) {
    %c0_i32 = arith.constant 0 : i32
    %c0_i32_0 = arith.constant 0 : i32
    %c0_i32_1 = arith.constant 0 : i32
    %c0_i32_2 = arith.constant 0 : i32
    return %arg0, %c0_i32, %c0_i32_0, %c0_i32_1 : i32, i32, i32, i32
  }
  func.func @transform_1(%arg0: i32) -> (i32, i32, i32, i32) {
    %c0_i32 = arith.constant 0 : i32
    %c0_i32_0 = arith.constant 0 : i32
    %c0_i32_1 = arith.constant 0 : i32
    %c0_i32_2 = arith.constant 0 : i32
    %c0_i32_3 = arith.constant 0 : i32
    return %c0_i32, %c0_i32_0, %c0_i32_1, %c0_i32_2 : i32, i32, i32, i32
  }
  func.func @transform_2(%arg0: i32) -> (i32, i32, i32, i32) {
    %c0_i32 = arith.constant 0 : i32
    %c0_i32_0 = arith.constant 0 : i32
    %c0_i32_1 = arith.constant 0 : i32
    %c0_i32_2 = arith.constant 0 : i32
    return %arg0, %c0_i32, %c0_i32_0, %c0_i32_1 : i32, i32, i32, i32
  }
  func.func @transform_3(%arg0: i32) -> (i32, i32, i32) {
    %c0_i32 = arith.constant 0 : i32
    %c0_i32_0 = arith.constant 0 : i32
    %c0_i32_1 = arith.constant 0 : i32
    return %arg0, %c0_i32, %c0_i32_0 : i32, i32, i32
  }
}

module attributes {stable_mosaic.version = 11 : i64} {
  func.func @kernel(%arg0: i32, %arg1: memref<1x18x32x8xbf16, #tpu.memory_space<vmem>>, %arg2: memref<3x3x8x8xbf16, #tpu.memory_space<vmem>>, %arg3: memref<1x8xf32, #tpu.memory_space<vmem>>, %arg4: memref<1x8xf32, #tpu.memory_space<vmem>>, %arg5: memref<1x18x32x8xbf16, #tpu.memory_space<vmem>>, %arg6: memref<1x2x8xf32, #tpu.memory_space<vmem>>) attributes {dimension_semantics = [#tpu.dimension_semantics<parallel>], iteration_bounds = array<i64: 2>, scalar_prefetch = 0 : i64, scratch_operands = 0 : i64, tpu.core_type = #tpu.core_type<tc>, window_params = [{transform_indices = @transform_0, window_bounds = array<i64: 1, 18, 32, 8>}, {pipeline_mode = #tpu.pipeline_mode<synchronous>, transform_indices = @transform_1, window_bounds = array<i64: 3, 3, 8, 8>}, {pipeline_mode = #tpu.pipeline_mode<synchronous>, transform_indices = @transform_2, window_bounds = array<i64: 1, 8>}, {pipeline_mode = #tpu.pipeline_mode<synchronous>, transform_indices = @transform_3, window_bounds = array<i64: 1, 8>}, {transform_indices = @transform_4, window_bounds = array<i64: 1, 18, 32, 8>}, {transform_indices = @transform_5, window_bounds = array<i64: 1, 2, 8>}]} {
    %c0 = arith.constant 0 : index
    %c0_0 = arith.constant 0 : index
    %c0_1 = arith.constant 0 : index
    %c0_2 = arith.constant 0 : index
    %0 = vector.load %arg1[%c0, %c0_0, %c0_1, %c0_2] : memref<1x18x32x8xbf16, #tpu.memory_space<vmem>>, vector<1x18x32x8xbf16>
    %1 = vector.shape_cast %0 : vector<1x18x32x8xbf16> to vector<18x32x8xbf16>
    %2 = arith.extf %1 : vector<18x32x8xbf16> to vector<18x32x8xf32>
    %c0_3 = arith.constant 0 : index
    %c0_4 = arith.constant 0 : index
    %3 = vector.load %arg3[%c0_3, %c0_4] : memref<1x8xf32, #tpu.memory_space<vmem>>, vector<1x8xf32>
    %4 = vector.shape_cast %3 : vector<1x8xf32> to vector<1x1x8xf32>
    %5 = vector.broadcast %4 : vector<1x1x8xf32> to vector<18x32x8xf32>
    %6 = arith.mulf %2, %5 : vector<18x32x8xf32>
    %c0_5 = arith.constant 0 : index
    %c0_6 = arith.constant 0 : index
    %7 = vector.load %arg4[%c0_5, %c0_6] : memref<1x8xf32, #tpu.memory_space<vmem>>, vector<1x8xf32>
    %8 = vector.shape_cast %7 : vector<1x8xf32> to vector<1x1x8xf32>
    %9 = vector.broadcast %8 : vector<1x1x8xf32> to vector<18x32x8xf32>
    %10 = arith.addf %6, %9 : vector<18x32x8xf32>
    %cst = arith.constant 0.000000e+00 : f32
    %11 = vector.broadcast %cst : f32 to vector<18x32x8xf32>
    %12 = arith.maximumf %10, %11 : vector<18x32x8xf32>
    %13 = tpu.iota {dimensions = array<i32: 0>} : vector<18x32x1xi32>
    %14 = tpu.iota {dimensions = array<i32: 1>} : vector<18x32x1xi32>
    %c1_i32 = arith.constant 1 : i32
    %15 = vector.broadcast %c1_i32 : i32 to vector<18x32x1xi32>
    %16 = arith.cmpi sge, %13, %15 : vector<18x32x1xi32>
    %c16_i32 = arith.constant 16 : i32
    %17 = vector.broadcast %c16_i32 : i32 to vector<18x32x1xi32>
    %18 = arith.cmpi sle, %13, %17 : vector<18x32x1xi32>
    %19 = arith.andi %16, %18 : vector<18x32x1xi1>
    %c8_i32 = arith.constant 8 : i32
    %20 = vector.broadcast %c8_i32 : i32 to vector<18x32x1xi32>
    %21 = arith.cmpi sge, %14, %20 : vector<18x32x1xi32>
    %22 = arith.andi %19, %21 : vector<18x32x1xi1>
    %c24_i32 = arith.constant 24 : i32
    %23 = vector.broadcast %c24_i32 : i32 to vector<18x32x1xi32>
    %24 = arith.cmpi slt, %14, %23 : vector<18x32x1xi32>
    %25 = arith.andi %22, %24 : vector<18x32x1xi1>
    %cst_7 = arith.constant 0.000000e+00 : f32
    %26 = vector.shape_cast %25 : vector<18x32x1xi1> to vector<18x32x1xi1>
    %27 = vector.broadcast %26 : vector<18x32x1xi1> to vector<18x32x8xi1>
    %28 = vector.broadcast %cst_7 : f32 to vector<18x32x8xf32>
    %29 = arith.select %27, %12, %28 : vector<18x32x8xi1>, vector<18x32x8xf32>
    %30 = vector.extract_strided_slice %29 {offsets = [0, 7, 0], sizes = [18, 16, 8], strides = [1, 1, 1]} : vector<18x32x8xf32> to vector<18x16x8xf32>
    %31 = arith.truncf %30 : vector<18x16x8xf32> to vector<18x16x8xbf16>
    %32 = vector.extract_strided_slice %29 {offsets = [0, 8, 0], sizes = [18, 16, 8], strides = [1, 1, 1]} : vector<18x32x8xf32> to vector<18x16x8xf32>
    %33 = arith.truncf %32 : vector<18x16x8xf32> to vector<18x16x8xbf16>
    %34 = vector.extract_strided_slice %29 {offsets = [0, 9, 0], sizes = [18, 16, 8], strides = [1, 1, 1]} : vector<18x32x8xf32> to vector<18x16x8xf32>
    %35 = arith.truncf %34 : vector<18x16x8xf32> to vector<18x16x8xbf16>
    %36 = vector.extract_strided_slice %31 {offsets = [0, 0, 0], sizes = [16, 16, 8], strides = [1, 1, 1]} : vector<18x16x8xbf16> to vector<16x16x8xbf16>
    %37 = vector.shape_cast %36 : vector<16x16x8xbf16> to vector<256x8xbf16>
    %c0_8 = arith.constant 0 : index
    %c0_9 = arith.constant 0 : index
    %c0_10 = arith.constant 0 : index
    %c0_11 = arith.constant 0 : index
    %38 = vector.load %arg2[%c0_8, %c0_9, %c0_10, %c0_11] : memref<3x3x8x8xbf16, #tpu.memory_space<vmem>>, vector<1x1x8x8xbf16>
    %39 = vector.shape_cast %38 : vector<1x1x8x8xbf16> to vector<8x8xbf16>
    %cst_12 = arith.constant dense<0.000000e+00> : vector<256x8xf32>
    %40 = tpu.matmul %37, %39, %cst_12 {dimension_numbers = #tpu.dot_dimension_numbers<[1], [0], [0], [1], [0, 0, 1, 1], [], []>} : vector<256x8xbf16>, vector<8x8xbf16>, vector<256x8xf32> -> vector<256x8xf32>
    %41 = vector.extract_strided_slice %33 {offsets = [0, 0, 0], sizes = [16, 16, 8], strides = [1, 1, 1]} : vector<18x16x8xbf16> to vector<16x16x8xbf16>
    %42 = vector.shape_cast %41 : vector<16x16x8xbf16> to vector<256x8xbf16>
    %c0_13 = arith.constant 0 : index
    %c1 = arith.constant 1 : index
    %c0_14 = arith.constant 0 : index
    %c0_15 = arith.constant 0 : index
    %43 = vector.load %arg2[%c0_13, %c1, %c0_14, %c0_15] : memref<3x3x8x8xbf16, #tpu.memory_space<vmem>>, vector<1x1x8x8xbf16>
    %44 = vector.shape_cast %43 : vector<1x1x8x8xbf16> to vector<8x8xbf16>
    %cst_16 = arith.constant dense<0.000000e+00> : vector<256x8xf32>
    %45 = tpu.matmul %42, %44, %cst_16 {dimension_numbers = #tpu.dot_dimension_numbers<[1], [0], [0], [1], [0, 0, 1, 1], [], []>} : vector<256x8xbf16>, vector<8x8xbf16>, vector<256x8xf32> -> vector<256x8xf32>
    %46 = arith.addf %40, %45 : vector<256x8xf32>
    %47 = vector.extract_strided_slice %35 {offsets = [0, 0, 0], sizes = [16, 16, 8], strides = [1, 1, 1]} : vector<18x16x8xbf16> to vector<16x16x8xbf16>
    %48 = vector.shape_cast %47 : vector<16x16x8xbf16> to vector<256x8xbf16>
    %c0_17 = arith.constant 0 : index
    %c2 = arith.constant 2 : index
    %c0_18 = arith.constant 0 : index
    %c0_19 = arith.constant 0 : index
    %49 = vector.load %arg2[%c0_17, %c2, %c0_18, %c0_19] : memref<3x3x8x8xbf16, #tpu.memory_space<vmem>>, vector<1x1x8x8xbf16>
    %50 = vector.shape_cast %49 : vector<1x1x8x8xbf16> to vector<8x8xbf16>
    %cst_20 = arith.constant dense<0.000000e+00> : vector<256x8xf32>
    %51 = tpu.matmul %48, %50, %cst_20 {dimension_numbers = #tpu.dot_dimension_numbers<[1], [0], [0], [1], [0, 0, 1, 1], [], []>} : vector<256x8xbf16>, vector<8x8xbf16>, vector<256x8xf32> -> vector<256x8xf32>
    %52 = arith.addf %46, %51 : vector<256x8xf32>
    %53 = vector.extract_strided_slice %31 {offsets = [1, 0, 0], sizes = [16, 16, 8], strides = [1, 1, 1]} : vector<18x16x8xbf16> to vector<16x16x8xbf16>
    %54 = vector.shape_cast %53 : vector<16x16x8xbf16> to vector<256x8xbf16>
    %c1_21 = arith.constant 1 : index
    %c0_22 = arith.constant 0 : index
    %c0_23 = arith.constant 0 : index
    %c0_24 = arith.constant 0 : index
    %55 = vector.load %arg2[%c1_21, %c0_22, %c0_23, %c0_24] : memref<3x3x8x8xbf16, #tpu.memory_space<vmem>>, vector<1x1x8x8xbf16>
    %56 = vector.shape_cast %55 : vector<1x1x8x8xbf16> to vector<8x8xbf16>
    %cst_25 = arith.constant dense<0.000000e+00> : vector<256x8xf32>
    %57 = tpu.matmul %54, %56, %cst_25 {dimension_numbers = #tpu.dot_dimension_numbers<[1], [0], [0], [1], [0, 0, 1, 1], [], []>} : vector<256x8xbf16>, vector<8x8xbf16>, vector<256x8xf32> -> vector<256x8xf32>
    %58 = arith.addf %52, %57 : vector<256x8xf32>
    %59 = vector.extract_strided_slice %33 {offsets = [1, 0, 0], sizes = [16, 16, 8], strides = [1, 1, 1]} : vector<18x16x8xbf16> to vector<16x16x8xbf16>
    %60 = vector.shape_cast %59 : vector<16x16x8xbf16> to vector<256x8xbf16>
    %c1_26 = arith.constant 1 : index
    %c1_27 = arith.constant 1 : index
    %c0_28 = arith.constant 0 : index
    %c0_29 = arith.constant 0 : index
    %61 = vector.load %arg2[%c1_26, %c1_27, %c0_28, %c0_29] : memref<3x3x8x8xbf16, #tpu.memory_space<vmem>>, vector<1x1x8x8xbf16>
    %62 = vector.shape_cast %61 : vector<1x1x8x8xbf16> to vector<8x8xbf16>
    %cst_30 = arith.constant dense<0.000000e+00> : vector<256x8xf32>
    %63 = tpu.matmul %60, %62, %cst_30 {dimension_numbers = #tpu.dot_dimension_numbers<[1], [0], [0], [1], [0, 0, 1, 1], [], []>} : vector<256x8xbf16>, vector<8x8xbf16>, vector<256x8xf32> -> vector<256x8xf32>
    %64 = arith.addf %58, %63 : vector<256x8xf32>
    %65 = vector.extract_strided_slice %35 {offsets = [1, 0, 0], sizes = [16, 16, 8], strides = [1, 1, 1]} : vector<18x16x8xbf16> to vector<16x16x8xbf16>
    %66 = vector.shape_cast %65 : vector<16x16x8xbf16> to vector<256x8xbf16>
    %c1_31 = arith.constant 1 : index
    %c2_32 = arith.constant 2 : index
    %c0_33 = arith.constant 0 : index
    %c0_34 = arith.constant 0 : index
    %67 = vector.load %arg2[%c1_31, %c2_32, %c0_33, %c0_34] : memref<3x3x8x8xbf16, #tpu.memory_space<vmem>>, vector<1x1x8x8xbf16>
    %68 = vector.shape_cast %67 : vector<1x1x8x8xbf16> to vector<8x8xbf16>
    %cst_35 = arith.constant dense<0.000000e+00> : vector<256x8xf32>
    %69 = tpu.matmul %66, %68, %cst_35 {dimension_numbers = #tpu.dot_dimension_numbers<[1], [0], [0], [1], [0, 0, 1, 1], [], []>} : vector<256x8xbf16>, vector<8x8xbf16>, vector<256x8xf32> -> vector<256x8xf32>
    %70 = arith.addf %64, %69 : vector<256x8xf32>
    %71 = vector.extract_strided_slice %31 {offsets = [2, 0, 0], sizes = [16, 16, 8], strides = [1, 1, 1]} : vector<18x16x8xbf16> to vector<16x16x8xbf16>
    %72 = vector.shape_cast %71 : vector<16x16x8xbf16> to vector<256x8xbf16>
    %c2_36 = arith.constant 2 : index
    %c0_37 = arith.constant 0 : index
    %c0_38 = arith.constant 0 : index
    %c0_39 = arith.constant 0 : index
    %73 = vector.load %arg2[%c2_36, %c0_37, %c0_38, %c0_39] : memref<3x3x8x8xbf16, #tpu.memory_space<vmem>>, vector<1x1x8x8xbf16>
    %74 = vector.shape_cast %73 : vector<1x1x8x8xbf16> to vector<8x8xbf16>
    %cst_40 = arith.constant dense<0.000000e+00> : vector<256x8xf32>
    %75 = tpu.matmul %72, %74, %cst_40 {dimension_numbers = #tpu.dot_dimension_numbers<[1], [0], [0], [1], [0, 0, 1, 1], [], []>} : vector<256x8xbf16>, vector<8x8xbf16>, vector<256x8xf32> -> vector<256x8xf32>
    %76 = arith.addf %70, %75 : vector<256x8xf32>
    %77 = vector.extract_strided_slice %33 {offsets = [2, 0, 0], sizes = [16, 16, 8], strides = [1, 1, 1]} : vector<18x16x8xbf16> to vector<16x16x8xbf16>
    %78 = vector.shape_cast %77 : vector<16x16x8xbf16> to vector<256x8xbf16>
    %c2_41 = arith.constant 2 : index
    %c1_42 = arith.constant 1 : index
    %c0_43 = arith.constant 0 : index
    %c0_44 = arith.constant 0 : index
    %79 = vector.load %arg2[%c2_41, %c1_42, %c0_43, %c0_44] : memref<3x3x8x8xbf16, #tpu.memory_space<vmem>>, vector<1x1x8x8xbf16>
    %80 = vector.shape_cast %79 : vector<1x1x8x8xbf16> to vector<8x8xbf16>
    %cst_45 = arith.constant dense<0.000000e+00> : vector<256x8xf32>
    %81 = tpu.matmul %78, %80, %cst_45 {dimension_numbers = #tpu.dot_dimension_numbers<[1], [0], [0], [1], [0, 0, 1, 1], [], []>} : vector<256x8xbf16>, vector<8x8xbf16>, vector<256x8xf32> -> vector<256x8xf32>
    %82 = arith.addf %76, %81 : vector<256x8xf32>
    %83 = vector.extract_strided_slice %35 {offsets = [2, 0, 0], sizes = [16, 16, 8], strides = [1, 1, 1]} : vector<18x16x8xbf16> to vector<16x16x8xbf16>
    %84 = vector.shape_cast %83 : vector<16x16x8xbf16> to vector<256x8xbf16>
    %c2_46 = arith.constant 2 : index
    %c2_47 = arith.constant 2 : index
    %c0_48 = arith.constant 0 : index
    %c0_49 = arith.constant 0 : index
    %85 = vector.load %arg2[%c2_46, %c2_47, %c0_48, %c0_49] : memref<3x3x8x8xbf16, #tpu.memory_space<vmem>>, vector<1x1x8x8xbf16>
    %86 = vector.shape_cast %85 : vector<1x1x8x8xbf16> to vector<8x8xbf16>
    %cst_50 = arith.constant dense<0.000000e+00> : vector<256x8xf32>
    %87 = tpu.matmul %84, %86, %cst_50 {dimension_numbers = #tpu.dot_dimension_numbers<[1], [0], [0], [1], [0, 0, 1, 1], [], []>} : vector<256x8xbf16>, vector<8x8xbf16>, vector<256x8xf32> -> vector<256x8xf32>
    %88 = arith.addf %82, %87 : vector<256x8xf32>
    %89 = vector.shape_cast %88 : vector<256x8xf32> to vector<16x16x8xf32>
    %90 = tpu.iota {dimensions = array<i32: 1>} : vector<1x16x1xi32>
    %c16_i32_51 = arith.constant 16 : i32
    %91 = vector.broadcast %c16_i32_51 : i32 to vector<1x16x1xi32>
    %92 = arith.cmpi slt, %90, %91 : vector<1x16x1xi32>
    %cst_52 = arith.constant 0.000000e+00 : f32
    %93 = vector.shape_cast %92 : vector<1x16x1xi1> to vector<1x16x1xi1>
    %94 = vector.broadcast %93 : vector<1x16x1xi1> to vector<16x16x8xi1>
    %95 = vector.broadcast %cst_52 : f32 to vector<16x16x8xf32>
    %96 = arith.select %94, %89, %95 : vector<16x16x8xi1>, vector<16x16x8xf32>
    %cst_53 = arith.constant dense<0.000000e+00> : vector<16x8xf32>
    %97 = vector.multi_reduction <add>, %96, %cst_53 [0] : vector<16x16x8xf32> to vector<16x8xf32>
    %cst_54 = arith.constant dense<0.000000e+00> : vector<8xf32>
    %98 = vector.multi_reduction <add>, %97, %cst_54 [0] : vector<16x8xf32> to vector<8xf32>
    %99 = vector.shape_cast %98 : vector<8xf32> to vector<1x8xf32>
    %100 = arith.mulf %96, %96 : vector<16x16x8xf32>
    %cst_55 = arith.constant dense<0.000000e+00> : vector<16x8xf32>
    %101 = vector.multi_reduction <add>, %100, %cst_55 [0] : vector<16x16x8xf32> to vector<16x8xf32>
    %cst_56 = arith.constant dense<0.000000e+00> : vector<8xf32>
    %102 = vector.multi_reduction <add>, %101, %cst_56 [0] : vector<16x8xf32> to vector<8xf32>
    %103 = vector.shape_cast %102 : vector<8xf32> to vector<1x8xf32>
    %c0_57 = arith.constant 0 : index
    %c0_58 = arith.constant 0 : index
    %c0_59 = arith.constant 0 : index
    %104 = vector.load %arg6[%c0_57, %c0_58, %c0_59] : memref<1x2x8xf32, #tpu.memory_space<vmem>>, vector<1x1x8xf32>
    %105 = vector.shape_cast %104 : vector<1x1x8xf32> to vector<1x8xf32>
    %106 = vector.shape_cast %99 : vector<1x8xf32> to vector<1x1x8xf32>
    tpu.vector_store %arg6[%c0_57, %c0_58, %c0_59], %106 {strides = array<i32>} : memref<1x2x8xf32, #tpu.memory_space<vmem>>, vector<1x1x8xf32>,
    %c0_60 = arith.constant 0 : index
    %c1_61 = arith.constant 1 : index
    %c0_62 = arith.constant 0 : index
    %107 = vector.load %arg6[%c0_60, %c1_61, %c0_62] : memref<1x2x8xf32, #tpu.memory_space<vmem>>, vector<1x1x8xf32>
    %108 = vector.shape_cast %107 : vector<1x1x8xf32> to vector<1x8xf32>
    %109 = vector.shape_cast %103 : vector<1x8xf32> to vector<1x1x8xf32>
    tpu.vector_store %arg6[%c0_60, %c1_61, %c0_62], %109 {strides = array<i32>} : memref<1x2x8xf32, #tpu.memory_space<vmem>>, vector<1x1x8xf32>,
    %110 = arith.truncf %89 : vector<16x16x8xf32> to vector<16x16x8xbf16>
    %c0_63 = arith.constant 0 : index
    %c1_64 = arith.constant 1 : index
    %c8 = arith.constant 8 : index
    %c0_65 = arith.constant 0 : index
    %111 = vector.load %arg5[%c0_63, %c1_64, %c8, %c0_65] : memref<1x18x32x8xbf16, #tpu.memory_space<vmem>>, vector<1x16x16x8xbf16>
    %112 = vector.shape_cast %111 : vector<1x16x16x8xbf16> to vector<16x16x8xbf16>
    %113 = vector.shape_cast %110 : vector<16x16x8xbf16> to vector<1x16x16x8xbf16>
    tpu.vector_store %arg5[%c0_63, %c1_64, %c8, %c0_65], %113 {strides = array<i32>} : memref<1x18x32x8xbf16, #tpu.memory_space<vmem>>, vector<1x16x16x8xbf16>,
    return
  }
  func.func @transform_0(%arg0: i32) -> (i32, i32, i32, i32) {
    %c0_i32 = arith.constant 0 : i32
    %c0_i32_0 = arith.constant 0 : i32
    %c0_i32_1 = arith.constant 0 : i32
    %c0_i32_2 = arith.constant 0 : i32
    return %arg0, %c0_i32, %c0_i32_0, %c0_i32_1 : i32, i32, i32, i32
  }
  func.func @transform_1(%arg0: i32) -> (i32, i32, i32, i32) {
    %c0_i32 = arith.constant 0 : i32
    %c0_i32_0 = arith.constant 0 : i32
    %c0_i32_1 = arith.constant 0 : i32
    %c0_i32_2 = arith.constant 0 : i32
    %c0_i32_3 = arith.constant 0 : i32
    return %c0_i32, %c0_i32_0, %c0_i32_1, %c0_i32_2 : i32, i32, i32, i32
  }
  func.func @transform_2(%arg0: i32) -> (i32, i32) {
    %c0_i32 = arith.constant 0 : i32
    %c0_i32_0 = arith.constant 0 : i32
    %c0_i32_1 = arith.constant 0 : i32
    return %c0_i32, %c0_i32_0 : i32, i32
  }
  func.func @transform_3(%arg0: i32) -> (i32, i32) {
    %c0_i32 = arith.constant 0 : i32
    %c0_i32_0 = arith.constant 0 : i32
    %c0_i32_1 = arith.constant 0 : i32
    return %c0_i32, %c0_i32_0 : i32, i32
  }
  func.func @transform_4(%arg0: i32) -> (i32, i32, i32, i32) {
    %c0_i32 = arith.constant 0 : i32
    %c0_i32_0 = arith.constant 0 : i32
    %c0_i32_1 = arith.constant 0 : i32
    %c0_i32_2 = arith.constant 0 : i32
    return %arg0, %c0_i32, %c0_i32_0, %c0_i32_1 : i32, i32, i32, i32
  }
  func.func @transform_5(%arg0: i32) -> (i32, i32, i32) {
    %c0_i32 = arith.constant 0 : i32
    %c0_i32_0 = arith.constant 0 : i32
    %c0_i32_1 = arith.constant 0 : i32
    return %arg0, %c0_i32, %c0_i32_0 : i32, i32, i32
  }
}

module attributes {stable_mosaic.version = 11 : i64} {
  func.func @kernel(%arg0: i32, %arg1: memref<1x18x32x8xbf16, #tpu.memory_space<vmem>>, %arg2: memref<1x18x32x8xbf16, #tpu.memory_space<vmem>>, %arg3: memref<1x8xf32, #tpu.memory_space<vmem>>, %arg4: memref<1x8xf32, #tpu.memory_space<vmem>>, %arg5: memref<1x16x16x8xf32, #tpu.memory_space<vmem>>) attributes {dimension_semantics = [#tpu.dimension_semantics<parallel>], iteration_bounds = array<i64: 2>, scalar_prefetch = 0 : i64, scratch_operands = 0 : i64, tpu.core_type = #tpu.core_type<tc>, window_params = [{transform_indices = @transform_0, window_bounds = array<i64: 1, 18, 32, 8>}, {transform_indices = @transform_1, window_bounds = array<i64: 1, 18, 32, 8>}, {pipeline_mode = #tpu.pipeline_mode<synchronous>, transform_indices = @transform_2, window_bounds = array<i64: 1, 8>}, {pipeline_mode = #tpu.pipeline_mode<synchronous>, transform_indices = @transform_3, window_bounds = array<i64: 1, 8>}, {transform_indices = @transform_4, window_bounds = array<i64: 1, 16, 16, 8>}]} {
    %c0 = arith.constant 0 : index
    %c1 = arith.constant 1 : index
    %c8 = arith.constant 8 : index
    %c0_0 = arith.constant 0 : index
    %0 = vector.load %arg1[%c0, %c1, %c8, %c0_0] : memref<1x18x32x8xbf16, #tpu.memory_space<vmem>>, vector<1x16x16x8xbf16>
    %1 = vector.shape_cast %0 : vector<1x16x16x8xbf16> to vector<16x16x8xbf16>
    %2 = arith.extf %1 : vector<16x16x8xbf16> to vector<16x16x8xf32>
    %c0_1 = arith.constant 0 : index
    %c1_2 = arith.constant 1 : index
    %c8_3 = arith.constant 8 : index
    %c0_4 = arith.constant 0 : index
    %3 = vector.load %arg2[%c0_1, %c1_2, %c8_3, %c0_4] : memref<1x18x32x8xbf16, #tpu.memory_space<vmem>>, vector<1x16x16x8xbf16>
    %4 = vector.shape_cast %3 : vector<1x16x16x8xbf16> to vector<16x16x8xbf16>
    %5 = arith.extf %4 : vector<16x16x8xbf16> to vector<16x16x8xf32>
    %c0_5 = arith.constant 0 : index
    %c0_6 = arith.constant 0 : index
    %6 = vector.load %arg3[%c0_5, %c0_6] : memref<1x8xf32, #tpu.memory_space<vmem>>, vector<1x8xf32>
    %7 = vector.shape_cast %6 : vector<1x8xf32> to vector<1x1x8xf32>
    %8 = vector.broadcast %7 : vector<1x1x8xf32> to vector<16x16x8xf32>
    %9 = arith.mulf %2, %8 : vector<16x16x8xf32>
    %c0_7 = arith.constant 0 : index
    %c0_8 = arith.constant 0 : index
    %10 = vector.load %arg4[%c0_7, %c0_8] : memref<1x8xf32, #tpu.memory_space<vmem>>, vector<1x8xf32>
    %11 = vector.shape_cast %10 : vector<1x8xf32> to vector<1x1x8xf32>
    %12 = vector.broadcast %11 : vector<1x1x8xf32> to vector<16x16x8xf32>
    %13 = arith.addf %9, %12 : vector<16x16x8xf32>
    %14 = arith.addf %13, %5 : vector<16x16x8xf32>
    %cst = arith.constant 0.000000e+00 : f32
    %15 = vector.broadcast %cst : f32 to vector<16x16x8xf32>
    %16 = arith.maximumf %14, %15 : vector<16x16x8xf32>
    %c0_9 = arith.constant 0 : index
    %c0_10 = arith.constant 0 : index
    %c0_11 = arith.constant 0 : index
    %c0_12 = arith.constant 0 : index
    %17 = vector.load %arg5[%c0_9, %c0_10, %c0_11, %c0_12] : memref<1x16x16x8xf32, #tpu.memory_space<vmem>>, vector<1x16x16x8xf32>
    %18 = vector.shape_cast %17 : vector<1x16x16x8xf32> to vector<16x16x8xf32>
    %19 = vector.shape_cast %16 : vector<16x16x8xf32> to vector<1x16x16x8xf32>
    tpu.vector_store %arg5[%c0_9, %c0_10, %c0_11, %c0_12], %19 {strides = array<i32>} : memref<1x16x16x8xf32, #tpu.memory_space<vmem>>, vector<1x16x16x8xf32>,
    return
  }
  func.func @transform_0(%arg0: i32) -> (i32, i32, i32, i32) {
    %c0_i32 = arith.constant 0 : i32
    %c0_i32_0 = arith.constant 0 : i32
    %c0_i32_1 = arith.constant 0 : i32
    %c0_i32_2 = arith.constant 0 : i32
    return %arg0, %c0_i32, %c0_i32_0, %c0_i32_1 : i32, i32, i32, i32
  }
  func.func @transform_1(%arg0: i32) -> (i32, i32, i32, i32) {
    %c0_i32 = arith.constant 0 : i32
    %c0_i32_0 = arith.constant 0 : i32
    %c0_i32_1 = arith.constant 0 : i32
    %c0_i32_2 = arith.constant 0 : i32
    return %arg0, %c0_i32, %c0_i32_0, %c0_i32_1 : i32, i32, i32, i32
  }
  func.func @transform_2(%arg0: i32) -> (i32, i32) {
    %c0_i32 = arith.constant 0 : i32
    %c0_i32_0 = arith.constant 0 : i32
    %c0_i32_1 = arith.constant 0 : i32
    return %c0_i32, %c0_i32_0 : i32, i32
  }
  func.func @transform_3(%arg0: i32) -> (i32, i32) {
    %c0_i32 = arith.constant 0 : i32
    %c0_i32_0 = arith.constant 0 : i32
    %c0_i32_1 = arith.constant 0 : i32
    return %c0_i32, %c0_i32_0 : i32, i32
  }
  func.func @transform_4(%arg0: i32) -> (i32, i32, i32, i32) {
    %c0_i32 = arith.constant 0 : i32
    %c0_i32_0 = arith.constant 0 : i32
    %c0_i32_1 = arith.constant 0 : i32
    %c0_i32_2 = arith.constant 0 : i32
    return %arg0, %c0_i32, %c0_i32_0, %c0_i32_1 : i32, i32, i32, i32
  }
}

</mosaic_0001>

<bundles_post_ra>
// kernel: basic_block_forward.5
= control target key start
LH: loop header
LB: loop body
LE: loop exit
PB: predicated region body
PF: predicated region fallthrough
CT: control target
= control target key end

     0   :  { %s1572_s0 = inlined_call_operand.hbm [shape: bf16[2,18,32,8], index: 0, kind: input, shape index: {}]   ;;  %s1573_s1 = inlined_call_operand.hbm [shape: bf16[2,18,32,8], index: 1, kind: input, shape index: {}]   ;;  %s1574_s2 = inlined_call_operand.hbm [shape: f32[1,8], index: 2, kind: input, shape index: {}]   ;;  %s1575_s3 = inlined_call_operand.hbm [shape: f32[1,8], index: 3, kind: input, shape index: {}]   ;;  %s1576_s4 = inlined_call_operand.hbm [shape: f32[2,16,16,8], index: 4, kind: output, shape index: {}]  }
   0x1   :  { %1582 = sst [smem:[#allocation16_spill]] %s1572_s0 }
   0x2   :  { %9 = vsyncpa [#allocation3], 0 }
   0x3   :  { %11 = vsyncpa [#allocation3 + $0x1], 0 }
   0x4   :  { %12 = vsyncpa [#allocation6], 0 }
   0x5   :  { %14 = vsyncpa [#allocation6 + $0x1], 0 }
   0x6   :  { %15 = vsyncpa [#allocation9], 0 }
   0x7   :  { %16 = vsyncpa [#allocation4], 0 }
   0x8   :  { %18 = vsyncpa [#allocation4 + $0x1], 0  ;;  %s1109_s15 = smov 0   ;;  %s1111_s16 = smov 0  }
   0x9   :  { %s1113_s17 = smov 0   ;;  %s1115_s18 = smov 0  }
   0xa LB: > { %s1130_s19 = sadd.s32 4294967295, %s1073_s18   ;;  %s715_s20 = sadd.s32 4294967294, %s1073_s18   ;;  %s1073_s18 = sphi %s1115_s18, %s1605_s18   ;;  %s1069_s17 = sphi %s1113_s17, %s1604_s17   ;;  %s1065_s16 = sphi %s1111_s16, %s1603_s16   ;;  %s1061_s15 = sphi %s1109_s15, %s1602_s15  }
   0xb   : > { %s1134_s21 = sadd.s32 1, %s1073_s18   ;;  %s31_s22 = sadd.s32 1, %s1069_s17 }
   0xc   : > { %s28_s23 = ssub.s32 %s1073_s18, %s1134_s21  ;;  %p38_p0 = scmp.ne.s32.totalorder %s1069_s17, %s1065_s16 }
   0xd   : > { %p29_p1 = scmp.eq.s32.totalorder %s28_s23, 0  ;;  %p39_p2 = scmp.eq.s32.totalorder %s1073_s18, 0 }
   0xe   : > { %p44_p3 = scmp.ne.s32.totalorder %s1065_s16, %s1061_s15  ;;  %p1577_p4 = scmp.eq.s32.totalorder %s1130_s19, 0 }
   0xf   : > { %s1146_s24 = scalar_select %p29_p1, %s1069_s17, %s31_s22  }
  0x10   : > { %p1148_p5 = por %p39_p2, %p38_p0  ;;  %p1154_p6 = por %p1577_p4, %p44_p3 }
  0x11   : > { %p136_p7 = scmp.eq.s32.totalorder %s1130_s19, 1  ;;  %p142_p8 = scmp.eq.s32.totalorder %s715_s20, 1 }
  0x12   : > { %s1584_s26 = scalar_select %p1154_p6, 1, 0 }
  0x13   : > { %p716_p9 = scmp.ge.s32.totalorder %s1073_s18, 1  ;;  %p149_p10 = scmp.lt.s32.totalorder %s1073_s18, 3 }
  0x14   : > { %p1161_p11 = por %p136_p7, %p38_p0  ;;  %p1165_p12 = por %p142_p8, %p44_p3 }
  0x15   : > { %p1169_p13 = pnand %p716_p9, %p149_p10  ;;  %s1075_s30 = smov [#allocation7]  }
  0x16   : > { %s1585_s27 = scalar_select %p1161_p11, 1, 0 }
  0x17   : > { %s1586_s28 = scalar_select %p1165_p12, 1, 0 }
  0x18   : > { %s1587_s29 = scalar_select %p1169_p13, 1, 0 }
  0x19   : > { %p817_p2 = pneg %p1169_p13  ;;  %s162_s5 = sshll.u32 %s1075_s30, 4  ;;  %s163_s5 = int_to_ptr.vmem [resolvable:$true] %s162_s5 }
  0x1a   : > { %p837_p4 = scmp.lt.s32.totalorder %s1073_s18, 2  ;;  %p1588_p0 = scmp.eq.s32.totalorder %s1130_s19, 0 }
  0x1b   : > { %s1076_s8 = smov [#allocation8]   ;;  %s879_s12 = scalar_lea.hbm %s1574_s2, 16 }
  0x1c   : > { %p1179_p7 = pnand %p817_p2, %p1588_p0  ;;  %p1185_p3 = pnand %p837_p4, %p1148_p5 }
  0x1d   : > { %s173_s9 = sshll.u32 %s1076_s8, 4  ;;  %p880_p8 = scmp.ne.s32.totalorder %s1574_s2, %s879_s12  ;;  %s1189_s9 = int_to_ptr.vmem [resolvable:$true] %s173_s9 }
  0x1e   : > { %s1590_s7 = scalar_select %p1185_p3, 1, 0 }
  0x1f   : > { %p881_p9 = pneg %p1179_p7  ;;  %p886_p10 = scmp.lt.u32.totalorder %s879_s12, %s1574_s2 }
  0x21   : > { %p882_p4 = pnand %p881_p9, %p880_p8 }
  0x23   : > { %p883_p5 = pneg %p882_p4 }
  0x25   : > { %p888_p2 = pnand %p886_p10, %p883_p5 }
  0x27   : > { %891 = shalt.err (!%p888_p2)
}
  0x28   : > { %s892_s23 = scalar_lea.vmem %s163_s5, 16  ;;  %s899_s25 = scalar_lea.vmem %s163_s5, 32 }
  0x29   : > { %p893_p0 = scmp.ne.s32.totalorder %s163_s5, %s892_s23  ;;  %p900_p11 = scmp.lt.s32.totalorder %s163_s5, %s163_s5 }
  0x2a   : > { %p901_p6 = scmp.lt.s32.totalorder %s899_s25, %s892_s23 }
  0x2b   : > { %p895_p1 = pnand %p893_p0, %p881_p9 }
  0x2c   : > { %p902_p13 = por %p901_p6, %p900_p11 }
  0x2d   : > { %p896_p12 = pneg %p895_p1 }
  0x2f   : > { %p903_p3 = pnand %p902_p13, %p896_p12 }
  0x31   : > { %906 = shalt.err (!%p903_p3)
}
  0x32   : > { %820 = dma.hbm_to_vmem [thread:$0]  (!%p1179_p7), %s1574_s2, 16, %s163_s5, [#allocation6]  }
  0x33   : > { %s184_s10 = sand.u32 1, %s1069_s17   ;;  %s907_s13 = scalar_lea.hbm %s1575_s3, 16 }
  0x34   : > { %p908_p1 = scmp.ne.s32.totalorder %s1575_s3, %s907_s13  ;;  %p914_p12 = scmp.lt.u32.totalorder %s907_s13, %s1575_s3 }
  0x36   : > { %p910_p6 = pnand %p908_p1, %p881_p9 }
  0x38   : > { %p911_p11 = pneg %p910_p6 }
  0x3a   : > { %p916_p13 = pnand %p914_p12, %p911_p11 }
  0x3c   : > { %919 = shalt.err (!%p916_p13)
}
  0x3d   : > { %s920_s5 = scalar_lea.vmem %s1189_s9, 16  ;;  %s927_s25 = scalar_lea.vmem %s1189_s9, 32 }
  0x3e   : > { %p921_p3 = scmp.ne.s32.totalorder %s1189_s9, %s920_s5  ;;  %p928_p5 = scmp.lt.s32.totalorder %s1189_s9, %s1189_s9 }
  0x3f   : > { %p929_p10 = scmp.lt.s32.totalorder %s927_s25, %s920_s5 }
  0x40   : > { %p923_p8 = pnand %p921_p3, %p881_p9 }
  0x41   : > { %p930_p2 = por %p929_p10, %p928_p5 }
  0x42   : > { %p924_p4 = pneg %p923_p8 }
  0x44   : > { %p931_p0 = pnand %p930_p2, %p924_p4 }
  0x46   : > { %934 = shalt.err (!%p931_p0)
}
  0x47   : > { %823 = dma.hbm_to_vmem [thread:$0]  (!%p1179_p7), %s1575_s3, 16, %s1189_s9, [#allocation9]  }
  0x48   : > { %s1240_s11 = smul.u32 288, %s184_s10  ;;  %s1591_s0 = sld [smem:[#allocation16_spill]] }
  0x49   : > { %s799_s12 = smul.u32 4608, %s1073_s18  ;;  %s205_s23 = sand.u32 1, %s1073_s18  }
  0x4a   : > { %s188_s6 = scalar_lea.vmem [#allocation2], %s1240_s11  ;;  %s1254_s9 = scalar_lea.sflag [#allocation3], %s184_s10 }
  0x4b   : > { %s195_s22 = sshll.u32 %s188_s6, 4  ;;  %p1592_p9 = scmp.ne.s32.totalorder %s1590_s7, 0  ;;  %s1251_s22 = int_to_ptr.vmem [resolvable:$true] %s195_s22 }
  0x4d   : > { %p937_p1 = pneg %p1592_p9 }
  0x4e   : > { %s1248_s20 = scalar_lea.hbm %s1591_s0, %s799_s12  ;;  %s940_s8 = scalar_lea.hbm %s1591_s0, 9216 }
  0x4f   : > { %s935_s5 = scalar_lea.hbm %s1248_s20, 4608  ;;  %p941_p12 = scmp.lt.u32.totalorder %s1248_s20, %s1591_s0 }
  0x50   : > { %p936_p7 = scmp.ne.s32.totalorder %s1248_s20, %s935_s5  ;;  %p942_p13 = scmp.lt.u32.totalorder %s940_s8, %s935_s5 }
  0x51   : > { %p944_p8 = scmp.lt.u32.totalorder %s935_s5, %s1248_s20 }
  0x52   : > { %p938_p6 = pnand %p937_p1, %p936_p7  ;;  %p943_p3 = por %p942_p13, %p941_p12 }
  0x54   : > { %p939_p11 = pneg %p938_p6  ;;  %p945_p4 = por %p944_p8, %p943_p3 }
  0x56   : > { %p946_p5 = pnand %p945_p4, %p939_p11 }
  0x58   : > { %949 = shalt.err (!%p946_p5)
}
  0x59   : > { %s950_s10 = scalar_lea.vmem %s1251_s22, 4608  ;;  %s1077_s6 = smov [#allocation2]  }
  0x5a   : > { %p951_p10 = scmp.ne.s32.totalorder %s1251_s22, %s950_s10  ;;  %s955_s25 = sshll.u32 %s1077_s6, 4  ;;  %s956_s25 = int_to_ptr.vmem [resolvable:$false] %s955_s25 }
  0x5b   : > { %s957_s30 = scalar_lea.vmem %s956_s25, 9216  ;;  %p958_p7 = scmp.lt.s32.totalorder %s1251_s22, %s956_s25 }
  0x5c   : > { %p953_p2 = pnand %p951_p10, %p937_p1  ;;  %p959_p6 = scmp.lt.s32.totalorder %s957_s30, %s950_s10 }
  0x5e   : > { %p954_p0 = pneg %p953_p2  ;;  %p960_p12 = por %p959_p6, %p958_p7 }
  0x60   : > { %p961_p13 = pnand %p960_p12, %p954_p0 }
  0x62   : > { %964 = shalt.err (!%p961_p13)
}
  0x63   : > { %s1078_s5 = smov 64   ;;  %s1079_s8 = smov 4  }
  0x64   : > { %827 = dma.hbm_to_vmem [thread:$0]  (!%p1592_p9), %s1248_s20, 4608, %s1251_s22, %s1254_s9, %s1078_s5, %s1078_s5, %s1079_s8  }
  0x65   : > { %s1290_s10 = scalar_lea.hbm %s1573_s1, %s799_s12  ;;  %s209_s6 = scalar_lea.vmem [#allocation5], %s1240_s11 }
  0x66   : > { %s216_s25 = sshll.u32 %s209_s6, 4  ;;  %s1297_s30 = scalar_lea.sflag [#allocation6], %s205_s23  ;;  %s1293_s25 = int_to_ptr.vmem [resolvable:$true] %s216_s25 }
  0x67   : > { %s965_s0 = scalar_lea.hbm %s1290_s10, 4608  ;;  %s970_s22 = scalar_lea.hbm %s1573_s1, 9216 }
  0x68   : > { %p966_p11 = scmp.ne.s32.totalorder %s1290_s10, %s965_s0  ;;  %p971_p4 = scmp.lt.u32.totalorder %s1290_s10, %s1573_s1 }
  0x69   : > { %p972_p5 = scmp.lt.u32.totalorder %s970_s22, %s965_s0  ;;  %p974_p2 = scmp.lt.u32.totalorder %s965_s0, %s1290_s10 }
  0x6a   : > { %p968_p3 = pnand %p966_p11, %p937_p1 }
  0x6b   : > { %p973_p10 = por %p972_p5, %p971_p4 }
  0x6c   : > { %p969_p8 = pneg %p968_p3 }
  0x6d   : > { %p975_p0 = por %p974_p2, %p973_p10 }
  0x6f   : > { %p976_p7 = pnand %p975_p0, %p969_p8 }
  0x71   : > { %979 = shalt.err (!%p976_p7)
}
  0x72   : > { %s980_s11 = scalar_lea.vmem %s1293_s25, 4608  ;;  %s1080_s23 = smov [#allocation5]  }
  0x73   : > { %p981_p6 = scmp.ne.s32.totalorder %s1293_s25, %s980_s11  ;;  %s985_s14 = sshll.u32 %s1080_s23, 4  ;;  %s986_s14 = int_to_ptr.vmem [resolvable:$false] %s985_s14 }
  0x74   : > { %s987_s6 = scalar_lea.vmem %s986_s14, 9216  ;;  %p988_p11 = scmp.lt.s32.totalorder %s1293_s25, %s986_s14 }
  0x75   : > { %p983_p12 = pnand %p981_p6, %p937_p1  ;;  %p989_p3 = scmp.lt.s32.totalorder %s987_s6, %s980_s11 }
  0x77   : > { %p984_p13 = pneg %p983_p12  ;;  %p990_p4 = por %p989_p3, %p988_p11 }
  0x79   : > { %p991_p5 = pnand %p990_p4, %p984_p13 }
  0x7b   : > { %994 = shalt.err (!%p991_p5)
}
  0x7c   : > { %830 = dma.hbm_to_vmem [thread:$0]  (!%p1592_p9), %s1290_s10, 4608, %s1293_s25, %s1297_s30, %s1078_s5, %s1078_s5, %s1079_s8  }
  0x7d   : > { %p1593_p1 = scmp.ne.s32.totalorder %s1587_s29, 0 }
  0x7e   : > { %s1329_s0 = sand.u32 (!%p1593_p1), 1, %s1065_s16   ;;  %p1594_p8 = scmp.ne.s32.totalorder (!%p1593_p1), %s1584_s26, 0 }
  0x7f   : > { %228 = sbr.rel (%p1593_p1) target bundleno = 214 (0xd6), region = 36  ;;  %s231_s12 = scalar_lea.sflag (!%p1593_p1), [#allocation3], %s1329_s0 }
  0x80   : > { %s802_s20 = smul.u32 (!%p1593_p1), 288, %s1329_s0 }
  0x82   : > { %s1333_s22 = scalar_lea.vmem (!%p1593_p1), [#allocation2], %s802_s20 }
  0x86   : > { %1040 = dma.done.wait (%p1594_p8), %s231_s12, 4608  }
  0x87   : > { %1042 = vsyncadd (%p1594_p8), %s231_s12, 4294962688  ;;  %s239_s7 = sand.u32 1, %s1130_s19   ;;  %s1340_s5 = scalar_lea.vmem [#allocation5], %s802_s20 }
  0x88   : > { %s240_s29 = scalar_lea.sflag [#allocation6], %s239_s7 }
  0x89   : > { %1044 = dma.done.wait (%p1594_p8), %s240_s29, 4608  }
  0x8a   : > { %1046 = vsyncadd (%p1594_p8), %s240_s29, 4294962688  ;;  %p1595_p9 = scmp.eq.s32.totalorder %s1130_s19, 0 }
  0x8c   : > { %1048 = dma.done.wait (%p1595_p9), [#allocation6], 16   ;;  %p1596_p10 = pmov %p1595_p9 }
  0x8d   : > { %p1597_p2 = pmov %p1595_p9 }
  0x8e   : > { %1050 = vsyncadd (%p1596_p10), [#allocation6], 4294967280 }
  0x8f   : > { %1052 = dma.done.wait (%p1597_p2), [#allocation9], 16   ;;  %p1598_p0 = pmov %p1597_p2 }
  0x90   : > { %v726_v0 = vld [vmem:[%s1333_s22 + $0x14] sm:$0xff]   ;;  %v1356_v2 = vld [vmem:[#allocation7] ss:$0 sm:$0xff]  ;;  %vm553_vm0 = vcmask 64512   ;;  %v1358_v5 = vld [vmem:[#allocation8] ss:$0 sm:$0xff] }
  0x91   : > { %1054 = vsyncadd (%p1598_p0), [#allocation9], 4294967280  ;;  %v758_v1 = vld [vmem:[%s1340_s5 + $0x14] sm:$0xff]   ;;  %v314_v3 = vunpack.c.l.bf16 %v726_v0  ;;  %v315_v6 = vunpack.c.h.bf16 %v726_v0  ;;  %v728_v8 = vld [vmem:[%s1333_s22 + $0x24] sm:$0xff]   ;;  %s725_s26 = sshll.u32 %s1329_s0, 8  ;;  %s797_s10 = sshll.u32 %s1130_s19, 12 }
  0x92   : > { %v379_v4 = vunpack.c.l.bf16 %v758_v1  ;;  %v380_v7 = vunpack.c.h.bf16 %v758_v1  ;;  %v760_v9 = vld [vmem:[%s1340_s5 + $0x24] sm:$0xff]   ;;  %v316_v10 = vunpack.c.l.bf16 %v728_v8  ;;  %v317_v12 = vunpack.c.h.bf16 %v728_v8  ;;  %v730_v14 = vld [vmem:[%s1333_s22 + $0x34] sm:$0xff]   ;;  %s1384_s8 = scalar_lea.vmem [#allocation10], %s725_s26  ;;  %s1522_s13 = scalar_lea.hbm %s1576_s4, %s797_s10 }
  0x93   : > { %v381_v11 = vunpack.c.l.bf16 %v760_v9  ;;  %v382_v13 = vunpack.c.h.bf16 %v760_v9  ;;  %v762_v15 = vld [vmem:[%s1340_s5 + $0x34] sm:$0xff]   ;;  %v732_v16 = vld [vmem:[%s1333_s22 + $0x44] sm:$0xff]   ;;  %v418_v17 = vmul.f32 %v1356_v2, %v314_v3  ;;  %v419_v18 = vmul.f32 %v1356_v2, %v315_v6  ;;  %s600_s25 = sshll.u32 %s1384_s8, 4  ;;  %s587_s19 = scalar_lea.sflag [#allocation4], %s1329_s0  ;;  %s1524_s25 = int_to_ptr.vmem [resolvable:$true] %s600_s25 }
  0x94   : > { %v318_v19 = vunpack.c.l.bf16 %v730_v14  ;;  %v383_v20 = vunpack.c.l.bf16 %v762_v15  ;;  %v764_v21 = vld [vmem:[%s1340_s5 + $0x44] sm:$0xff]   ;;  %v420_v22 = vmul.f32 %v1356_v2, %v316_v10  ;;  %v421_v23 = vmul.f32 %v1356_v2, %v317_v12  ;;  %v734_v42 = vld [vmem:[%s1333_s22 + $0x54] sm:$0xff]   ;;  %s995_s11 = scalar_lea.vmem %s1524_s25, 4096  ;;  %p1599_p6 = scmp.ne.s32.totalorder %s1585_s27, 0 }
  0x95   : > { %v319_v24 = vunpack.c.h.bf16 %v730_v14  ;;  %v384_v25 = vunpack.c.h.bf16 %v762_v15  ;;  %v457_v26 = vadd.f32 %v1358_v5, %v418_v17  ;;  %v458_v27 = vadd.f32 %v1358_v5, %v419_v18  ;;  %v766_v47 = vld [vmem:[%s1340_s5 + $0x54] sm:$0xff]   ;;  %v736_v52 = vld [vmem:[%s1333_s22 + $0x64] sm:$0xff]   ;;  %p996_p7 = scmp.ne.s32.totalorder %s1524_s25, %s995_s11  ;;  %s1081_s23 = smov [#allocation10]  }
  0x96   : > { %v422_v28 = vmul.f32 %v1356_v2, %v318_v19  ;;  %v320_v29 = vunpack.c.l.bf16 %v732_v16  ;;  %v459_v30 = vadd.f32 %v1358_v5, %v420_v22  ;;  %v460_v31 = vadd.f32 %v1358_v5, %v421_v23  ;;  %v768_v57 = vld [vmem:[%s1340_s5 + $0x64] sm:$0xff]   ;;  %v738_v62 = vld [vmem:[%s1333_s22 + $0x74] sm:$0xff]   ;;  %s999_s14 = sshll.u32 %s1081_s23, 4  ;;  %s1000_s14 = int_to_ptr.vmem [resolvable:$false] %s999_s14 }
  0x97   : > { %v423_v32 = vmul.f32 %v1356_v2, %v319_v24  ;;  %v385_v33 = vunpack.c.l.bf16 %v764_v21  ;;  %v489_v34 = vadd.f32 %v457_v26, %v379_v4  ;;  %v490_v35 = vadd.f32 %v458_v27, %v380_v7  ;;  %v770_v4 = vld [vmem:[%s1340_s5 + $0x74] sm:$0xff]   ;;  %v740_v18 = vld [vmem:[%s1333_s22 + $0x84] sm:$0xff]   ;;  %p997_p12 = pnand %p996_p7, %p1599_p6  ;;  %s1001_s6 = scalar_lea.vmem %s1000_s14, 8192 }
  0x98   : > { %v461_v36 = vadd.f32 %v1358_v5, %v422_v28  ;;  %v424_v37 = vmul.f32 %v1356_v2, %v320_v29  ;;  %v491_v38 = vadd.f32 %v459_v30, %v381_v11  ;;  %v492_v39 = vadd.f32 %v460_v31, %v382_v13  ;;  %v772_v23 = vld [vmem:[%s1340_s5 + $0x84] sm:$0xff]   ;;  %p1002_p11 = scmp.lt.s32.totalorder %s1524_s25, %s1000_s14  ;;  %p1003_p3 = scmp.lt.s32.totalorder %s1001_s6, %s995_s11 }
  0x99   : > { %v462_v40 = vadd.f32 %v1358_v5, %v423_v32  ;;  %v321_v41 = vunpack.c.h.bf16 %v732_v16  ;;  %v521_v43 = vmax.f32 %v489_v34, 0.0  ;;  %v522_v44 = vmax.f32 %v490_v35, 0.0  ;;  %v742_v32 = vld [vmem:[%s1333_s22 + $0x94] sm:$0xff]   ;;  %p998_p13 = pneg %p997_p12 }
  0x9a   : > { %v493_v45 = vadd.f32 %v461_v36, %v383_v20  ;;  %v463_v46 = vadd.f32 %v1358_v5, %v424_v37  ;;  %v523_v48 = vmax.f32 %v491_v38, 0.0  ;;  %v524_v49 = vmax.f32 %v492_v39, 0.0  ;;  %v774_v37 = vld [vmem:[%s1340_s5 + $0x94] sm:$0xff]   ;;  %p1004_p4 = por %p1003_p3, %p1002_p11 }
  0x9b   : > { %v494_v50 = vadd.f32 %v462_v40, %v384_v25  ;;  %v386_v51 = vunpack.c.h.bf16 %v764_v21  ;;  %554 = vst.msk [vmem:[%s1384_s8] sm:$0xff] %vm553_vm0, %v521_v43  ;;  %555 = vst.msk [vmem:[%s1384_s8 + $0x8] sm:$0xff] %vm553_vm0, %v522_v44  ;;  %v425_v55 = vmul.f32 %v1356_v2, %v321_v41  ;;  %v322_v56 = vunpack.c.l.bf16 %v734_v42 }
  0x9c   : > { %v525_v53 = vmax.f32 %v493_v45, 0.0  ;;  %v495_v54 = vadd.f32 %v463_v46, %v385_v33  ;;  %556 = vst.msk [vmem:[%s1384_s8 + $0x10] sm:$0xff] %vm553_vm0, %v523_v48  ;;  %557 = vst.msk [vmem:[%s1384_s8 + $0x18] sm:$0xff] %vm553_vm0, %v524_v49  ;;  %v387_v59 = vunpack.c.l.bf16 %v766_v47  ;;  %v323_v60 = vunpack.c.h.bf16 %v734_v42  ;;  %v744_v46 = vld [vmem:[%s1333_s22 + $0xa4] sm:$0xff]   ;;  %p1005_p5 = pnand %p1004_p4, %p998_p13 }
  0x9d   : > { %v526_v58 = vmax.f32 %v494_v50, 0.0  ;;  %v388_v61 = vunpack.c.h.bf16 %v766_v47  ;;  %v464_v0 = vadd.f32 %v1358_v5, %v425_v55  ;;  %v426_v1 = vmul.f32 %v1356_v2, %v322_v56  ;;  %v776_v47 = vld [vmem:[%s1340_s5 + $0xa4] sm:$0xff]   ;;  %v746_v56 = vld [vmem:[%s1333_s22 + $0xb4] sm:$0xff]  }
  0x9e   : > { %558 = vst.msk [vmem:[%s1384_s8 + $0x20] sm:$0xff] %vm553_vm0, %v525_v53  ;;  %v527_v63 = vmax.f32 %v495_v54, 0.0  ;;  %v324_v3 = vunpack.c.l.bf16 %v736_v52  ;;  %v427_v6 = vmul.f32 %v1356_v2, %v323_v60  ;;  %v389_v7 = vunpack.c.l.bf16 %v768_v57 }
  0x9f   : > { %559 = vst.msk [vmem:[%s1384_s8 + $0x28] sm:$0xff] %vm553_vm0, %v526_v58  ;;  %v325_v8 = vunpack.c.h.bf16 %v736_v52  ;;  %v390_v9 = vunpack.c.h.bf16 %v768_v57  ;;  %v496_v10 = vadd.f32 %v464_v0, %v386_v51  ;;  %v465_v11 = vadd.f32 %v1358_v5, %v426_v1 }
  0xa0   : > { %560 = vst.msk [vmem:[%s1384_s8 + $0x30] sm:$0xff] %vm553_vm0, %v527_v63  ;;  %v428_v12 = vmul.f32 %v1356_v2, %v324_v3  ;;  %v326_v13 = vunpack.c.l.bf16 %v738_v62  ;;  %v466_v14 = vadd.f32 %v1358_v5, %v427_v6  ;;  %v391_v16 = vunpack.c.l.bf16 %v770_v4 }
  0xa1   : > { %v429_v15 = vmul.f32 %v1356_v2, %v325_v8  ;;  %v327_v17 = vunpack.c.h.bf16 %v738_v62  ;;  %v528_v19 = vmax.f32 %v496_v10, 0.0  ;;  %v497_v20 = vadd.f32 %v465_v11, %v387_v59 }
  0xa2   : > { %v467_v21 = vadd.f32 %v1358_v5, %v428_v12  ;;  %v430_v22 = vmul.f32 %v1356_v2, %v326_v13  ;;  %v498_v24 = vadd.f32 %v466_v14, %v388_v61  ;;  %v392_v26 = vunpack.c.h.bf16 %v770_v4  ;;  %v778_v61 = vld [vmem:[%s1340_s5 + $0xb4] sm:$0xff]   ;;  %v748_v12 = vld [vmem:[%s1333_s22 + $0xc4] sm:$0xff]  }
  0xa3   : > { %v468_v25 = vadd.f32 %v1358_v5, %v429_v15  ;;  %v431_v27 = vmul.f32 %v1356_v2, %v327_v17  ;;  %561 = vst.msk [vmem:[%s1384_s8 + $0x38] sm:$0xff] %vm553_vm0, %v528_v19  ;;  %v529_v28 = vmax.f32 %v497_v20, 0.0  ;;  %v328_v31 = vunpack.c.l.bf16 %v740_v18  ;;  %v780_v17 = vld [vmem:[%s1340_s5 + $0xc4] sm:$0xff]  }
  0xa4   : > { %v499_v29 = vadd.f32 %v467_v21, %v389_v7  ;;  %v469_v30 = vadd.f32 %v1358_v5, %v430_v22  ;;  %v530_v33 = vmax.f32 %v498_v24, 0.0  ;;  %v393_v36 = vunpack.c.l.bf16 %v772_v23 }
  0xa5   : > { %v500_v34 = vadd.f32 %v468_v25, %v390_v9  ;;  %v470_v35 = vadd.f32 %v1358_v5, %v431_v27  ;;  %562 = vst.msk [vmem:[%s1384_s8 + $0x40] sm:$0xff] %vm553_vm0, %v529_v28  ;;  %v432_v40 = vmul.f32 %v1356_v2, %v328_v31  ;;  %v329_v41 = vunpack.c.h.bf16 %v740_v18  ;;  %v782_v31 = vld [vmem:[%s1340_s5 + $0xd4] sm:$0xff]  }
  0xa6   : > { %v531_v38 = vmax.f32 %v499_v29, 0.0  ;;  %v501_v39 = vadd.f32 %v469_v30, %v391_v16  ;;  %563 = vst.msk [vmem:[%s1384_s8 + $0x48] sm:$0xff] %vm553_vm0, %v530_v33  ;;  %v394_v44 = vunpack.c.h.bf16 %v772_v23  ;;  %v330_v45 = vunpack.c.l.bf16 %v742_v32 }
  0xa7   : > { %v532_v42 = vmax.f32 %v500_v34, 0.0  ;;  %v502_v43 = vadd.f32 %v470_v35, %v392_v26  ;;  %v471_v49 = vadd.f32 %v1358_v5, %v432_v40  ;;  %v433_v50 = vmul.f32 %v1356_v2, %v329_v41  ;;  %v750_v26 = vld [vmem:[%s1333_s22 + $0xd4] sm:$0xff]   ;;  %v752_v40 = vld [vmem:[%s1333_s22 + $0xe4] sm:$0xff]  }
  0xa8   : > { %564 = vst.msk [vmem:[%s1384_s8 + $0x50] sm:$0xff] %vm553_vm0, %v531_v38  ;;  %v533_v48 = vmax.f32 %v501_v39, 0.0  ;;  %v395_v51 = vunpack.c.l.bf16 %v774_v37  ;;  %v434_v53 = vmul.f32 %v1356_v2, %v330_v45  ;;  %v331_v54 = vunpack.c.h.bf16 %v742_v32  ;;  %v784_v41 = vld [vmem:[%s1340_s5 + $0xe4] sm:$0xff]  }
  0xa9   : > { %565 = vst.msk [vmem:[%s1384_s8 + $0x58] sm:$0xff] %vm553_vm0, %v532_v42  ;;  %v534_v52 = vmax.f32 %v502_v43, 0.0  ;;  %v396_v55 = vunpack.c.h.bf16 %v774_v37  ;;  %v503_v57 = vadd.f32 %v471_v49, %v393_v36  ;;  %v472_v58 = vadd.f32 %v1358_v5, %v433_v50  ;;  %v754_v50 = vld [vmem:[%s1333_s22 + $0xf4] sm:$0xff]  }
  0xaa   : > { %566 = vst.msk [vmem:[%s1384_s8 + $0x60] sm:$0xff] %vm553_vm0, %v533_v48  ;;  %v332_v59 = vunpack.c.l.bf16 %v744_v46  ;;  %v397_v60 = vunpack.c.l.bf16 %v776_v47  ;;  %v473_v62 = vadd.f32 %v1358_v5, %v434_v53  ;;  %v435_v63 = vmul.f32 %v1356_v2, %v331_v54 }
  0xab   : > { %567 = vst.msk [vmem:[%s1384_s8 + $0x68] sm:$0xff] %vm553_vm0, %v534_v52  ;;  %v333_v0 = vunpack.c.h.bf16 %v744_v46  ;;  %v398_v1 = vunpack.c.h.bf16 %v776_v47  ;;  %v535_v3 = vmax.f32 %v503_v57, 0.0  ;;  %v504_v4 = vadd.f32 %v472_v58, %v394_v44 }
  0xac   : > { %v436_v6 = vmul.f32 %v1356_v2, %v332_v59  ;;  %v334_v7 = vunpack.c.l.bf16 %v746_v56  ;;  %v505_v8 = vadd.f32 %v473_v62, %v395_v51  ;;  %v474_v9 = vadd.f32 %v1358_v5, %v435_v63  ;;  %v786_v59 = vld [vmem:[%s1340_s5 + $0xf4] sm:$0xff]  }
  0xad   : > { %v437_v10 = vmul.f32 %v1356_v2, %v333_v0  ;;  %v399_v11 = vunpack.c.l.bf16 %v778_v61  ;;  %568 = vst.msk [vmem:[%s1384_s8 + $0x70] sm:$0xff] %vm553_vm0, %v535_v3  ;;  %v536_v13 = vmax.f32 %v504_v4, 0.0  ;;  %v335_v16 = vunpack.c.h.bf16 %v746_v56 }
  0xae   : > { %v475_v14 = vadd.f32 %v1358_v5, %v436_v6  ;;  %v438_v15 = vmul.f32 %v1356_v2, %v334_v7  ;;  %v537_v18 = vmax.f32 %v505_v8, 0.0  ;;  %v506_v19 = vadd.f32 %v474_v9, %v396_v55  ;;  %v756_v6 = vld [vmem:[%s1333_s22 + $0x104] sm:$0xff]  }
  0xaf   : > { %v476_v20 = vadd.f32 %v1358_v5, %v437_v10  ;;  %v400_v21 = vunpack.c.h.bf16 %v778_v61  ;;  %569 = vst.msk [vmem:[%s1384_s8 + $0x78] sm:$0xff] %vm553_vm0, %v536_v13  ;;  %v439_v24 = vmul.f32 %v1356_v2, %v335_v16  ;;  %v336_v25 = vunpack.c.l.bf16 %v748_v12 }
  0xb0   : > { %v507_v22 = vadd.f32 %v475_v14, %v397_v60  ;;  %v477_v23 = vadd.f32 %v1358_v5, %v438_v15  ;;  %570 = vst.msk [vmem:[%s1384_s8 + $0x80] sm:$0xff] %vm553_vm0, %v537_v18  ;;  %v538_v27 = vmax.f32 %v506_v19, 0.0  ;;  %v401_v29 = vunpack.c.l.bf16 %v780_v17 }
  0xb1   : > { %v508_v28 = vadd.f32 %v476_v20, %v398_v1  ;;  %v337_v30 = vunpack.c.h.bf16 %v748_v12  ;;  %v478_v34 = vadd.f32 %v1358_v5, %v439_v24  ;;  %v440_v35 = vmul.f32 %v1356_v2, %v336_v25 }
  0xb2   : > { %v539_v32 = vmax.f32 %v507_v22, 0.0  ;;  %v509_v33 = vadd.f32 %v477_v23, %v399_v11  ;;  %571 = vst.msk [vmem:[%s1384_s8 + $0x88] sm:$0xff] %vm553_vm0, %v538_v27  ;;  %v402_v37 = vunpack.c.h.bf16 %v780_v17  ;;  %v338_v39 = vunpack.c.l.bf16 %v750_v26  ;;  %v788_v11 = vld [vmem:[%s1340_s5 + $0x104] sm:$0xff]  }
  0xb3   : > { %v540_v36 = vmax.f32 %v508_v28, 0.0  ;;  %v441_v38 = vmul.f32 %v1356_v2, %v337_v30  ;;  %v510_v43 = vadd.f32 %v478_v34, %v400_v21  ;;  %v479_v44 = vadd.f32 %v1358_v5, %v440_v35 }
  0xb4   : > { %572 = vst.msk [vmem:[%s1384_s8 + $0x90] sm:$0xff] %vm553_vm0, %v539_v32  ;;  %v541_v42 = vmax.f32 %v509_v33, 0.0  ;;  %v403_v45 = vunpack.c.l.bf16 %v782_v31  ;;  %v442_v47 = vmul.f32 %v1356_v2, %v338_v39  ;;  %v339_v48 = vunpack.c.h.bf16 %v750_v26 }
  0xb5   : > { %573 = vst.msk [vmem:[%s1384_s8 + $0x98] sm:$0xff] %vm553_vm0, %v540_v36  ;;  %v480_v46 = vadd.f32 %v1358_v5, %v441_v38  ;;  %v404_v49 = vunpack.c.h.bf16 %v782_v31  ;;  %v542_v51 = vmax.f32 %v510_v43, 0.0  ;;  %v511_v52 = vadd.f32 %v479_v44, %v401_v29 }
  0xb6   : > { %574 = vst.msk [vmem:[%s1384_s8 + $0xa0] sm:$0xff] %vm553_vm0, %v541_v42  ;;  %v340_v53 = vunpack.c.l.bf16 %v752_v40  ;;  %v405_v54 = vunpack.c.l.bf16 %v784_v41  ;;  %v481_v56 = vadd.f32 %v1358_v5, %v442_v47  ;;  %v443_v57 = vmul.f32 %v1356_v2, %v339_v48 }
  0xb7   : > { %v512_v55 = vadd.f32 %v480_v46, %v402_v37  ;;  %v341_v58 = vunpack.c.h.bf16 %v752_v40  ;;  %575 = vst.msk [vmem:[%s1384_s8 + $0xa8] sm:$0xff] %vm553_vm0, %v542_v51  ;;  %v543_v60 = vmax.f32 %v511_v52, 0.0  ;;  %v406_v62 = vunpack.c.h.bf16 %v784_v41 }
  0xb8   : > { %v444_v61 = vmul.f32 %v1356_v2, %v340_v53  ;;  %v342_v63 = vunpack.c.l.bf16 %v754_v50  ;;  %v513_v1 = vadd.f32 %v481_v56, %v403_v45  ;;  %v482_v3 = vadd.f32 %v1358_v5, %v443_v57 }
  0xb9   : > { %v544_v0 = vmax.f32 %v512_v55, 0.0  ;;  %v445_v4 = vmul.f32 %v1356_v2, %v341_v58  ;;  %576 = vst.msk [vmem:[%s1384_s8 + $0xb0] sm:$0xff] %vm553_vm0, %v543_v60  ;;  %v407_v8 = vunpack.c.l.bf16 %v786_v59  ;;  %v343_v10 = vunpack.c.h.bf16 %v754_v50 }
  0xba   : > { %v483_v7 = vadd.f32 %v1358_v5, %v444_v61  ;;  %v446_v9 = vmul.f32 %v1356_v2, %v342_v63  ;;  %v545_v12 = vmax.f32 %v513_v1, 0.0  ;;  %v514_v13 = vadd.f32 %v482_v3, %v404_v49 }
  0xbb   : > { %577 = vst.msk [vmem:[%s1384_s8 + $0xb8] sm:$0xff] %vm553_vm0, %v544_v0  ;;  %v484_v14 = vadd.f32 %v1358_v5, %v445_v4  ;;  %v408_v15 = vunpack.c.h.bf16 %v786_v59  ;;  %v447_v18 = vmul.f32 %v1356_v2, %v343_v10  ;;  %v344_v19 = vunpack.c.l.bf16 %v756_v6 }
  0xbc   : > { %v515_v16 = vadd.f32 %v483_v7, %v405_v54  ;;  %v485_v17 = vadd.f32 %v1358_v5, %v446_v9  ;;  %578 = vst.msk [vmem:[%s1384_s8 + $0xc0] sm:$0xff] %vm553_vm0, %v545_v12  ;;  %v546_v20 = vmax.f32 %v514_v13, 0.0  ;;  %v409_v22 = vunpack.c.l.bf16 %v788_v11 }
  0xbd   : > { %v516_v21 = vadd.f32 %v484_v14, %v406_v62  ;;  %v345_v23 = vunpack.c.h.bf16 %v756_v6  ;;  %v486_v26 = vadd.f32 %v1358_v5, %v447_v18  ;;  %v448_v27 = vmul.f32 %v1356_v2, %v344_v19 }
  0xbe   : > { %v547_v24 = vmax.f32 %v515_v16, 0.0  ;;  %v517_v25 = vadd.f32 %v485_v17, %v407_v8  ;;  %579 = vst.msk [vmem:[%s1384_s8 + $0xc8] sm:$0xff] %vm553_vm0, %v546_v20  ;;  %v410_v29 = vunpack.c.h.bf16 %v788_v11 }
  0xbf   : > { %v548_v28 = vmax.f32 %v516_v21, 0.0  ;;  %v449_v30 = vmul.f32 %v1356_v2, %v345_v23  ;;  %v518_v32 = vadd.f32 %v486_v26, %v408_v15  ;;  %v487_v33 = vadd.f32 %v1358_v5, %v448_v27 }
  0xc0   : > { %580 = vst.msk [vmem:[%s1384_s8 + $0xd0] sm:$0xff] %vm553_vm0, %v547_v24  ;;  %v549_v31 = vmax.f32 %v517_v25, 0.0 }
  0xc1   : > { %581 = vst.msk [vmem:[%s1384_s8 + $0xd8] sm:$0xff] %vm553_vm0, %v548_v28  ;;  %v488_v34 = vadd.f32 %v1358_v5, %v449_v30  ;;  %v550_v35 = vmax.f32 %v518_v32, 0.0  ;;  %v519_v2 = vadd.f32 %v487_v33, %v409_v22 }
  0xc2   : > { %582 = vst.msk [vmem:[%s1384_s8 + $0xe0] sm:$0xff] %vm553_vm0, %v549_v31 }
  0xc3   : > { %v520_v36 = vadd.f32 %v488_v34, %v410_v29  ;;  %583 = vst.msk [vmem:[%s1384_s8 + $0xe8] sm:$0xff] %vm553_vm0, %v550_v35  ;;  %v551_v37 = vmax.f32 %v519_v2, 0.0 }
  0xc5   : > { %v552_v5 = vmax.f32 %v520_v36, 0.0  ;;  %584 = vst.msk [vmem:[%s1384_s8 + $0xf0] sm:$0xff] %vm553_vm0, %v551_v37 }
  0xc7   : > { %585 = vst.msk [vmem:[%s1384_s8 + $0xf8] sm:$0xff] %vm553_vm0, %v552_v5 }
  0xc8   : > { %1008 = shalt.err (!%p1005_p5)
}
  0xc9   : > { %s1009_s20 = scalar_lea.hbm %s1522_s13, 4096  ;;  %s1013_s7 = scalar_lea.hbm %s1576_s4, 8192 }
  0xca   : > { %p1010_p1 = scmp.ne.s32.totalorder %s1522_s13, %s1009_s20  ;;  %p1014_p10 = scmp.lt.u32.totalorder %s1522_s13, %s1576_s4 }
  0xcb   : > { %p1015_p2 = scmp.lt.u32.totalorder %s1013_s7, %s1009_s20  ;;  %p1017_p7 = scmp.lt.u32.totalorder %s1009_s20, %s1522_s13 }
  0xcc   : > { %p1011_p8 = pnand %p1010_p1, %p1599_p6 }
  0xcd   : > { %p1016_p0 = por %p1015_p2, %p1014_p10 }
  0xce   : > { %p1012_p9 = pneg %p1011_p8 }
  0xcf   : > { %p1018_p12 = por %p1017_p7, %p1016_p0 }
  0xd1   : > { %p1019_p13 = pnand %p1018_p12, %p1012_p9 }
  0xd3   : > { %1022 = shalt.err (!%p1019_p13)
}
  0xd4   : > { %s1082_s26 = smov 128   ;;  %s1083_s8 = smov 8  }
  0xd5   : > { %815 = dma.vmem_to_hbm [thread:$0]  (%p1599_p6), %s1524_s25, 4096, %s1522_s13, %s587_s19, %s1082_s26, %s1082_s26, %s1083_s8  }
  0xd6 PF: > { %s615_s10 = sand.u32 1, %s1061_s15   ;;  %p1600_p11 = scmp.ne.s32.totalorder %s1586_s28, 0 }
  0xd7   : > { %p1601_p3 = scmp.ge.s32.totalorder %s1073_s18, 2  ;;  %s616_s30 = scalar_lea.sflag [#allocation4], %s615_s10 }
  0xd9   : > { %p832_p4 = pnand %p1601_p3, %p1600_p11 }
  0xdb   : > { %1056 = dma.done.wait (!%p832_p4), %s616_s30, 4096  }
  0xdc   : > { %1058 = vsyncadd (!%p832_p4), %s616_s30, 4294963200  ;;  %p21_p5 = scmp.ge.s32.totalorder %s1134_s21, 4   ;;  %s1602_s15 = smov %s1065_s16 }
  0xdd   : > { %s1603_s16 = smov %s1069_s17  ;;  %s1604_s17 = smov %s1146_s24 }
  0xde   : > { %s1605_s18 = smov %s1134_s21  ;;  %23 = sbr.rel (!%p21_p5) target bundleno = 10 (0xa), region = 104 }
  0xe5   :  { %621 = vsyncpa [#allocation3], 1 }
  0xe6   :  { %623 = vsyncpa [#allocation3 + $0x1], 1 }
  0xe7   :  { %624 = vsyncpa [#allocation6], 1 }
  0xe8   :  { %626 = vsyncpa [#allocation6 + $0x1], 1 }
  0xe9   :  { %627 = vsyncpa [#allocation9], 1 }
  0xea   :  { %628 = vsyncpa [#allocation4], 1 }
  0xeb   :  { %630 = vsyncpa [#allocation4 + $0x1], 1 }

// kernel: basic_block_forward.4
= control target key start
LH: loop header
LB: loop body
LE: loop exit
PB: predicated region body
PF: predicated region fallthrough
CT: control target
= control target key end

     0   :  { %11 = vsyncpa [#allocation3], 0  ;;  %s6420_s0 = inlined_call_operand.hbm [shape: bf16[2,18,32,8], index: 0, kind: input, shape index: {}]   ;;  %s6421_s1 = inlined_call_operand.hbm [shape: bf16[3,3,8,8], index: 1, kind: input, shape index: {}]   ;;  %s6422_s2 = inlined_call_operand.hbm [shape: f32[1,8], index: 2, kind: input, shape index: {}]   ;;  %s6423_s3 = inlined_call_operand.hbm [shape: f32[1,8], index: 3, kind: input, shape index: {}]   ;;  %s6424_s4 = inlined_call_operand.hbm [shape: bf16[2,18,32,8], index: 4, kind: output, shape index: {0}]   ;;  %s6425_s5 = inlined_call_operand.hbm [shape: f32[2,2,8], index: 5, kind: output, shape index: {1}]  }
   0x1   :  { %13 = vsyncpa [#allocation3 + $0x1], 0 }
   0x2   :  { %14 = vsyncpa [#allocation6], 0 }
   0x3   :  { %15 = vsyncpa [#allocation9], 0 }
   0x4   :  { %16 = vsyncpa [#allocation4], 0 }
   0x5   :  { %18 = vsyncpa [#allocation4 + $0x1], 0 }
   0x6   :  { %19 = vsyncpa [#allocation12], 0 }
   0x7   :  { %21 = vsyncpa [#allocation12 + $0x1], 0  ;;  %s5131_s18 = smov 0   ;;  %s5133_s19 = smov 0  }
   0x8   :  { %s5135_s20 = smov 0   ;;  %s5137_s21 = smov 0  }
   0x9 LB: > { %s5152_s22 = sadd.s32 4294967295, %s5086_s21   ;;  %s3788_s23 = sadd.s32 4294967294, %s5086_s21   ;;  %s5086_s21 = sphi %s5137_s21, %s6575_s21   ;;  %s5082_s20 = sphi %s5135_s20, %s6574_s20   ;;  %s5078_s19 = sphi %s5133_s19, %s6573_s19   ;;  %s5074_s18 = sphi %s5131_s18, %s6572_s18  }
   0xa   : > { %p47_p0 = scmp.ne.s32.totalorder %s5078_s19, %s5074_s18  ;;  %p6426_p1 = scmp.eq.s32.totalorder %s5152_s22, 0 }
   0xb   : > { %p140_p3 = scmp.eq.s32.totalorder %s3788_s23, 1  ;;  %p3789_p5 = scmp.ge.s32.totalorder %s5086_s21, 1 }
   0xc   : > { %p5161_p4 = por %p6426_p1, %p47_p0  ;;  %p173_p7 = scmp.lt.s32.totalorder %s5086_s21, 3 }
   0xd   : > { %p5166_p6 = por %p140_p3, %p47_p0  ;;  %s5088_s27 = smov [#allocation5]  }
   0xe   : > { %s6478_s24 = scalar_select %p5161_p4, 1, 0 }
   0xf   : > { %s6479_s25 = scalar_select %p5166_p6, 1, 0 }
  0x10   : > { %p5171_p8 = pnand %p3789_p5, %p173_p7  ;;  %s185_s28 = sshll.u32 %s5088_s27, 4  ;;  %s5175_s28 = int_to_ptr.vmem [resolvable:$true] %s185_s28 }
  0x11   : > { %s5089_s30 = smov [#allocation7]   ;;  %s5090_s7 = smov [#allocation8]  }
  0x12   : > { %s6480_s26 = scalar_select %p5171_p8, 1, 0 }
  0x13   : > { %p4794_p9 = pneg %p5171_p8  ;;  %s199_s6 = sshll.u32 %s5089_s30, 4  ;;  %s5186_s6 = int_to_ptr.vmem [resolvable:$true] %s199_s6 }
  0x14   : > { %s5188_s8 = sshll.u32 %s5090_s7, 4  ;;  %s4866_s11 = scalar_lea.hbm %s6421_s1, 576  ;;  %s211_s8 = int_to_ptr.vmem [resolvable:$true] %s5188_s8 }
  0x15   : > { %p5182_p11 = pnand %p4794_p9, %p6426_p1  ;;  %p4867_p12 = scmp.ne.s32.totalorder %s6421_s1, %s4866_s11 }
  0x16   : > { %p4873_p5 = scmp.lt.u32.totalorder %s4866_s11, %s6421_s1 }
  0x17   : > { %p5198_p13 = pneg %p5182_p11 }
  0x19   : > { %p4869_p0 = pnand %p5198_p13, %p4867_p12 }
  0x1b   : > { %p4870_p3 = pneg %p4869_p0 }
  0x1d   : > { %p4875_p7 = pnand %p4873_p5, %p4870_p3 }
  0x1f   : > { %4878 = shalt.err (!%p4875_p7)
}
  0x20   : > { %s4879_s17 = scalar_lea.vmem %s5175_s28, 576  ;;  %p4887_p2 = scmp.lt.s32.totalorder %s5175_s28, %s5175_s28 }
  0x21   : > { %p4880_p9 = scmp.ne.s32.totalorder %s5175_s28, %s4879_s17  ;;  %p4888_p6 = scmp.lt.s32.totalorder %s4879_s17, %s4879_s17 }
  0x23   : > { %p4882_p10 = pnand %p4880_p9, %p5198_p13  ;;  %p4889_p12 = por %p4888_p6, %p4887_p2 }
  0x25   : > { %p4883_p1 = pneg %p4882_p10 }
  0x27   : > { %p4890_p0 = pnand %p4889_p12, %p4883_p1 }
  0x29   : > { %4893 = shalt.err (!%p4890_p0)
}
  0x2a   : > { %s6429_s23 = smov 64   ;;  %s5092_s27 = smov 4  }
  0x2b   : > { %4797 = dma.hbm_to_vmem [thread:$0]  (!%p5182_p11), %s6421_s1, 576, %s5175_s28, [#allocation6], %s6429_s23, %s6429_s23, %s5092_s27  }
  0x2c   : > { %s4894_s11 = scalar_lea.hbm %s6422_s2, 16 }
  0x2d   : > { %p4895_p1 = scmp.ne.s32.totalorder %s6422_s2, %s4894_s11  ;;  %p4901_p10 = scmp.lt.u32.totalorder %s4894_s11, %s6422_s2 }
  0x2f   : > { %p4897_p2 = pnand %p4895_p1, %p5198_p13 }
  0x31   : > { %p4898_p6 = pneg %p4897_p2 }
  0x33   : > { %p4903_p3 = pnand %p4901_p10, %p4898_p6 }
  0x35   : > { %4906 = shalt.err (!%p4903_p3)
}
  0x36   : > { %s4907_s28 = scalar_lea.vmem %s5186_s6, 16  ;;  %s4914_s17 = scalar_lea.vmem %s5186_s6, 32 }
  0x37   : > { %p4908_p5 = scmp.ne.s32.totalorder %s5186_s6, %s4907_s28  ;;  %p4915_p12 = scmp.lt.s32.totalorder %s5186_s6, %s5186_s6 }
  0x38   : > { %p4916_p0 = scmp.lt.s32.totalorder %s4914_s17, %s4907_s28 }
  0x39   : > { %p4910_p7 = pnand %p4908_p5, %p5198_p13 }
  0x3a   : > { %p4917_p1 = por %p4916_p0, %p4915_p12 }
  0x3b   : > { %p4911_p9 = pneg %p4910_p7 }
  0x3d   : > { %p4918_p2 = pnand %p4917_p1, %p4911_p9 }
  0x3f   : > { %4921 = shalt.err (!%p4918_p2)
}
  0x40   : > { %4800 = dma.hbm_to_vmem [thread:$0]  (!%p5182_p11), %s6422_s2, 16, %s5186_s6, [#allocation6]  }
  0x41   : > { %s4922_s11 = scalar_lea.hbm %s6423_s3, 16 }
  0x42   : > { %p4923_p6 = scmp.ne.s32.totalorder %s6423_s3, %s4922_s11  ;;  %p4929_p5 = scmp.lt.u32.totalorder %s4922_s11, %s6423_s3 }
  0x44   : > { %p4925_p10 = pnand %p4923_p6, %p5198_p13 }
  0x46   : > { %p4926_p3 = pneg %p4925_p10 }
  0x48   : > { %p4931_p7 = pnand %p4929_p5, %p4926_p3 }
  0x4a   : > { %4934 = shalt.err (!%p4931_p7)
}
  0x4b   : > { %s4935_s28 = scalar_lea.vmem %s211_s8, 16  ;;  %s4942_s6 = scalar_lea.vmem %s211_s8, 32 }
  0x4c   : > { %p4936_p9 = scmp.ne.s32.totalorder %s211_s8, %s4935_s28  ;;  %p4943_p1 = scmp.lt.s32.totalorder %s211_s8, %s211_s8 }
  0x4d   : > { %p4944_p2 = scmp.lt.s32.totalorder %s4942_s6, %s4935_s28 }
  0x4e   : > { %p4938_p12 = pnand %p4936_p9, %p5198_p13 }
  0x4f   : > { %p4945_p4 = por %p4944_p2, %p4943_p1 }
  0x50   : > { %p4939_p0 = pneg %p4938_p12 }
  0x52   : > { %p4946_p8 = pnand %p4945_p4, %p4939_p0 }
  0x54   : > { %4949 = shalt.err (!%p4946_p8)
}
  0x55   : > { %4803 = dma.hbm_to_vmem [thread:$0]  (!%p5182_p11), %s6423_s3, 16, %s211_s8, [#allocation9]  }
  0x56   : > { %s5266_s14 = sadd.s32 1, %s5086_s21   ;;  %s34_s29 = sadd.s32 1, %s5082_s20 }
  0x57   : > { %s31_s7 = ssub.s32 %s5086_s21, %s5266_s14  ;;  %p41_p8 = scmp.ne.s32.totalorder %s5082_s20, %s5078_s19 }
  0x58   : > { %p32_p4 = scmp.eq.s32.totalorder %s31_s7, 0  ;;  %p42_p13 = scmp.eq.s32.totalorder %s5086_s21, 0 }
  0x59   : > { %p4818_p6 = scmp.lt.s32.totalorder %s5086_s21, 2  ;;  %p6483_p3 = scmp.eq.s32.totalorder %s5152_s22, 1 }
  0x5a   : > { %s5276_s9 = scalar_select %p32_p4, %s5082_s20, %s34_s29  }
  0x5b   : > { %p43_p10 = por %p42_p13, %p41_p8  ;;  %p5280_p5 = por %p6483_p3, %p41_p8 }
  0x5c   : > { %s221_s11 = sand.u32 1, %s5082_s20   ;;  %s4773_s12 = smul.u32 4608, %s5086_s21 }
  0x5d   : > { %s4772_s8 = smul.u32 288, %s221_s11  ;;  %p5286_p11 = pnand %p4818_p6, %p43_p10 }
  0x5e   : > { %s5293_s28 = scalar_lea.hbm %s6420_s0, %s4773_s12  ;;  %s5297_s30 = scalar_lea.sflag [#allocation3], %s221_s11 }
  0x5f   : > { %s225_s6 = scalar_lea.vmem [#allocation2], %s4772_s8  ;;  %s4950_s7 = scalar_lea.hbm %s5293_s28, 4608 }
  0x60   : > { %s232_s17 = sshll.u32 %s225_s6, 4  ;;  %p4951_p7 = scmp.ne.s32.totalorder %s5293_s28, %s4950_s7  ;;  %s5295_s17 = int_to_ptr.vmem [resolvable:$true] %s232_s17 }
  0x61   : > { %p4952_p9 = pneg %p5286_p11  ;;  %s4955_s15 = scalar_lea.hbm %s6420_s0, 9216 }
  0x62   : > { %p4956_p1 = scmp.lt.u32.totalorder %s5293_s28, %s6420_s0  ;;  %p4957_p2 = scmp.lt.u32.totalorder %s4955_s15, %s4950_s7 }
  0x63   : > { %p4953_p12 = pnand %p4952_p9, %p4951_p7  ;;  %p4959_p8 = scmp.lt.u32.totalorder %s4950_s7, %s5293_s28 }
  0x64   : > { %p4958_p4 = por %p4957_p2, %p4956_p1 }
  0x65   : > { %p4954_p0 = pneg %p4953_p12 }
  0x66   : > { %p4960_p13 = por %p4959_p8, %p4958_p4 }
  0x68   : > { %p4961_p6 = pnand %p4960_p13, %p4954_p0 }
  0x6a   : > { %4964 = shalt.err (!%p4961_p6)
}
  0x6b   : > { %s4965_s11 = scalar_lea.vmem %s5295_s17, 4608  ;;  %s5093_s8 = smov [#allocation2]  }
  0x6c   : > { %p4966_p10 = scmp.ne.s32.totalorder %s5295_s17, %s4965_s11  ;;  %s4970_s6 = sshll.u32 %s5093_s8, 4  ;;  %s4971_s6 = int_to_ptr.vmem [resolvable:$false] %s4970_s6 }
  0x6d   : > { %s4972_s23 = scalar_lea.vmem %s4971_s6, 9216  ;;  %p4973_p12 = scmp.lt.s32.totalorder %s5295_s17, %s4971_s6 }
  0x6e   : > { %p4968_p3 = pnand %p4966_p10, %p4952_p9  ;;  %p4974_p1 = scmp.lt.s32.totalorder %s4972_s23, %s4965_s11 }
  0x70   : > { %p4969_p7 = pneg %p4968_p3  ;;  %p4975_p2 = por %p4974_p1, %p4973_p12 }
  0x72   : > { %p4976_p4 = pnand %p4975_p2, %p4969_p7 }
  0x74   : > { %4979 = shalt.err (!%p4976_p4)
}
  0x75   : > { %s6486_s7 = smov 64   ;;  %p6487_p9 = scmp.ne.s32.totalorder %s6480_s26, 0 }
  0x76   : > { %4807 = dma.hbm_to_vmem [thread:$0]  (!%p5286_p11), %s5293_s28, 4608, %s5295_s17, %s5297_s30, %s6486_s7, %s6486_s7, %s5092_s27  }
  0x77   : > { %244 = sbr.rel (%p6487_p9) target bundleno = 698 (0x2ba), region = 36 }
  0x7e   : > { %s5331_s29 = sand.u32 1, %s5078_s19   ;;  %p6488_p0 = scmp.ne.s32.totalorder %s6478_s24, 0 }
  0x7f   : > { %s4774_s12 = smul.u32 288, %s5331_s29  ;;  %s247_s15 = scalar_lea.sflag [#allocation3], %s5331_s29 }
  0x81   : > { %s5337_s13 = scalar_lea.vmem [#allocation2], %s4774_s12 }
  0x82   : > { %5053 = dma.done.wait (%p6488_p0), %s247_s15, 4608  }
  0x83   : > { %5055 = vsyncadd (%p6488_p0), %s247_s15, 4294962688  ;;  %p6489_p11 = scmp.eq.s32.totalorder %s5152_s22, 0 }
  0x85   : > { %5057 = dma.done.wait (%p6489_p11), [#allocation6], 592   ;;  %p6490_p8 = pmov %p6489_p11 }
  0x87   : > { %5059 = vsyncadd (%p6490_p8), [#allocation6], 4294966704  ;;  %p6491_p13 = pmov %p6490_p8 }
  0x88   : > { %p6492_p6 = pmov %p6490_p8 }
  0x89   : > { %5061 = dma.done.wait (%p6491_p13), [#allocation9], 16  }
  0x8a   : > { %5063 = vsyncadd (%p6492_p6), [#allocation9], 4294967280  ;;  %v6430_v0 = vmov 0.0|0.0   ;;  %vm1183_vm0 = vcmask 1043456   ;;  %v1133_v1 = vld [vmem:[#allocation5 + $0x4] sm:$0xf] }
  0x8b   : > { %4200 = vmatprep.mubr.bf16.mxu1 %v6430_v0  ;;  %v2202_v2 = vld [vmem:[#allocation5 + $0x10] sm:$0xf]  ;;  %v300_v3 = vld [vmem:[%s5337_s13 + $0x14] sm:$0xff]   ;;  %4762 = vmatprep.subr.msk.bf16.mxu1 %vm1183_vm0, %v1133_v1  ;;  %v1185_v4 = vsel %vm1183_vm0, %v1133_v1, 0  ;;  %v5359_v8 = vld [vmem:[#allocation7] ss:$0 sm:$0xff] }
  0x8c   : > { %4766 = vmatprep.subr.msk.bf16.mxu0 %vm1183_vm0, %v2202_v2  ;;  %v5357_v5 = vsel %vm1183_vm0, %v2202_v2, 0  ;;  %v372_v6 = vunpack.c.l.bf16 %v300_v3  ;;  %v373_v7 = vunpack.c.h.bf16 %v300_v3  ;;  %v5361_v9 = vld [vmem:[#allocation8] ss:$0 sm:$0xff]  ;;  %4199 = vmatpush3.bf16.msra.mxu1 %v1185_v4  ;;  %v1131_v10 = vld [vmem:[#allocation5] sm:$0xf]  ;;  %v308_v16 = vld [vmem:[%s5337_s13 + $0x34] sm:$0xff]  }
  0x8d   : > { %6493 = vst [vmem:[#allocation18_spill] sm:$0xff] %v5357_v5  ;;  %4335 = vmatpush3.bf16.msra.mxu0 %v5357_v5  ;;  %v2414_v11 = vld [vmem:[#allocation5 + $0x14] sm:$0xf]  ;;  %v304_v12 = vld [vmem:[%s5337_s13 + $0x24] sm:$0xff]   ;;  %4763 = vmatprep.subr.msk.bf16.mxu1 %vm1183_vm0, %v1131_v10  ;;  %vm1134_vm1 = vcmask 64512   ;;  %v380_v19 = vunpack.c.l.bf16 %v308_v16  ;;  %v381_v20 = vunpack.c.h.bf16 %v308_v16  ;;  %v1397_v38 = vsel %vm1183_vm0, %v1131_v10, 0 }
  0x8e   : > { %v451_v13 = vmul.f32 %v5359_v8, %v372_v6  ;;  %v452_v14 = vmul.f32 %v5359_v8, %v373_v7  ;;  %4768 = vmatprep.subr.msk.bf16.mxu0 %vm1183_vm0, %v2414_v11  ;;  %v376_v15 = vunpack.c.l.bf16 %v304_v12  ;;  %v312_v17 = vld [vmem:[%s5337_s13 + $0x44] sm:$0xff]   ;;  %v377_v18 = vunpack.c.h.bf16 %v304_v12  ;;  %v316_v45 = vld [vmem:[%s5337_s13 + $0x54] sm:$0xff]   ;;  %s6199_s24 = scalar_lea.vmem [#allocation10], %s4774_s12  ;;  %s4775_s26 = smul.u32 4608, %s5152_s22 }
  0x8f   : > { %v384_v24 = vunpack.c.l.bf16 %v312_v17  ;;  %v459_v26 = vmul.f32 %v5359_v8, %v380_v19  ;;  %v460_v27 = vmul.f32 %v5359_v8, %v381_v20  ;;  %v385_v28 = vunpack.c.h.bf16 %v312_v17  ;;  %v5407_v44 = vld [vmem:[#allocation5 + $0x8] sm:$0xf]  ;;  %v324_v51 = vld [vmem:[%s5337_s13 + $0x74] sm:$0xff]   ;;  %s3641_s27 = sshll.u32 %s6199_s24, 4  ;;  %s3623_s16 = scalar_lea.sflag [#allocation4], %s5331_s29  ;;  %s6338_s27 = int_to_ptr.vmem [resolvable:$true] %s3641_s27 }
  0x90   : > { %v5372_v21 = vadd.f32 %v5361_v9, %v451_v13  ;;  %v531_v22 = vadd.f32 %v5361_v9, %v452_v14  ;;  %v455_v23 = vmul.f32 %v5359_v8, %v376_v15  ;;  %v456_v25 = vmul.f32 %v5359_v8, %v377_v18  ;;  %v320_v46 = vld [vmem:[%s5337_s13 + $0x64] sm:$0xff]   ;;  %v5430_v54 = vld [vmem:[#allocation5 + $0x18] sm:$0xf]  ;;  %s6332_s30 = scalar_lea.hbm %s6424_s4, %s4775_s26  ;;  %s4980_s11 = scalar_lea.vmem %s6338_s27, 4608 }
  0x91   : > { %v463_v32 = vmul.f32 %v5359_v8, %v384_v24  ;;  %v5388_v34 = vadd.f32 %v5361_v9, %v459_v26  ;;  %v539_v35 = vadd.f32 %v5361_v9, %v460_v27  ;;  %v464_v36 = vmul.f32 %v5359_v8, %v385_v28  ;;  %v328_v52 = vld [vmem:[%s5337_s13 + $0x84] sm:$0xff]   ;;  %v332_v18 = vld [vmem:[%s5337_s13 + $0x94] sm:$0xff]   ;;  %p4981_p10 = scmp.ne.s32.totalorder %s6338_s27, %s4980_s11  ;;  %s5097_s8 = smov [#allocation10]  }
  0x92   : > { %v602_v29 = vmax.f32 %v5372_v21, 0.0  ;;  %v5380_v30 = vmax.f32 %v531_v22, 0.0  ;;  %v5383_v31 = vadd.f32 %v5361_v9, %v455_v23  ;;  %v535_v33 = vadd.f32 %v5361_v9, %v456_v25  ;;  %v336_v28 = vld [vmem:[%s5337_s13 + $0xa4] sm:$0xff]   ;;  %s4984_s6 = sshll.u32 %s5097_s8, 4  ;;  %s4985_s6 = int_to_ptr.vmem [resolvable:$false] %s4984_s6 }
  0x93   : > { %v6437_v41 = vmax.f32 %v5388_v34, 0.0  ;;  %v5402_v42 = vmax.f32 %v539_v35, 0.0  ;;  %v5405_v43 = vadd.f32 %v5361_v9, %v463_v32  ;;  %v2419_v48 = vsel %vm1183_vm0, %v2414_v11, 0  ;;  %p4982_p3 = pnand %p4981_p10, %p5280_p5  ;;  %s4986_s23 = scalar_lea.vmem %s4985_s6, 9216 }
  0x94   : > { %v5395_v37 = vpack.c.bf16 %v5380_v30, %v602_v29  ;;  %v6438_v39 = vmax.f32 %v5383_v31, 0.0  ;;  %v5399_v40 = vmax.f32 %v535_v33, 0.0  ;;  %v543_v50 = vadd.f32 %v5361_v9, %v464_v36  ;;  %p4987_p12 = scmp.lt.s32.totalorder %s6338_s27, %s4985_s6  ;;  %p4988_p1 = scmp.lt.s32.totalorder %s4986_s23, %s4980_s11 }
  0x95   : > { %v5424_v49 = vpack.c.bf16 %v5402_v42, %v6437_v41  ;;  %v6436_v53 = vmax.f32 %v5405_v43, 0.0  ;;  %v388_v56 = vunpack.c.l.bf16 %v316_v45  ;;  %v389_v57 = vunpack.c.h.bf16 %v316_v45  ;;  %p4983_p7 = pneg %p4982_p3 }
  0x96   : > { %4201 = vmatmul.mubr.msk.bf16.vlgmr.msra.gmra.mrb[0].mxu1 %vm1134_vm1, %v5395_v37  ;;  %4336 = vmatprep.mubr.msk.bf16.mxu0 %vm1134_vm1, %v5395_v37  ;;  %v5418_v47 = vpack.c.bf16 %v5399_v40, %v6438_v39  ;;  %v5438_v55 = vmax.f32 %v543_v50, 0.0  ;;  %v392_v58 = vunpack.c.l.bf16 %v320_v46  ;;  %v393_v59 = vunpack.c.h.bf16 %v320_v46  ;;  %p4989_p2 = por %p4988_p1, %p4987_p12 }
  0x97   : > { %4233 = vmatpush3.bf16.msra.mxu1 %v1397_v38  ;;  %6495 = vst [vmem:[#allocation20_spill] sm:$0xff] %v5424_v49  ;;  %v396_v60 = vunpack.c.l.bf16 %v324_v51  ;;  %v397_v61 = vunpack.c.h.bf16 %v324_v51  ;;  %v400_v62 = vunpack.c.l.bf16 %v328_v52  ;;  %v467_v63 = vmul.f32 %v5359_v8, %v388_v56 }
  0x98   : > { %6494 = vst [vmem:[#allocation19_spill] sm:$0xff] %v5418_v47  ;;  %4764 = vmatprep.subr.msk.bf16.mxu1 %vm1183_vm0, %v5407_v44  ;;  %4337 = vmatmul.mubr.msk.bf16.vlgmr.msra.gmra.mrb[0].mxu0 %vm1134_vm1, %v5418_v47  ;;  %v468_v1 = vmul.f32 %v5359_v8, %v389_v57  ;;  %v471_v2 = vmul.f32 %v5359_v8, %v392_v58  ;;  %v401_v7 = vunpack.c.h.bf16 %v328_v52  ;;  %v404_v26 = vunpack.c.l.bf16 %v332_v18  ;;  %v340_v58 = vld [vmem:[%s5337_s13 + $0xb4] sm:$0xff]   ;;  %p4990_p4 = pnand %p4989_p2, %p4983_p7 }
  0x99   : > { %4204 = vmatprep.mubr.msk.bf16.mxu1 %vm1134_vm1, %v5418_v47  ;;  %4369 = vmatpush3.bf16.msra.mxu0 %v2419_v48  ;;  %v472_v3 = vmul.f32 %v5359_v8, %v393_v59  ;;  %v475_v4 = vmul.f32 %v5359_v8, %v396_v60  ;;  %v476_v6 = vmul.f32 %v5359_v8, %v397_v61  ;;  %v405_v27 = vunpack.c.h.bf16 %v332_v18 }
  0x9a   : > { %4340 = vmatprep.mubr.msk.bf16.mxu0 %vm1134_vm1, %v5424_v49  ;;  %4769 = vmatprep.subr.msk.bf16.mxu0 %vm1183_vm0, %v5430_v54  ;;  %v5453_v10 = vpack.c.bf16 %v5438_v55, %v6436_v53  ;;  %v5456_v11 = vadd.f32 %v5361_v9, %v467_v63  ;;  %v547_v12 = vadd.f32 %v5361_v9, %v468_v1  ;;  %v1574_v38 = vshll.u32 %v5395_v37, 16  ;;  %v5637_v53 = vld [vmem:[#allocation5 + $0x1c] sm:$0xf] }
  0x9b   : > { %v5460_v13 = vadd.f32 %v5361_v9, %v471_v2  ;;  %v551_v14 = vadd.f32 %v5361_v9, %v472_v3  ;;  %v5466_v15 = vadd.f32 %v5361_v9, %v475_v4  ;;  %v555_v16 = vadd.f32 %v5361_v9, %v476_v6  ;;  %6507 = vst [vmem:[#allocation32_spill] sm:$0xff] %v5637_v53 }
  0x9c   : > { %6496 = vst [vmem:[#allocation21_spill] sm:$0xff] %v5453_v10  ;;  %v479_v17 = vmul.f32 %v5359_v8, %v400_v62  ;;  %v6435_v19 = vmax.f32 %v5456_v11, 0.0  ;;  %v5474_v20 = vmax.f32 %v547_v12, 0.0  ;;  %v480_v22 = vmul.f32 %v5359_v8, %v401_v7 }
  0x9d   : > { %v6434_v23 = vmax.f32 %v5460_v13, 0.0  ;;  %v5485_v25 = vmax.f32 %v551_v14, 0.0  ;;  %v6433_v32 = vmax.f32 %v5466_v15, 0.0  ;;  %v5489_v33 = vmax.f32 %v555_v16, 0.0 }
  0x9e   : > { %4205 = vmatmul.mubr.msk.bf16.gmra.mrb[4].mxu1 %vm1134_vm1, %v5424_v49  ;;  %v5483_v24 = vpack.c.bf16 %v5474_v20, %v6435_v19  ;;  %v5492_v35 = vadd.f32 %v5361_v9, %v479_v17  ;;  %v559_v36 = vadd.f32 %v5361_v9, %v480_v22  ;;  %v483_v45 = vmul.f32 %v5359_v8, %v404_v26 }
  0x9f   : > { %4208 = vmatprep.mubr.msk.bf16.mxu1 %vm1134_vm1, %v5453_v10  ;;  %v408_v46 = vunpack.c.l.bf16 %v336_v28  ;;  %v5095_v48 = vmov 0   ;;  %v5502_v51 = vpack.c.bf16 %v5485_v25, %v6434_v23  ;;  %v484_v52 = vmul.f32 %v5359_v8, %v405_v27 }
  0xa0   : > { %4341 = vmatmul.mubr.msk.bf16.gmra.mrb[4].mxu0 %vm1134_vm1, %v5453_v10  ;;  %6497 = vst [vmem:[#allocation22_spill] sm:$0xff] %v5483_v24  ;;  %v862_v50 = vrot.slane %v5095_v48, 3  ;;  %v1585_v56 = vshll.u32 %v5418_v47, 16  ;;  %v409_v57 = vunpack.c.h.bf16 %v336_v28  ;;  %v5512_v59 = vpack.c.bf16 %v5489_v33, %v6433_v32 }
  0xa1   : > { %4344 = vmatprep.mubr.msk.bf16.mxu0 %vm1134_vm1, %v5483_v24  ;;  %6498 = vst [vmem:[#allocation23_spill] sm:$0xff] %v5502_v51  ;;  %v6431_v60 = vmax.f32 %v5492_v35, 0.0  ;;  %v487_v61 = vmul.f32 %v5359_v8, %v408_v46  ;;  %v865_v62 = vrot.slane %v5095_v48, 4  ;;  %v5518_v63 = vmax.f32 %v559_v36, 0.0 }
  0xa2   : > { %6499 = vst [vmem:[#allocation24_spill] sm:$0xff] %v5512_v59  ;;  %v1572_v1 = vshrl.u32 %v5395_v37, 16  ;;  %v1576_v2 = vrot.slane %v1574_v38, 1  ;;  %v488_v3 = vmul.f32 %v5359_v8, %v409_v57  ;;  %v5523_v4 = vadd.f32 %v5361_v9, %v483_v45  ;;  %v344_v37 = vld [vmem:[%s5337_s13 + $0xc4] sm:$0xff]  }
  0xa3   : > { %vm1560_vm2 = vsmask.f32 7424  ;;  %v5525_v6 = vrot.slane %v5095_v48, 1  ;;  %v412_v7 = vunpack.c.l.bf16 %v340_v58  ;;  %v563_v12 = vadd.f32 %v5361_v9, %v484_v52 }
  0xa4   : > { %v1583_v14 = vshrl.u32 %v5418_v47, 16  ;;  %v1587_v16 = vrot.slane %v1585_v56, 1  ;;  %v413_v17 = vunpack.c.h.bf16 %v340_v58  ;;  %v6440_v18 = vmov 0.0   ;;  %v348_v58 = vld [vmem:[%s5337_s13 + $0xd4] sm:$0xff]  }
  0xa5   : > { %v5535_v22 = vpack.c.bf16 %v602_v29, %v6440_v18  ;;  %v5540_v26 = vadd.f32 %v5361_v9, %v487_v61  ;;  %v567_v27 = vadd.f32 %v5361_v9, %v488_v3  ;;  %v5543_v28 = vor.u32 %v865_v62, %v862_v50 }
  0xa6   : > { %4209 = vmatmul.mubr.msk.bf16.gmra.mrb[8].mxu1 %vm1134_vm1, %v5483_v24  ;;  %v5547_v36 = vpack.c.bf16 %v5380_v30, %v5380_v30  ;;  %v5552_v21 = vpack.c.bf16 %v5518_v63, %v6431_v60  ;;  %v1577_v29 = vor.u32 %v1576_v2, %v1572_v1  ;;  %v1596_v38 = vshll.u32 %v5424_v49, 16 }
  0xa7   : > { %4212 = vmatprep.mubr.msk.bf16.mxu1 %vm1134_vm1, %v5502_v51  ;;  %6500 = vst [vmem:[#allocation25_spill] sm:$0xff] %v5543_v28  ;;  %v6432_v45 = vmax.f32 %v5523_v4, 0.0  ;;  %v491_v46 = vmul.f32 %v5359_v8, %v412_v7  ;;  %v416_v48 = vunpack.c.l.bf16 %v344_v37  ;;  %v417_v52 = vunpack.c.h.bf16 %v344_v37 }
  0xa8   : > { %4345 = vmatmul.mubr.msk.bf16.gmra.mrb[8].mxu0 %vm1134_vm1, %v5502_v51  ;;  %6501 = vst [vmem:[#allocation26_spill] sm:$0xff] %v5552_v21  ;;  %v5557_v50 = vmax.f32 %v563_v12, 0.0  ;;  %v1588_v56 = vor.u32 %v1587_v16, %v1583_v14  ;;  %v492_v30 = vmul.f32 %v5359_v8, %v413_v17  ;;  %v1594_v57 = vshrl.u32 %v5424_v49, 16 }
  0xa9   : > { %4348 = vmatprep.mubr.msk.bf16.mxu0 %vm1134_vm1, %v5512_v59  ;;  %v6439_v61 = vmax.f32 %v5540_v26, 0.0  ;;  %v5565_v62 = vmax.f32 %v567_v27, 0.0  ;;  %v1598_v1 = vrot.slane %v1596_v38, 1  ;;  %v495_v2 = vmul.f32 %v5359_v8, %v416_v48  ;;  %v352_v38 = vld [vmem:[%s5337_s13 + $0xe4] sm:$0xff]  }
  0xaa   : > { %v877_v3 = vshrl.u32 %v5535_v22, 16  ;;  %v5574_v12 = vsel %vm1560_vm2, %v1577_v29, %v5525_v6  ;;  %v496_v14 = vmul.f32 %v5359_v8, %v417_v52  ;;  %v5579_v17 = vadd.f32 %v5361_v9, %v491_v46 }
  0xab   : > { %6502 = vst [vmem:[#allocation27_spill] sm:$0xff] %v5574_v12  ;;  %v1607_v37 = vshll.u32 %v5453_v10, 16  ;;  %v420_v27 = vunpack.c.l.bf16 %v348_v58  ;;  %v5588_v29 = vpack.c.bf16 %v5557_v50, %v6432_v45  ;;  %v2637_v48 = vsel %vm1183_vm0, %v5430_v54, 0  ;;  %v356_v54 = vld [vmem:[%s5337_s13 + $0xf4] sm:$0xff]  }
  0xac   : > { %v571_v52 = vadd.f32 %v5361_v9, %v492_v30  ;;  %v421_v0 = vunpack.c.h.bf16 %v348_v58  ;;  %v5597_v46 = vsel %vm1560_vm2, %v1588_v56, %v5525_v6  ;;  %v5602_v60 = vpack.c.bf16 %v5565_v62, %v6439_v61 }
  0xad   : > { %6503 = vst [vmem:[#allocation28_spill] sm:$0xff] %v5588_v29  ;;  %6504 = vst [vmem:[#allocation29_spill] sm:$0xff] %v5597_v46  ;;  %v1599_v45 = vor.u32 %v1598_v1, %v1594_v57  ;;  %v5605_v32 = vadd.f32 %v5361_v9, %v495_v2  ;;  %v575_v30 = vadd.f32 %v5361_v9, %v496_v14  ;;  %v1618_v58 = vshll.u32 %v5483_v24, 16 }
  0xae   : > { %4213 = vmatmul.mubr.msk.bf16.gmra.mrb[12].mxu1 %vm1134_vm1, %v5512_v59  ;;  %6505 = vst [vmem:[#allocation30_spill] sm:$0xff] %v5602_v60  ;;  %v424_v23 = vunpack.c.l.bf16 %v352_v38  ;;  %v425_v19 = vunpack.c.h.bf16 %v352_v38  ;;  %v1605_v56 = vshrl.u32 %v5453_v10, 16  ;;  %v1609_v41 = vrot.slane %v1607_v37, 1 }
  0xaf   : > { %4216 = vmatprep.mubr.msk.bf16.mxu1 %vm1134_vm1, %v5552_v21  ;;  %v499_v39 = vmul.f32 %v5359_v8, %v420_v27  ;;  %v5613_v61 = vmax.f32 %v571_v52, 0.0  ;;  %v500_v57 = vmul.f32 %v5359_v8, %v421_v0  ;;  %v428_v1 = vunpack.c.l.bf16 %v356_v54 }
  0xb0   : > { %4349 = vmatmul.mubr.msk.bf16.gmra.mrb[12].mxu0 %vm1134_vm1, %v5552_v21  ;;  %v429_v2 = vunpack.c.h.bf16 %v356_v54  ;;  %v5620_v14 = vsel %vm1560_vm2, %v1599_v45, %v5525_v6  ;;  %v1616_v18 = vshrl.u32 %v5483_v24, 16  ;;  %v1629_v37 = vshll.u32 %v5502_v51, 16 }
  0xb1   : > { %4370 = vmatprep.mubr.msk.bf16.mxu0 %vm1134_vm1, %v5574_v12  ;;  %6506 = vst [vmem:[#allocation31_spill] sm:$0xff] %v5620_v14  ;;  %v5627_v27 = vmax.f32 %v575_v30, 0.0  ;;  %v1620_v0 = vrot.slane %v1618_v58, 1  ;;  %v503_v52 = vmul.f32 %v5359_v8, %v424_v23  ;;  %v504_v54 = vmul.f32 %v5359_v8, %v425_v19 }
  0xb2   : > { %v5631_v16 = vrot.slane %v877_v3, 3  ;;  %v888_v45 = vshll.u32 %v5547_v36, 16  ;;  %v1610_v7 = vor.u32 %v1609_v41, %v1605_v56  ;;  %v5635_v38 = vadd.f32 %v5361_v9, %v499_v39 }
  0xb3   : > { %v6508_v30 = vmax.f32 %v5579_v17, 0.0  ;;  %v579_v19 = vadd.f32 %v5361_v9, %v500_v57  ;;  %v507_v23 = vmul.f32 %v5359_v8, %v428_v1  ;;  %v508_v3 = vmul.f32 %v5359_v8, %v429_v2 }
  0xb4   : > { %v1627_v39 = vshrl.u32 %v5502_v51, 16  ;;  %v1631_v41 = vrot.slane %v1629_v37, 1  ;;  %v1640_v56 = vshll.u32 %v5512_v59, 16  ;;  %v1651_v5 = vshll.u32 %v5552_v21, 16 }
  0xb5   : > { %v5644_v58 = vpack.c.bf16 %v5613_v61, %v6508_v30  ;;  %v6510_v30 = vmax.f32 %v5605_v32, 0.0  ;;  %v1621_v57 = vor.u32 %v1620_v0, %v1616_v18  ;;  %v5660_v1 = vadd.f32 %v5361_v9, %v503_v52 }
  0xb6   : > { %4217 = vmatmul.mubr.msk.bf16.gmra.mrb[16].mxu1 %vm1134_vm1, %v5588_v29  ;;  %v6513_v2 = vshll.u32 %v5535_v22, 16  ;;  %v5671_v51 = vsel %vm1560_vm2, %v1610_v7, %v5525_v6  ;;  %v1662_v18 = vshll.u32 %v5588_v29, 16  ;;  %v5675_v0 = vmax.f32 %v579_v19, 0.0 }
  0xb7   : > { %4220 = vmatprep.mubr.msk.bf16.mxu1 %vm1134_vm1, %v5602_v60  ;;  %6509 = vst [vmem:[#allocation33_spill] sm:$0xff] %v5644_v58  ;;  %v5657_v24 = vpack.c.bf16 %v5627_v27, %v6510_v30  ;;  %6512 = vst [vmem:[#allocation35_spill] sm:$0xff] %v5660_v1  ;;  %v5678_v52 = vadd.f32 %v5361_v9, %v507_v23  ;;  %v1638_v10 = vshrl.u32 %v5512_v59, 16  ;;  %v1649_v7 = vshrl.u32 %v5552_v21, 16 }
  0xb8   : > { %4371 = vmatmul.mubr.msk.bf16.vlgmr.msra.gmra.mrb[0].mxu0 %vm1134_vm1, %v5597_v46  ;;  %v5667_v37 = vrot.slane %v6513_v2, 4  ;;  %6514 = vst [vmem:[#allocation36_spill] sm:$0xff] %v5671_v51  ;;  %6515 = vst [vmem:[#allocation37_spill] sm:$0xff] %v5675_v0  ;;  %v1632_v22 = vor.u32 %v1631_v41, %v1627_v39  ;;  %v1642_v2 = vrot.slane %v1640_v56, 1  ;;  %v1653_v49 = vrot.slane %v1651_v5, 1 }
  0xb9   : > { %4403 = vmatpush3.bf16.msra.mxu0 %v2637_v48  ;;  %4374 = vmatprep.mubr.msk.bf16.mxu0 %vm1134_vm1, %v5620_v14  ;;  %6511 = vst [vmem:[#allocation34_spill] sm:$0xff] %v5657_v24  ;;  %v583_v48 = vadd.f32 %v5361_v9, %v504_v54  ;;  %6516 = vst [vmem:[#allocation38_spill] sm:$0xff] %v5678_v52  ;;  %v587_v54 = vadd.f32 %v5361_v9, %v508_v3  ;;  %v1673_v30 = vshll.u32 %v5602_v60, 16  ;;  %vm858_vm3 = vsmask.f32 4352 }
  0xba   : > { %4770 = vmatprep.subr.msk.bf16.mxu0 %vm1183_vm0, %v5637_v53  ;;  %v5689_v19 = vsel %vm1560_vm2, %v1621_v57, %v5525_v6  ;;  %v6519_v59 = vshrl.u32 %v5547_v36, 16  ;;  %v5699_v41 = vrot.slane %v888_v45, 4  ;;  %v1660_v5 = vshrl.u32 %v5588_v29, 16 }
  0xbb   : > { %6517 = vst [vmem:[#allocation39_spill] sm:$0xff] %v5689_v19  ;;  %v5692_v3 = vmax.f32 %v583_v48, 0.0  ;;  %v1664_v56 = vrot.slane %v1662_v18, 1  ;;  %v5705_v21 = vmax.f32 %v587_v54, 0.0  ;;  %v6521_v48 = vmov 0.0  }
  0xbc   : > { %v5697_v39 = vrot.slane %v6519_v59, 3  ;;  %v6522_v23 = vmax.f32 %v5383_v31, 0.0  ;;  %v791_v59 = vpack.c.bf16 %v5399_v40, %v5399_v40  ;;  %v6523_v36 = vmax.f32 %v5635_v38, 0.0 }
  0xbd   : > { %6518 = vst [vmem:[#allocation40_spill] sm:$0xff] %v5692_v3  ;;  %6520 = vst [vmem:[#allocation41_spill] sm:$0xff] %v5705_v21  ;;  %v5721_v18 = vsel %vm1560_vm2, %v1632_v22, %v5525_v6  ;;  %v1643_v54 = vor.u32 %v1642_v2, %v1638_v10  ;;  %v1654_v57 = vor.u32 %v1653_v49, %v1649_v7  ;;  %v6525_v31 = vmax.f32 %v5660_v1, 0.0 }
  0xbe   : > { %4221 = vmatmul.mubr.msk.bf16.gmra.mrb[20].mxu1 %vm1134_vm1, %v5644_v58  ;;  %v790_v47 = vpack.c.bf16 %v6522_v23, %v6521_v48  ;;  %v5715_v45 = vpack.c.bf16 %v5675_v0, %v6523_v36  ;;  %6524 = vst [vmem:[#allocation42_spill] sm:$0xff] %v5721_v18  ;;  %v1671_v40 = vshrl.u32 %v5602_v60, 16  ;;  %v1675_v29 = vrot.slane %v1673_v30, 1 }
  0xbf   : > { %4224 = vmatprep.mubr.msk.bf16.mxu1 %vm1134_vm1, %v5657_v24  ;;  %v5726_v23 = vpack.c.bf16 %v5692_v3, %v6525_v31  ;;  %v6526_v36 = vmax.f32 %v5388_v34, 0.0  ;;  %v1665_v10 = vor.u32 %v1664_v56, %v1660_v5  ;;  %v793_v49 = vpack.c.bf16 %v5402_v42, %v5402_v42 }
  0xc0   : > { %4375 = vmatmul.mubr.msk.bf16.gmra.mrb[4].mxu0 %vm1134_vm1, %v5671_v51  ;;  %v6527_v2 = vmax.f32 %v5678_v52, 0.0  ;;  %v894_v30 = vshrl.u32 %v790_v47, 16  ;;  %v897_v31 = vshll.u32 %v790_v47, 16  ;;  %v902_v60 = vshrl.u32 %v791_v59, 16 }
  0xc1   : > { %4378 = vmatprep.mubr.msk.bf16.mxu0 %vm1134_vm1, %v5689_v19  ;;  %v792_v51 = vpack.c.bf16 %v6526_v36, %v6521_v48  ;;  %v5747_v34 = vsel %vm1560_vm2, %v1643_v54, %v5525_v6  ;;  %v5751_v5 = vsel %vm1560_vm2, %v1654_v57, %v5525_v6  ;;  %v905_v42 = vshll.u32 %v791_v59, 16 }
  0xc2   : > { %v5741_v7 = vpack.c.bf16 %v5705_v21, %v6527_v2  ;;  %6528 = vst [vmem:[#allocation43_spill] sm:$0xff] %v5747_v34  ;;  %v1682_v56 = vshrl.u32 %v5644_v58, 16  ;;  %v1676_v36 = vor.u32 %v1675_v29, %v1671_v40  ;;  %v6529_v2 = vmax.f32 %v5405_v43, 0.0 }
  0xc3   : > { %v911_v47 = vshrl.u32 %v792_v51, 16  ;;  %v795_v54 = vpack.c.bf16 %v5438_v55, %v5438_v55  ;;  %v5763_v57 = vsel %vm1560_vm2, %v1665_v10, %v5525_v6  ;;  %v914_v59 = vshll.u32 %v792_v51, 16 }
  0xc4   : > { %v794_v19 = vpack.c.bf16 %v6529_v2, %v6521_v48  ;;  %v919_v22 = vshrl.u32 %v793_v49, 16  ;;  %v922_v14 = vshll.u32 %v793_v49, 16  ;;  %v896_v29 = vrot.slane %v894_v30, 3 }
  0xc5   : > { %v899_v40 = vrot.slane %v897_v31, 4  ;;  %v904_v46 = vrot.slane %v902_v60, 3  ;;  %v6530_v43 = vmax.f32 %v5456_v11, 0.0  ;;  %v907_v55 = vrot.slane %v905_v42, 4 }
  0xc6   : > { %4225 = vmatmul.mubr.msk.bf16.gmra.mrb[24].mxu1 %vm1134_vm1, %v5715_v45  ;;  %v1684_v10 = vshll.u32 %v5644_v58, 16  ;;  %v1695_v51 = vshll.u32 %v5657_v24, 16  ;;  %v797_v49 = vpack.c.bf16 %v5474_v20, %v5474_v20  ;;  %v928_v12 = vshrl.u32 %v794_v19, 16 }
  0xc7   : > { %4228 = vmatprep.mubr.msk.bf16.mxu1 %vm1134_vm1, %v5726_v23  ;;  %v796_v2 = vpack.c.bf16 %v6530_v43, %v6521_v48  ;;  %v936_v30 = vshrl.u32 %v795_v54, 16  ;;  %v939_v31 = vshll.u32 %v795_v54, 16  ;;  %v913_v60 = vrot.slane %v911_v47, 3 }
  0xc8   : > { %4379 = vmatmul.mubr.msk.bf16.gmra.mrb[8].mxu0 %vm1134_vm1, %v5721_v18  ;;  %v931_v18 = vshll.u32 %v794_v19, 16  ;;  %v916_v21 = vrot.slane %v914_v59, 4  ;;  %v921_v52 = vrot.slane %v919_v22, 3  ;;  %v924_v11 = vrot.slane %v922_v14, 4 }
  0xc9   : > { %4382 = vmatprep.mubr.msk.bf16.mxu0 %vm1134_vm1, %v5747_v34  ;;  %v945_v43 = vshrl.u32 %v796_v2, 16  ;;  %v948_v53 = vshll.u32 %v796_v2, 16  ;;  %v953_v3 = vshrl.u32 %v797_v49, 16  ;;  %v956_v34 = vshll.u32 %v797_v49, 16 }
  0xca   : > { %v1686_v42 = vrot.slane %v1684_v10, 1  ;;  %v1693_v58 = vshrl.u32 %v5657_v24, 16  ;;  %v1697_v1 = vrot.slane %v1695_v51, 1  ;;  %v1706_v20 = vshll.u32 %v5715_v45, 16 }
  0xcb   : > { %v930_v19 = vrot.slane %v928_v12, 3  ;;  %v933_v47 = vrot.slane %v931_v18, 4  ;;  %v938_v22 = vrot.slane %v936_v30, 3  ;;  %v941_v14 = vrot.slane %v939_v31, 4 }
  0xcc   : > { %v900_v54 = vor.u32 %v899_v40, %v896_v29  ;;  %v908_v59 = vor.u32 %v907_v55, %v904_v46  ;;  %v917_v2 = vor.u32 %v916_v21, %v913_v60  ;;  %v925_v49 = vor.u32 %v924_v11, %v921_v52  ;;  %v5815_v55 = vld [vmem:[#allocation5 + $0xc] sm:$0xf] }
  0xcd   : > { %v947_v10 = vrot.slane %v945_v43, 3  ;;  %v950_v0 = vrot.slane %v948_v53, 4  ;;  %v955_v51 = vrot.slane %v953_v3, 3  ;;  %v958_v24 = vrot.slane %v956_v34, 4 }
  0xce   : > { %4229 = vmatmul.mubr.msk.bf16.gmra.mrb[28].mxu1 %vm1134_vm1, %v5741_v7  ;;  %v1698_v12 = vor.u32 %v1697_v1, %v1693_v58  ;;  %v1704_v18 = vshrl.u32 %v5715_v45, 16  ;;  %v1708_v30 = vrot.slane %v1706_v20, 1  ;;  %v6531_v21 = vor.u32 %v5699_v41, %v5697_v39 }
  0xcf   : > { %4234 = vmatprep.mubr.msk.bf16.mxu1 %vm1134_vm1, %v5543_v28  ;;  %v1687_v28 = vor.u32 %v1686_v42, %v1682_v56  ;;  %v6532_v46 = vor.u32 %v5667_v37, %v5631_v16  ;;  %v934_v53 = vor.u32 %v933_v47, %v930_v19  ;;  %v942_v3 = vor.u32 %v941_v14, %v938_v22  ;;  %v360_v37 = vld [vmem:[%s5337_s13 + $0x104] sm:$0xff]  }
  0xd0   : > { %4383 = vmatmul.mubr.msk.bf16.gmra.mrb[12].mxu0 %vm1134_vm1, %v5751_v5  ;;  %v6533_v34 = vmax.f32 %v5460_v13, 0.0  ;;  %v1788_v58 = vsel %vm1183_vm0, %v5407_v44, 0  ;;  %v5803_v1 = vsel %vm1560_vm2, %v1676_v36, %v5525_v6  ;;  %v5806_v39 = vsel %vm858_vm3, %v900_v54, %v908_v59 }
  0xd1   : > { %4386 = vmatprep.mubr.msk.bf16.mxu0 %vm1134_vm1, %v5763_v57  ;;  %v5794_v52 = vsel %vm858_vm3, %v6532_v46, %v6531_v21  ;;  %v799_v16 = vpack.c.bf16 %v5485_v25, %v5485_v25  ;;  %v5812_v41 = vsel %vm858_vm3, %v917_v2, %v925_v49  ;;  %v951_v56 = vor.u32 %v950_v0, %v947_v10 }
  0xd2   : > { %v798_v29 = vpack.c.bf16 %v6533_v34, %v6521_v48  ;;  %v959_v13 = vor.u32 %v958_v24, %v955_v51  ;;  %v1717_v40 = vshll.u32 %v5726_v23, 16  ;;  %v5821_v44 = vsel %vm1560_vm2, %v1687_v28, %v5525_v6 }
  0xd3   : > { %v5825_v25 = vsel %vm1560_vm2, %v1698_v12, %v5525_v6  ;;  %v1709_v36 = vor.u32 %v1708_v30, %v1704_v18  ;;  %v1715_v31 = vshrl.u32 %v5726_v23, 16  ;;  %v5831_v24 = vsel %vm858_vm3, %v934_v53, %v942_v3 }
  0xd4   : > { %v962_v0 = vshrl.u32 %v798_v29, 16  ;;  %v6534_v60 = vmax.f32 %v5466_v15, 0.0  ;;  %v432_v11 = vunpack.c.l.bf16 %v360_v37  ;;  %v965_v43 = vshll.u32 %v798_v29, 16 }
  0xd5   : > { %v970_v42 = vshrl.u32 %v799_v16, 16  ;;  %v973_v20 = vshll.u32 %v799_v16, 16  ;;  %v433_v19 = vunpack.c.h.bf16 %v360_v37  ;;  %v5841_v47 = vsel %vm858_vm3, %v951_v56, %v959_v13 }
  0xd6   : > { %4235 = vmatmul.mubr.msk.bf16.vlgmr.msra.gmra.mrb[0].mxu1 %vm1134_vm1, %v5794_v52  ;;  %v800_v28 = vpack.c.bf16 %v6534_v60, %v6521_v48  ;;  %v1719_v22 = vrot.slane %v1717_v40, 1  ;;  %v801_v14 = vpack.c.bf16 %v5489_v33, %v5489_v33  ;;  %v511_v15 = vmul.f32 %v5359_v8, %v432_v11 }
  0xd7   : > { %4267 = vmatpush3.bf16.msra.mxu1 %v1788_v58  ;;  %4238 = vmatprep.mubr.msk.bf16.mxu1 %vm1134_vm1, %v5806_v39  ;;  %v5850_v54 = vsel %vm1560_vm2, %v1709_v36, %v5525_v6  ;;  %v1728_v59 = vshll.u32 %v5741_v7, 16  ;;  %v512_v2 = vmul.f32 %v5359_v8, %v433_v19  ;;  %v6535_v49 = vmax.f32 %v5492_v35, 0.0 }
  0xd8   : > { %4765 = vmatprep.subr.msk.bf16.mxu1 %vm1183_vm0, %v5815_v55  ;;  %4387 = vmatmul.mubr.msk.bf16.gmra.mrb[16].mxu0 %vm1134_vm1, %v5803_v1  ;;  %v964_v51 = vrot.slane %v962_v0, 3  ;;  %v979_v12 = vshrl.u32 %v800_v28, 16  ;;  %v5858_v33 = vadd.f32 %v5361_v9, %v511_v15  ;;  %v803_v18 = vpack.c.bf16 %v5518_v63, %v5518_v63 }
  0xd9   : > { %4390 = vmatprep.mubr.msk.bf16.mxu0 %vm1134_vm1, %v5821_v44  ;;  %v802_v10 = vpack.c.bf16 %v6535_v49, %v6521_v48  ;;  %v967_v30 = vrot.slane %v965_v43, 4  ;;  %v972_v21 = vrot.slane %v970_v42, 3  ;;  %v975_v46 = vrot.slane %v973_v20, 4 }
  0xda   : > { %v591_v53 = vadd.f32 %v5361_v9, %v512_v2  ;;  %v982_v3 = vshll.u32 %v800_v28, 16  ;;  %v987_v34 = vshrl.u32 %v801_v14, 16  ;;  %v990_v8 = vshll.u32 %v801_v14, 16 }
  0xdb   : > { %v662_v29 = vmax.f32 %v5858_v33, 0.0  ;;  %v1726_v35 = vshrl.u32 %v5741_v7, 16  ;;  %v1730_v58 = vrot.slane %v1728_v59, 1  ;;  %v996_v37 = vshrl.u32 %v802_v10, 16 }
  0xdc   : > { %v5867_v16 = vmax.f32 %v591_v53, 0.0  ;;  %v1720_v63 = vor.u32 %v1719_v22, %v1715_v31  ;;  %v999_v56 = vshll.u32 %v802_v10, 16  ;;  %v1004_v9 = vshrl.u32 %v803_v18, 16 }
  0xdd   : > { %v1007_v13 = vshll.u32 %v803_v18, 16  ;;  %v968_v40 = vor.u32 %v967_v30, %v964_v51  ;;  %v976_v36 = vor.u32 %v975_v46, %v972_v21  ;;  %v6536_v60 = vmax.f32 %v5523_v4, 0.0 }
  0xde   : > { %4239 = vmatmul.mubr.msk.bf16.gmra.mrb[4].mxu1 %vm1134_vm1, %v5812_v41  ;;  %v5874_v0 = vpack.c.bf16 %v5867_v16, %v662_v29  ;;  %v981_v11 = vrot.slane %v979_v12, 3  ;;  %v984_v43 = vrot.slane %v982_v3, 4  ;;  %v989_v31 = vrot.slane %v987_v34, 3 }
  0xdf   : > { %4242 = vmatprep.mubr.msk.bf16.mxu1 %vm1134_vm1, %v5831_v24  ;;  %v804_v28 = vpack.c.bf16 %v6536_v60, %v6521_v48  ;;  %v805_v42 = vpack.c.bf16 %v5557_v50, %v5557_v50  ;;  %v992_v20 = vrot.slane %v990_v8, 4  ;;  %v1731_v19 = vor.u32 %v1730_v58, %v1726_v35 }
  0xe0   : > { %4391 = vmatmul.mubr.msk.bf16.gmra.mrb[20].mxu0 %vm1134_vm1, %v5825_v25  ;;  %v2404_v22 = vshll.u32 %v5874_v0, 16  ;;  %v998_v14 = vrot.slane %v996_v37, 3  ;;  %v1001_v15 = vrot.slane %v999_v56, 4  ;;  %v1006_v4 = vrot.slane %v1004_v9, 3 }
  0xe1   : > { %4394 = vmatprep.mubr.msk.bf16.mxu0 %vm1134_vm1, %v5850_v54  ;;  %v1009_v59 = vrot.slane %v1007_v13, 4  ;;  %v6537_v2 = vmax.f32 %v5540_v26, 0.0  ;;  %v5890_v10 = vsel %vm858_vm3, %v968_v40, %v976_v36  ;;  %v1013_v51 = vshrl.u32 %v804_v28, 16 }
  0xe2   : > { %v807_v50 = vpack.c.bf16 %v5565_v62, %v5565_v62  ;;  %v5896_v12 = vsel %vm1560_vm2, %v1720_v63, %v5525_v6  ;;  %v1016_v18 = vshll.u32 %v804_v28, 16  ;;  %v1021_v30 = vshrl.u32 %v805_v42, 16 }
  0xe3   : > { %v806_v49 = vpack.c.bf16 %v6537_v2, %v6521_v48  ;;  %v1024_v21 = vshll.u32 %v805_v42, 16  ;;  %v985_v46 = vor.u32 %v984_v43, %v981_v11  ;;  %v993_v26 = vor.u32 %v992_v20, %v989_v31 }
  0xe4   : > { %v2402_v53 = vshrl.u32 %v5874_v0, 16  ;;  %v2406_v3 = vrot.slane %v2404_v22, 1  ;;  %v5905_v62 = vsel %vm1560_vm2, %v1731_v19, %v5525_v6  ;;  %v1002_v34 = vor.u32 %v1001_v15, %v998_v14 }
  0xe5   : > { %v1010_v8 = vor.u32 %v1009_v59, %v1006_v4  ;;  %v1030_v35 = vshrl.u32 %v806_v49, 16  ;;  %v1015_v58 = vrot.slane %v1013_v51, 3  ;;  %v1033_v37 = vshll.u32 %v806_v49, 16 }
  0xe6   : > { %4243 = vmatmul.mubr.msk.bf16.gmra.mrb[8].mxu1 %vm1134_vm1, %v5841_v47  ;;  %v1038_v63 = vshrl.u32 %v807_v50, 16  ;;  %v1041_v56 = vshll.u32 %v807_v50, 16  ;;  %v1018_v9 = vrot.slane %v1016_v18, 4  ;;  %v1023_v13 = vrot.slane %v1021_v30, 3 }
  0xe7   : > { %4246 = vmatprep.mubr.msk.bf16.mxu1 %vm1134_vm1, %v5890_v10  ;;  %v1026_v40 = vrot.slane %v1024_v21, 4  ;;  %v6538_v36 = vmax.f32 %v5579_v17, 0.0  ;;  %v2407_v28 = vor.u32 %v2406_v3, %v2402_v53  ;;  %v809_v11 = vpack.c.bf16 %v5613_v61, %v5613_v61 }
  0xe8   : > { %4395 = vmatmul.mubr.msk.bf16.gmra.mrb[24].mxu0 %vm1134_vm1, %v5896_v12  ;;  %v5917_v43 = vsel %vm858_vm3, %v985_v46, %v993_v26  ;;  %v5920_v31 = vsel %vm858_vm3, %v1002_v34, %v1010_v8  ;;  %v6539_v42 = vmax.f32 %v5605_v32, 0.0  ;;  %v811_v17 = vpack.c.bf16 %v5627_v27, %v5627_v27 }
  0xe9   : > { %v808_v60 = vpack.c.bf16 %v6538_v36, %v6521_v48  ;;  %4398 = vmatprep.mubr.msk.bf16.mxu0 %vm1134_vm1, %v5905_v62  ;;  %v1032_v19 = vrot.slane %v1030_v35, 3  ;;  %v1035_v22 = vrot.slane %v1033_v37, 4  ;;  %v1040_v14 = vrot.slane %v1038_v63, 3  ;;  %v6541_v37 = vld [vmem:[#allocation37_spill] sm:$0xff] }
  0xea   : > { %v810_v20 = vpack.c.bf16 %v6539_v42, %v6521_v48  ;;  %v1043_v15 = vrot.slane %v1041_v56, 4  ;;  %v1019_v4 = vor.u32 %v1018_v9, %v1015_v58  ;;  %v1027_v59 = vor.u32 %v1026_v40, %v1023_v13  ;;  %v6544_v42 = vld [vmem:[#allocation40_spill] sm:$0xff] }
  0xeb   : > { %v1047_v61 = vshrl.u32 %v808_v60, 16  ;;  %v1050_v2 = vshll.u32 %v808_v60, 16  ;;  %v5931_v49 = vsel %vm1560_vm2, %v2407_v28, %v5525_v6  ;;  %v1055_v32 = vshrl.u32 %v809_v11, 16  ;;  %v6542_v60 = vld [vmem:[#allocation35_spill] sm:$0xff] }
  0xec   : > { %v1058_v51 = vshll.u32 %v809_v11, 16  ;;  %v1064_v27 = vshrl.u32 %v810_v20, 16  ;;  %v1067_v50 = vshll.u32 %v810_v20, 16  ;;  %v1072_v18 = vshrl.u32 %v811_v17, 16 }
  0xed   : > { %v1075_v30 = vshll.u32 %v811_v17, 16  ;;  %v1036_v21 = vor.u32 %v1035_v22, %v1032_v19  ;;  %v1044_v46 = vor.u32 %v1043_v15, %v1040_v14  ;;  %v5938_v26 = vsel %vm858_vm3, %v1019_v4, %v1027_v59  ;;  %v6545_v17 = vld [vmem:[#allocation32_spill] sm:$0xff] }
  0xee   : > { %4247 = vmatmul.mubr.msk.bf16.gmra.mrb[12].mxu1 %vm1134_vm1, %v5917_v43  ;;  %v1049_v53 = vrot.slane %v1047_v61, 3  ;;  %v1052_v3 = vrot.slane %v1050_v2, 4  ;;  %v1057_v34 = vrot.slane %v1055_v32, 3  ;;  %v1060_v8 = vrot.slane %v1058_v51, 4 }
  0xef   : > { %4250 = vmatprep.mubr.msk.bf16.mxu1 %vm1134_vm1, %v5920_v31  ;;  %v6540_v35 = vmax.f32 %v5635_v38, 0.0  ;;  %v813_v63 = vpack.c.bf16 %v6541_v37, %v6541_v37  ;;  %v1066_v56 = vrot.slane %v1064_v27, 3  ;;  %v1069_v9 = vrot.slane %v1067_v50, 4  ;;  %v6548_v37 = vld [vmem:[#allocation41_spill] sm:$0xff] }
  0xf0   : > { %4399 = vmatmul.mubr.msk.bf16.gmra.mrb[28].mxu0 %vm1134_vm1, %v5931_v49  ;;  %v1074_v13 = vrot.slane %v1072_v18, 3  ;;  %v1077_v40 = vrot.slane %v1075_v30, 4  ;;  %v5948_v36 = vsel %vm858_vm3, %v1036_v21, %v1044_v46  ;;  %v6543_v28 = vmax.f32 %v6542_v60, 0.0  ;;  %v5961_v18 = vld [vmem:[#allocation5 + $0x20] sm:$0xf] }
  0xf1   : > { %4404 = vmatprep.mubr.msk.bf16.mxu0 %vm1134_vm1, %v5806_v39  ;;  %v812_v58 = vpack.c.bf16 %v6540_v35, %v6521_v48  ;;  %v815_v20 = vpack.c.bf16 %v6544_v42, %v6544_v42  ;;  %v2838_v38 = vsel %vm1183_vm0, %v6545_v17, 0  ;;  %v1089_v14 = vshrl.u32 %v813_v63, 16 }
  0xf2   : > { %v814_v11 = vpack.c.bf16 %v6543_v28, %v6521_v48  ;;  %v1092_v15 = vshll.u32 %v813_v63, 16  ;;  %v1053_v4 = vor.u32 %v1052_v3, %v1049_v53  ;;  %v1061_v59 = vor.u32 %v1060_v8, %v1057_v34  ;;  %v6546_v8 = vld [vmem:[#allocation38_spill] sm:$0xff] }
  0xf3   : > { %v1081_v19 = vshrl.u32 %v812_v58, 16  ;;  %v1084_v22 = vshll.u32 %v812_v58, 16  ;;  %v1070_v61 = vor.u32 %v1069_v9, %v1066_v56  ;;  %v1078_v2 = vor.u32 %v1077_v40, %v1074_v13 }
  0xf4   : > { %v1098_v32 = vshrl.u32 %v814_v11, 16  ;;  %v1101_v51 = vshll.u32 %v814_v11, 16  ;;  %v1106_v27 = vshrl.u32 %v815_v20, 16  ;;  %v1109_v50 = vshll.u32 %v815_v20, 16 }
  0xf5   : > { %v1083_v30 = vrot.slane %v1081_v19, 3  ;;  %v1086_v21 = vrot.slane %v1084_v22, 4  ;;  %v1091_v46 = vrot.slane %v1089_v14, 3  ;;  %v1094_v53 = vrot.slane %v1092_v15, 4 }
  0xf6   : > { %4251 = vmatmul.mubr.msk.bf16.gmra.mrb[16].mxu1 %vm1134_vm1, %v5938_v26  ;;  %v5968_v3 = vsel %vm858_vm3, %v1053_v4, %v1061_v59  ;;  %v5971_v34 = vsel %vm858_vm3, %v1070_v61, %v1078_v2  ;;  %v6547_v35 = vmax.f32 %v6546_v8, 0.0  ;;  %v817_v63 = vpack.c.bf16 %v6548_v37, %v6548_v37  ;;  %v6551_v37 = vld [vmem:[#allocation31_spill] sm:$0xff] }
  0xf7   : > { %4254 = vmatprep.mubr.msk.bf16.mxu1 %vm1134_vm1, %v5948_v36  ;;  %v1100_v56 = vrot.slane %v1098_v32, 3  ;;  %v1103_v9 = vrot.slane %v1101_v51, 4  ;;  %v1108_v13 = vrot.slane %v1106_v27, 3  ;;  %v1111_v40 = vrot.slane %v1109_v50, 4  ;;  %v6549_v50 = vld [vmem:[#allocation27_spill] sm:$0xff] }
  0xf8   : > { %4405 = vmatmul.mubr.msk.bf16.vlgmr.msra.gmra.mrb[0].mxu0 %vm1134_vm1, %v5812_v41  ;;  %v816_v58 = vpack.c.bf16 %v6547_v35, %v6521_v48  ;;  %v1087_v60 = vor.u32 %v1086_v21, %v1083_v30  ;;  %v1095_v28 = vor.u32 %v1094_v53, %v1091_v46  ;;  %v1123_v20 = vshrl.u32 %v817_v63, 16  ;;  %v6550_v30 = vld [vmem:[#allocation29_spill] sm:$0xff]  ;;  %v4865_v53 = vld [vmem:[#allocation5 + $0x10] sm:$0xf] }
  0xf9   : > { %4437 = vmatpush3.bf16.msra.mxu0 %v2838_v38  ;;  %4408 = vmatprep.mubr.msk.bf16.mxu0 %vm1134_vm1, %v5831_v24  ;;  %v1126_v17 = vshll.u32 %v817_v63, 16  ;;  %v1104_v38 = vor.u32 %v1103_v9, %v1100_v56  ;;  %v1112_v19 = vor.u32 %v1111_v40, %v1108_v13  ;;  %v2006_v27 = vsel %vm1183_vm0, %v5815_v55, 0  ;;  %v6553_v13 = vld [vmem:[#allocation39_spill] sm:$0xff]  ;;  %v6554_v40 = vld [vmem:[#allocation42_spill] sm:$0xff] }
  0xfa   : > { %4771 = vmatprep.subr.msk.bf16.mxu0 %vm1183_vm0, %v5961_v18  ;;  %v1115_v11 = vshrl.u32 %v816_v58, 16  ;;  %v1118_v42 = vshll.u32 %v816_v58, 16  ;;  %v5987_v22 = vsel %vm858_vm3, %v1087_v60, %v1095_v28  ;;  %v1125_v4 = vrot.slane %v1123_v20, 3  ;;  %v6555_v28 = vld [vmem:[#allocation43_spill] sm:$0xff] }
  0xfb   : > { %v1128_v59 = vrot.slane %v1126_v17, 4  ;;  %v5992_v61 = vsel %vm858_vm3, %v1104_v38, %v1112_v19  ;;  %v818_v21 = vpack.c.bf16 %v662_v29, %v6521_v48  ;;  %v819_v46 = vpack.c.bf16 %v5867_v16, %v5867_v16  ;;  %v6552_v48 = vld [vmem:[#allocation36_spill] sm:$0xff]  ;;  %v6559_v38 = vld [vmem:[#allocation21_spill] sm:$0xff]  ;;  %v6560_v19 = vld [vmem:[#allocation22_spill] sm:$0xff] }
  0xfc   : > { %v1117_v14 = vrot.slane %v1115_v11, 3  ;;  %v1120_v15 = vrot.slane %v1118_v42, 4  ;;  %v6556_v11 = vld [vmem:[#allocation25_spill] sm:$0xff]  ;;  %v6557_v42 = vld [vmem:[#allocation19_spill] sm:$0xff]  ;;  %v3050_v20 = vsel %vm1183_vm0, %v5961_v18, 0  ;;  %v6558_v17 = vld [vmem:[#allocation20_spill] sm:$0xff] }
  0xfd   : > { %v1129_v32 = vor.u32 %v1128_v59, %v1125_v4  ;;  %v1984_v55 = vshrl.u32 %v818_v21, 16  ;;  %v1987_v8 = vshll.u32 %v818_v21, 16  ;;  %v1992_v35 = vshrl.u32 %v819_v46, 16  ;;  %v6561_v18 = vld [vmem:[#allocation23_spill] sm:$0xff]  ;;  %v6564_v4 = vld [vmem:[#allocation28_spill] sm:$0xff]  ;;  %v6565_v59 = vld [vmem:[#allocation30_spill] sm:$0xff] }
  0xfe   : > { %4255 = vmatmul.mubr.msk.bf16.gmra.mrb[20].mxu1 %vm1134_vm1, %v5968_v3  ;;  %v1121_v2 = vor.u32 %v1120_v15, %v1117_v14  ;;  %v1995_v58 = vshll.u32 %v819_v46, 16  ;;  %v6562_v14 = vld [vmem:[#allocation24_spill] sm:$0xff]  ;;  %v6563_v15 = vld [vmem:[#allocation26_spill] sm:$0xff]  ;;  %vm3589_vm4 = vcmask 60416  }
  0xff   : > { %4258 = vmatprep.mubr.msk.bf16.mxu1 %vm1134_vm1, %v5971_v34  ;;  %v1986_v33 = vrot.slane %v1984_v55, 3  ;;  %v1989_v29 = vrot.slane %v1987_v8, 4  ;;  %v1994_v16 = vrot.slane %v1992_v35, 3 }
 0x100   : > { %4409 = vmatmul.mubr.msk.bf16.gmra.mrb[4].mxu0 %vm1134_vm1, %v5841_v47  ;;  %v6003_v51 = vsel %vm858_vm3, %v1121_v2, %v1129_v32  ;;  %v1997_v63 = vrot.slane %v1995_v58, 4  ;;  %v6566_v2 = vld [vmem:[#allocation18_spill] sm:$0xff]  ;;  %v6567_v32 = vld [vmem:[#allocation33_spill] sm:$0xff] }
 0x101   : > { %4412 = vmatprep.mubr.msk.bf16.mxu0 %vm1134_vm1, %v5890_v10  ;;  %v1990_v56 = vor.u32 %v1989_v29, %v1986_v33 }
 0x102   : > { %v1998_v9 = vor.u32 %v1997_v63, %v1994_v16 }
 0x104   : > { %v1999_v60 = vsel %vm858_vm3, %v1990_v56, %v1998_v9 }
 0x106   : > { %4259 = vmatmul.mubr.msk.bf16.gmra.mrb[24].mxu1 %vm1134_vm1, %v5987_v22 }
 0x107   : > { %4262 = vmatprep.mubr.msk.bf16.mxu1 %vm1134_vm1, %v5992_v61 }
 0x108   : > { %4413 = vmatmul.mubr.msk.bf16.gmra.mrb[8].mxu0 %vm1134_vm1, %v5917_v43 }
 0x109   : > { %4416 = vmatprep.mubr.msk.bf16.mxu0 %vm1134_vm1, %v5920_v31 }
 0x10e   : > { %4263 = vmatmul.mubr.msk.bf16.gmra.mrb[28].mxu1 %vm1134_vm1, %v6003_v51 }
 0x10f   : > { %4268 = vmatprep.mubr.msk.bf16.mxu1 %vm1134_vm1, %v5525_v6 }
 0x110   : > { %4417 = vmatmul.mubr.msk.bf16.gmra.mrb[12].mxu0 %vm1134_vm1, %v5938_v26 }
 0x111   : > { %4420 = vmatprep.mubr.msk.bf16.mxu0 %vm1134_vm1, %v5948_v36 }
 0x116   : > { %4269 = vmatmul.mubr.msk.bf16.vlgmr.msra.gmra.mrb[0].mxu1 %vm1134_vm1, %v6549_v50 }
 0x117   : > { %4301 = vmatpush3.bf16.msra.mxu1 %v2006_v27  ;;  %4272 = vmatprep.mubr.msk.bf16.mxu1 %vm1134_vm1, %v6550_v30  ;;  %v6568_v27 = vld [vmem:[#allocation34_spill] sm:$0xff] }
 0x118   : > { %4767 = vmatprep.subr.msk.bf16.mxu1 %vm1183_vm0, %v4865_v53  ;;  %4421 = vmatmul.mubr.msk.bf16.gmra.mrb[16].mxu0 %vm1134_vm1, %v5968_v3 }
 0x119   : > { %4424 = vmatprep.mubr.msk.bf16.mxu0 %vm1134_vm1, %v5971_v34 }
 0x11e   : > { %4273 = vmatmul.mubr.msk.bf16.gmra.mrb[4].mxu1 %vm1134_vm1, %v6551_v37 }
 0x11f   : > { %4276 = vmatprep.mubr.msk.bf16.mxu1 %vm1134_vm1, %v6552_v48 }
 0x120   : > { %4425 = vmatmul.mubr.msk.bf16.gmra.mrb[20].mxu0 %vm1134_vm1, %v5987_v22 }
 0x121   : > { %4428 = vmatprep.mubr.msk.bf16.mxu0 %vm1134_vm1, %v5992_v61 }
 0x126   : > { %4277 = vmatmul.mubr.msk.bf16.gmra.mrb[8].mxu1 %vm1134_vm1, %v6553_v13 }
 0x127   : > { %4280 = vmatprep.mubr.msk.bf16.mxu1 %vm1134_vm1, %v6554_v40 }
 0x128   : > { %4429 = vmatmul.mubr.msk.bf16.gmra.mrb[24].mxu0 %vm1134_vm1, %v6003_v51 }
 0x129   : > { %4432 = vmatprep.mubr.msk.bf16.mxu0 %vm1134_vm1, %v1999_v60 }
 0x12e   : > { %4281 = vmatmul.mubr.msk.bf16.gmra.mrb[12].mxu1 %vm1134_vm1, %v6555_v28 }
 0x12f   : > { %4284 = vmatprep.mubr.msk.bf16.mxu1 %vm1134_vm1, %v5751_v5 }
 0x130   : > { %4433 = vmatmul.mubr.msk.bf16.gmra.mrb[28].mxu0 %vm1134_vm1, %v6556_v11 }
 0x131   : > { %4438 = vmatprep.mubr.msk.bf16.mxu0 %vm1134_vm1, %v6557_v42 }
 0x136   : > { %4285 = vmatmul.mubr.msk.bf16.gmra.mrb[16].mxu1 %vm1134_vm1, %v5763_v57 }
 0x137   : > { %4288 = vmatprep.mubr.msk.bf16.mxu1 %vm1134_vm1, %v5803_v1 }
 0x138   : > { %4439 = vmatmul.mubr.msk.bf16.vlgmr.msra.gmra.mrb[0].mxu0 %vm1134_vm1, %v6558_v17 }
 0x139   : > { %4471 = vmatpush3.bf16.msra.mxu0 %v3050_v20  ;;  %4442 = vmatprep.mubr.msk.bf16.mxu0 %vm1134_vm1, %v6559_v38 }
 0x13e   : > { %4289 = vmatmul.mubr.msk.bf16.gmra.mrb[20].mxu1 %vm1134_vm1, %v5821_v44 }
 0x13f   : > { %4292 = vmatprep.mubr.msk.bf16.mxu1 %vm1134_vm1, %v5825_v25 }
 0x140   : > { %4443 = vmatmul.mubr.msk.bf16.gmra.mrb[4].mxu0 %vm1134_vm1, %v6560_v19 }
 0x141   : > { %4446 = vmatprep.mubr.msk.bf16.mxu0 %vm1134_vm1, %v6561_v18 }
 0x146   : > { %4293 = vmatmul.mubr.msk.bf16.gmra.mrb[24].mxu1 %vm1134_vm1, %v5850_v54 }
 0x147   : > { %4296 = vmatprep.mubr.msk.bf16.mxu1 %vm1134_vm1, %v5896_v12 }
 0x148   : > { %4447 = vmatmul.mubr.msk.bf16.gmra.mrb[8].mxu0 %vm1134_vm1, %v6562_v14 }
 0x149   : > { %4450 = vmatprep.mubr.msk.bf16.mxu0 %vm1134_vm1, %v6563_v15 }
 0x14e   : > { %4297 = vmatmul.mubr.msk.bf16.gmra.mrb[28].mxu1 %vm1134_vm1, %v5905_v62 }
 0x14f   : > { %4302 = vmatprep.mubr.msk.bf16.mxu1 %vm1134_vm1, %v5794_v52  ;;  %v6569_v52 = vmov 0.0|0.0  }
 0x150   : > { %4451 = vmatmul.mubr.msk.bf16.gmra.mrb[12].mxu0 %vm1134_vm1, %v6564_v4 }
 0x151   : > { %4454 = vmatprep.mubr.msk.bf16.mxu0 %vm1134_vm1, %v6565_v59 }
 0x156   : > { %4303 = vmatmul.mubr.msk.bf16.vlgmr.msra.gmra.mrb[0].mxu1 %vm1134_vm1, %v5806_v39 }
 0x157   : > { %4505 = vmatpush3.bf16.msra.mxu1 %v6566_v2  ;;  %4306 = vmatprep.mubr.msk.bf16.mxu1 %vm1134_vm1, %v5812_v41 }
 0x158   : > { %4455 = vmatmul.mubr.msk.bf16.gmra.mrb[16].mxu0 %vm1134_vm1, %v6567_v32 }
 0x159   : > { %4458 = vmatprep.mubr.msk.bf16.mxu0 %vm1134_vm1, %v6568_v27 }
 0x15e   : > { %4307 = vmatmul.mubr.msk.bf16.gmra.mrb[4].mxu1 %vm1134_vm1, %v5831_v24 }
 0x15f   : > { %4310 = vmatprep.mubr.msk.bf16.mxu1 %vm1134_vm1, %v5841_v47 }
 0x160   : > { %4459 = vmatmul.mubr.msk.bf16.gmra.mrb[20].mxu0 %vm1134_vm1, %v5715_v45 }
 0x161   : > { %4462 = vmatprep.mubr.msk.bf16.mxu0 %vm1134_vm1, %v5726_v23 }
 0x166   : > { %4311 = vmatmul.mubr.msk.bf16.gmra.mrb[8].mxu1 %vm1134_vm1, %v5890_v10 }
 0x167   : > { %4314 = vmatprep.mubr.msk.bf16.mxu1 %vm1134_vm1, %v5917_v43 }
 0x168   : > { %4463 = vmatmul.mubr.msk.bf16.gmra.mrb[24].mxu0 %vm1134_vm1, %v5741_v7 }
 0x169   : > { %4466 = vmatprep.mubr.msk.bf16.mxu0 %vm1134_vm1, %v5874_v0 }
 0x16e   : > { %4315 = vmatmul.mubr.msk.bf16.gmra.mrb[12].mxu1 %vm1134_vm1, %v5920_v31 }
 0x16f   : > { %4318 = vmatprep.mubr.msk.bf16.mxu1 %vm1134_vm1, %v5938_v26 }
 0x170   : > { %4467 = vmatmul.mubr.bf16.gmra.mrb[28].mxu0 %v6569_v52 }
 0x171   : > { %4472 = vmatprep.mubr.msk.bf16.mxu0 %vm1134_vm1, %v6550_v30 }
 0x176   : > { %4319 = vmatmul.mubr.msk.bf16.gmra.mrb[16].mxu1 %vm1134_vm1, %v5948_v36 }
 0x177   : > { %4322 = vmatprep.mubr.msk.bf16.mxu1 %vm1134_vm1, %v5968_v3 }
 0x178   : > { %4473 = vmatmul.mubr.msk.bf16.vlgmr.msra.gmra.mrb[0].mxu0 %vm1134_vm1, %v6551_v37 }
 0x179   : > { %4476 = vmatprep.mubr.msk.bf16.mxu0 %vm1134_vm1, %v6552_v48 }
 0x17e   : > { %4323 = vmatmul.mubr.msk.bf16.gmra.mrb[20].mxu1 %vm1134_vm1, %v5971_v34 }
 0x17f   : > { %4326 = vmatprep.mubr.msk.bf16.mxu1 %vm1134_vm1, %v5987_v22 }
 0x180   : > { %4477 = vmatmul.mubr.msk.bf16.gmra.mrb[4].mxu0 %vm1134_vm1, %v6553_v13 }
 0x181   : > { %4480 = vmatprep.mubr.msk.bf16.mxu0 %vm1134_vm1, %v6554_v40 }
 0x186   : > { %4327 = vmatmul.mubr.msk.bf16.gmra.mrb[24].mxu1 %vm1134_vm1, %v5992_v61 }
 0x187   : > { %4330 = vmatprep.mubr.msk.bf16.mxu1 %vm1134_vm1, %v6003_v51 }
 0x188   : > { %4481 = vmatmul.mubr.msk.bf16.gmra.mrb[8].mxu0 %vm1134_vm1, %v6555_v28 }
 0x189   : > { %4484 = vmatprep.mubr.msk.bf16.mxu0 %vm1134_vm1, %v5751_v5 }
 0x18e   : > { %4331 = vmatmul.mubr.msk.bf16.gmra.mrb[28].mxu1 %vm1134_vm1, %v1999_v60 }
 0x18f   : > { %4352 = vmatprep.mubr.msk.bf16.mxu1 %vm1134_vm1, %v6564_v4 }
 0x190   : > { %4485 = vmatmul.mubr.msk.bf16.gmra.mrb[12].mxu0 %vm1134_vm1, %v5763_v57 }
 0x191   : > { %4488 = vmatprep.mubr.msk.bf16.mxu0 %vm1134_vm1, %v5803_v1 }
 0x196   : > { %4353 = vmatmul.mubr.msk.bf16.vlgmr.msra.gmra.mrb[16].mxu1 %vm1134_vm1, %v6565_v59 }
 0x197   : > { %4356 = vmatprep.mubr.msk.bf16.mxu1 %vm1134_vm1, %v6567_v32 }
 0x198   : > { %4489 = vmatmul.mubr.msk.bf16.gmra.mrb[16].mxu0 %vm1134_vm1, %v5821_v44 }
 0x199   : > { %4492 = vmatprep.mubr.msk.bf16.mxu0 %vm1134_vm1, %v5825_v25 }
 0x19e   : > { %4357 = vmatmul.mubr.msk.bf16.gmra.mrb[20].mxu1 %vm1134_vm1, %v6568_v27 }
 0x19f   : > { %4360 = vmatprep.mubr.msk.bf16.mxu1 %vm1134_vm1, %v5715_v45 }
 0x1a0   : > { %4493 = vmatmul.mubr.msk.bf16.gmra.mrb[20].mxu0 %vm1134_vm1, %v5850_v54 }
 0x1a1   : > { %4496 = vmatprep.mubr.msk.bf16.mxu0 %vm1134_vm1, %v5896_v12 }
 0x1a6   : > { %4361 = vmatmul.mubr.msk.bf16.gmra.mrb[24].mxu1 %vm1134_vm1, %v5726_v23 }
 0x1a7   : > { %4364 = vmatprep.mubr.msk.bf16.mxu1 %vm1134_vm1, %v5741_v7 }
 0x1a8   : > { %4497 = vmatmul.mubr.msk.bf16.gmra.mrb[24].mxu0 %vm1134_vm1, %v5905_v62 }
 0x1a9   : > { %4500 = vmatprep.mubr.msk.bf16.mxu0 %vm1134_vm1, %v5931_v49 }
 0x1ae   : > { %4365 = vmatmul.mubr.msk.bf16.gmra.mrb[28].mxu1 %vm1134_vm1, %v5874_v0 }
 0x1b0   : > { %4501 = vmatmul.mubr.msk.bf16.gmra.mrb[28].mxu0 %vm1134_vm1, %v5525_v6 }
 0x229   : > { %v4304_v45 = vpop.f32.mrb[0].mxu1 }
 0x22a   : > { %v2042_v5 = vpop.f32.mrb[1].mxu1 }
 0x22b   : > { %v4305_v57 = vpop.f32.mrb[2].mxu1 }
 0x22c   : > { %v2045_v1 = vpop.f32.mrb[3].mxu1 }
 0x231   : > { %v4308_v23 = vpop.f32.mrb[4].mxu1 }
 0x232   : > { %v2058_v39 = vpop.f32.mrb[5].mxu1 }
 0x233   : > { %v4309_v41 = vpop.f32.mrb[6].mxu1 }
 0x234   : > { %v2061_v7 = vpop.f32.mrb[7].mxu1 }
 0x239   : > { %v6178_v44 = vpop.f32.mrb[8].mxu1 }
 0x23a   : > { %v6180_v25 = vpop.f32.mrb[9].mxu1 }
 0x23b   : > { %v6182_v24 = vpop.f32.mrb[10].mxu1 }
 0x23c   : > { %v6184_v47 = vpop.f32.mrb[11].mxu1 }
 0x241   : > { %v6186_v54 = vpop.f32.mrb[12].mxu1 }
 0x242   : > { %v6188_v0 = vpop.f32.mrb[13].mxu1 }
 0x243   : > { %v6190_v6 = vpop.f32.mrb[14].mxu1 }
 0x244   : > { %v6192_v10 = vpop.f32.mrb[15].mxu1 }
 0x24b   : > { %v4474_v12 = vpop.f32.mrb[0].mxu0 }
 0x24c   : > { %v4506_v62 = vadd.f32 %v4474_v12, %v4304_v45  ;;  %v3086_v43 = vpop.f32.mrb[1].mxu0 }
 0x24d   : > { %v4507_v31 = vadd.f32 %v3086_v43, %v2042_v5  ;;  %v4475_v49 = vpop.f32.mrb[2].mxu0 }
 0x24e   : > { %v3284_v26 = vsel %vm1134_vm1, %v4506_v62, 0.0  ;;  %v3356_v36 = vmul.f32 %v4506_v62, %v4506_v62  ;;  %v4015_v3 = vpack.c.bf16 %v4506_v62, %v4506_v62  ;;  %v4508_v34 = vadd.f32 %v4475_v49, %v4305_v57  ;;  %v3089_v22 = vpop.f32.mrb[3].mxu0 }
 0x24f   : > { %v3283_v61 = vsel %vm1134_vm1, %v4507_v31, 0.0  ;;  %v3354_v51 = vmul.f32 %v4507_v31, %v4507_v31  ;;  %v4013_v50 = vpack.c.bf16 %v4507_v31, %v4507_v31  ;;  %v4509_v30 = vadd.f32 %v3089_v22, %v2045_v1 }
 0x250   : > { %v3387_v21 = vsel %vm1134_vm1, %v3356_v36, 0.0  ;;  %3978 = vst.msk [vmem:[%s6199_s24 + $0x24] sm:$0xf] %vm3589_vm4, %v4015_v3  ;;  %v3285_v46 = vadd.f32 %v3284_v26, %v3283_v61  ;;  %v3315_v53 = vsel %vm1134_vm1, %v4508_v34, 0.0  ;;  %v3357_v55 = vmul.f32 %v4508_v34, %v4508_v34 }
 0x251   : > { %v3386_v8 = vsel %vm1134_vm1, %v3354_v51, 0.0  ;;  %3976 = vst.msk [vmem:[%s6199_s24 + $0x14] sm:$0xf] %vm3589_vm4, %v4013_v50  ;;  %v4016_v35 = vpack.c.bf16 %v4508_v34, %v4508_v34  ;;  %v3314_v58 = vsel %vm1134_vm1, %v4509_v30, 0.0  ;;  %v3355_v37 = vmul.f32 %v4509_v30, %v4509_v30 }
 0x252   : > { %v3388_v48 = vadd.f32 %v3387_v21, %v3386_v8  ;;  %v3418_v33 = vsel %vm1134_vm1, %v3357_v55, 0.0  ;;  %v3316_v29 = vadd.f32 %v3315_v53, %v3314_v58  ;;  %v4014_v16 = vpack.c.bf16 %v4509_v30, %v4509_v30 }
 0x253   : > { %3979 = vst.msk [vmem:[%s6199_s24 + $0x28] sm:$0xf] %vm3589_vm4, %v4016_v35  ;;  %v3417_v63 = vsel %vm1134_vm1, %v3355_v37, 0.0  ;;  %v4478_v56 = vpop.f32.mrb[4].mxu0 }
 0x254   : > { %v3419_v9 = vadd.f32 %v3418_v33, %v3417_v63  ;;  %3977 = vst.msk [vmem:[%s6199_s24 + $0x18] sm:$0xf] %vm3589_vm4, %v4014_v16  ;;  %v4510_v13 = vadd.f32 %v4478_v56, %v4308_v23  ;;  %v3102_v40 = vpop.f32.mrb[5].mxu0 }
 0x255   : > { %v4511_v60 = vadd.f32 %v3102_v40, %v2058_v39  ;;  %v4479_v28 = vpop.f32.mrb[6].mxu0 }
 0x256   : > { %v3360_v11 = vmul.f32 %v4510_v13, %v4510_v13  ;;  %v4019_v42 = vpack.c.bf16 %v4510_v13, %v4510_v13  ;;  %v4512_v20 = vadd.f32 %v4479_v28, %v4309_v41  ;;  %v3105_v17 = vpop.f32.mrb[7].mxu0  ;;  %v3288_v15 = vsel %vm1134_vm1, %v4510_v13, 0.0 }
 0x257   : > { %v3286_v38 = vsel %vm1134_vm1, %v4511_v60, 0.0  ;;  %v3358_v19 = vmul.f32 %v4511_v60, %v4511_v60  ;;  %v4017_v18 = vpack.c.bf16 %v4511_v60, %v4511_v60  ;;  %v4513_v14 = vadd.f32 %v3105_v17, %v2061_v7 }
 0x258   : > { %3982 = vst.msk [vmem:[%s6199_s24 + $0x44] sm:$0xf] %vm3589_vm4, %v4019_v42  ;;  %v3287_v4 = vadd.f32 %v3286_v38, %v3285_v46  ;;  %v4020_v2 = vpack.c.bf16 %v4512_v20, %v4512_v20  ;;  %v3391_v52 = vsel %vm1134_vm1, %v3360_v11, 0.0  ;;  %v3319_v1 = vsel %vm1134_vm1, %v4512_v20, 0.0 }
 0x259   : > { %v3389_v59 = vsel %vm1134_vm1, %v3358_v19, 0.0  ;;  %3980 = vst.msk [vmem:[%s6199_s24 + $0x34] sm:$0xf] %vm3589_vm4, %v4017_v18  ;;  %v3317_v32 = vsel %vm1134_vm1, %v4513_v14, 0.0  ;;  %v3359_v27 = vmul.f32 %v4513_v14, %v4513_v14  ;;  %v4018_v57 = vpack.c.bf16 %v4513_v14, %v4513_v14 }
 0x25a   : > { %v3390_v45 = vadd.f32 %v3389_v59, %v3388_v48  ;;  %v3318_v5 = vadd.f32 %v3317_v32, %v3316_v29  ;;  %v3361_v23 = vmul.f32 %v4512_v20, %v4512_v20  ;;  %3983 = vst.msk [vmem:[%s6199_s24 + $0x48] sm:$0xf] %vm3589_vm4, %v4020_v2  ;;  %v3289_v7 = vadd.f32 %v3288_v15, %v3287_v4 }
 0x25b   : > { %v3420_v39 = vsel %vm1134_vm1, %v3359_v27, 0.0  ;;  %v4482_v41 = vpop.f32.mrb[8].mxu0  ;;  %3981 = vst.msk [vmem:[%s6199_s24 + $0x38] sm:$0xf] %vm3589_vm4, %v4018_v57 }
 0x25c   : > { %v3421_v12 = vadd.f32 %v3420_v39, %v3419_v9  ;;  %v4514_v62 = vadd.f32 %v4482_v41, %v6178_v44  ;;  %v3118_v43 = vpop.f32.mrb[9].mxu0  ;;  %v3392_v31 = vadd.f32 %v3391_v52, %v3390_v45  ;;  %v3320_v49 = vadd.f32 %v3319_v1, %v3318_v5 }
 0x25d   : > { %v4515_v26 = vadd.f32 %v3118_v43, %v6180_v25  ;;  %v4483_v36 = vpop.f32.mrb[10].mxu0  ;;  %v3422_v44 = vsel %vm1134_vm1, %v3361_v23, 0.0 }
 0x25e   : > { %v3364_v3 = vmul.f32 %v4514_v62, %v4514_v62  ;;  %v4023_v34 = vpack.c.bf16 %v4514_v62, %v4514_v62  ;;  %v4516_v22 = vadd.f32 %v4483_v36, %v6182_v24  ;;  %v3121_v61 = vpop.f32.mrb[11].mxu0  ;;  %v3292_v46 = vsel %vm1134_vm1, %v4514_v62, 0.0 }
 0x25f   : > { %v3290_v51 = vsel %vm1134_vm1, %v4515_v26, 0.0  ;;  %v3362_v50 = vmul.f32 %v4515_v26, %v4515_v26  ;;  %v4021_v30 = vpack.c.bf16 %v4515_v26, %v4515_v26  ;;  %v4517_v21 = vadd.f32 %v3121_v61, %v6184_v47 }
 0x260   : > { %v3395_v25 = vsel %vm1134_vm1, %v3364_v3, 0.0  ;;  %3986 = vst.msk [vmem:[%s6199_s24 + $0x64] sm:$0xf] %vm3589_vm4, %v4023_v34  ;;  %v3291_v53 = vadd.f32 %v3290_v51, %v3289_v7  ;;  %v4024_v24 = vpack.c.bf16 %v4516_v22, %v4516_v22  ;;  %v3323_v58 = vsel %vm1134_vm1, %v4516_v22, 0.0 }
 0x261   : > { %v3393_v55 = vsel %vm1134_vm1, %v3362_v50, 0.0  ;;  %3984 = vst.msk [vmem:[%s6199_s24 + $0x54] sm:$0xf] %vm3589_vm4, %v4021_v30  ;;  %v3321_v8 = vsel %vm1134_vm1, %v4517_v21, 0.0  ;;  %v3363_v35 = vmul.f32 %v4517_v21, %v4517_v21  ;;  %v3423_v48 = vadd.f32 %v3422_v44, %v3421_v12 }
 0x262   : > { %v3394_v47 = vadd.f32 %v3393_v55, %v3392_v31  ;;  %v3322_v37 = vadd.f32 %v3321_v8, %v3320_v49  ;;  %v3365_v33 = vmul.f32 %v4516_v22, %v4516_v22  ;;  %3987 = vst.msk [vmem:[%s6199_s24 + $0x68] sm:$0xf] %vm3589_vm4, %v4024_v24  ;;  %v4022_v16 = vpack.c.bf16 %v4517_v21, %v4517_v21 }
 0x263   : > { %v3424_v29 = vsel %vm1134_vm1, %v3363_v35, 0.0  ;;  %v4486_v63 = vpop.f32.mrb[12].mxu0  ;;  %v3293_v56 = vadd.f32 %v3292_v46, %v3291_v53 }
 0x264   : > { %v3425_v9 = vadd.f32 %v3424_v29, %v3423_v48  ;;  %v4518_v13 = vadd.f32 %v4486_v63, %v6186_v54  ;;  %v3134_v40 = vpop.f32.mrb[13].mxu0  ;;  %v3396_v60 = vadd.f32 %v3395_v25, %v3394_v47  ;;  %v3324_v28 = vadd.f32 %v3323_v58, %v3322_v37  ;;  %3985 = vst.msk [vmem:[%s6199_s24 + $0x58] sm:$0xf] %vm3589_vm4, %v4022_v16 }
 0x265   : > { %v4519_v11 = vadd.f32 %v3134_v40, %v6188_v0  ;;  %v4487_v42 = vpop.f32.mrb[14].mxu0  ;;  %v3426_v4 = vsel %vm1134_vm1, %v3365_v33, 0.0 }
 0x266   : > { %v3368_v20 = vmul.f32 %v4518_v13, %v4518_v13  ;;  %v4027_v17 = vpack.c.bf16 %v4518_v13, %v4518_v13  ;;  %v4520_v38 = vadd.f32 %v4487_v42, %v6190_v6  ;;  %v3137_v19 = vpop.f32.mrb[15].mxu0  ;;  %v3296_v59 = vsel %vm1134_vm1, %v4518_v13, 0.0 }
 0x267   : > { %v3294_v18 = vsel %vm1134_vm1, %v4519_v11, 0.0  ;;  %v3366_v14 = vmul.f32 %v4519_v11, %v4519_v11  ;;  %v4025_v15 = vpack.c.bf16 %v4519_v11, %v4519_v11  ;;  %v4521_v54 = vadd.f32 %v3137_v19, %v6192_v10 }
 0x268   : > { %v3399_v2 = vsel %vm1134_vm1, %v3368_v20, 0.0  ;;  %3990 = vst.msk [vmem:[%s6199_s24 + $0x84] sm:$0xf] %vm3589_vm4, %v4027_v17  ;;  %v3295_v0 = vadd.f32 %v3294_v18, %v3293_v56  ;;  %v4028_v27 = vpack.c.bf16 %v4520_v38, %v4520_v38  ;;  %v3327_v57 = vsel %vm1134_vm1, %v4520_v38, 0.0 }
 0x269   : > { %v4354_v32 = vpop.f32.mrb[16].mxu1  ;;  %v3397_v6 = vsel %vm1134_vm1, %v3366_v14, 0.0  ;;  %3988 = vst.msk [vmem:[%s6199_s24 + $0x74] sm:$0xf] %vm3589_vm4, %v4025_v15  ;;  %v3325_v52 = vsel %vm1134_vm1, %v4521_v54, 0.0  ;;  %v3367_v45 = vmul.f32 %v4521_v54, %v4521_v54  ;;  %v3427_v23 = vadd.f32 %v3426_v4, %v3425_v9 }
 0x26a   : > { %v2307_v10 = vpop.f32.mrb[17].mxu1  ;;  %v3398_v5 = vadd.f32 %v3397_v6, %v3396_v60  ;;  %v3326_v1 = vadd.f32 %v3325_v52, %v3324_v28  ;;  %v3369_v41 = vmul.f32 %v4520_v38, %v4520_v38  ;;  %3991 = vst.msk [vmem:[%s6199_s24 + $0x88] sm:$0xf] %vm3589_vm4, %v4028_v27  ;;  %v4026_v12 = vpack.c.bf16 %v4521_v54, %v4521_v54 }
 0x26b   : > { %v4355_v39 = vpop.f32.mrb[18].mxu1  ;;  %v3428_v7 = vsel %vm1134_vm1, %v3367_v45, 0.0  ;;  %v4490_v62 = vpop.f32.mrb[16].mxu0  ;;  %v3297_v43 = vadd.f32 %v3296_v59, %v3295_v0 }
 0x26c   : > { %v2310_v31 = vpop.f32.mrb[19].mxu1  ;;  %v3429_v49 = vadd.f32 %v3428_v7, %v3427_v23  ;;  %v4522_v26 = vadd.f32 %v4490_v62, %v4354_v32  ;;  %v3150_v36 = vpop.f32.mrb[17].mxu0  ;;  %v3400_v3 = vadd.f32 %v3399_v2, %v3398_v5  ;;  %v3328_v34 = vadd.f32 %v3327_v57, %v3326_v1  ;;  %3989 = vst.msk [vmem:[%s6199_s24 + $0x78] sm:$0xf] %vm3589_vm4, %v4026_v12 }
 0x26d   : > { %v4523_v22 = vadd.f32 %v3150_v36, %v2307_v10  ;;  %v4491_v61 = vpop.f32.mrb[18].mxu0  ;;  %v3430_v55 = vsel %vm1134_vm1, %v3369_v41, 0.0 }
 0x26e   : > { %v3372_v51 = vmul.f32 %v4522_v26, %v4522_v26  ;;  %v4031_v50 = vpack.c.bf16 %v4522_v26, %v4522_v26  ;;  %v4524_v30 = vadd.f32 %v4491_v61, %v4355_v39  ;;  %v3153_v21 = vpop.f32.mrb[19].mxu0  ;;  %v3300_v24 = vsel %vm1134_vm1, %v4522_v26, 0.0 }
 0x26f   : > { %v3298_v44 = vsel %vm1134_vm1, %v4523_v22, 0.0  ;;  %v3370_v46 = vmul.f32 %v4523_v22, %v4523_v22  ;;  %v4029_v25 = vpack.c.bf16 %v4523_v22, %v4523_v22  ;;  %v4525_v53 = vadd.f32 %v3153_v21, %v2310_v31 }
 0x270   : > { %v3403_v8 = vsel %vm1134_vm1, %v3372_v51, 0.0  ;;  %3994 = vst.msk [vmem:[%s6199_s24 + $0xa4] sm:$0xf] %vm3589_vm4, %v4031_v50  ;;  %v3299_v35 = vadd.f32 %v3298_v44, %v3297_v43  ;;  %v4032_v37 = vpack.c.bf16 %v4524_v30, %v4524_v30  ;;  %v3331_v63 = vsel %vm1134_vm1, %v4524_v30, 0.0 }
 0x271   : > { %v4358_v47 = vpop.f32.mrb[20].mxu1  ;;  %v3401_v58 = vsel %vm1134_vm1, %v3370_v46, 0.0  ;;  %3992 = vst.msk [vmem:[%s6199_s24 + $0x94] sm:$0xf] %vm3589_vm4, %v4029_v25  ;;  %v3329_v48 = vsel %vm1134_vm1, %v4525_v53, 0.0  ;;  %v3371_v33 = vmul.f32 %v4525_v53, %v4525_v53  ;;  %v3431_v9 = vadd.f32 %v3430_v55, %v3429_v49 }
 0x272   : > { %v2323_v29 = vpop.f32.mrb[21].mxu1  ;;  %v3402_v16 = vadd.f32 %v3401_v58, %v3400_v3  ;;  %v3330_v56 = vadd.f32 %v3329_v48, %v3328_v34  ;;  %v3373_v40 = vmul.f32 %v4524_v30, %v4524_v30  ;;  %3995 = vst.msk [vmem:[%s6199_s24 + $0xa8] sm:$0xf] %vm3589_vm4, %v4032_v37  ;;  %v4030_v28 = vpack.c.bf16 %v4525_v53, %v4525_v53 }
 0x273   : > { %v4359_v13 = vpop.f32.mrb[22].mxu1  ;;  %v3432_v60 = vsel %vm1134_vm1, %v3371_v33, 0.0  ;;  %v4494_v11 = vpop.f32.mrb[20].mxu0  ;;  %v3301_v42 = vadd.f32 %v3300_v24, %v3299_v35 }
 0x274   : > { %v2326_v20 = vpop.f32.mrb[23].mxu1  ;;  %v3433_v17 = vadd.f32 %v3432_v60, %v3431_v9  ;;  %v4526_v38 = vadd.f32 %v4494_v11, %v4358_v47  ;;  %v3166_v19 = vpop.f32.mrb[21].mxu0  ;;  %v3404_v18 = vadd.f32 %v3403_v8, %v3402_v16  ;;  %v3332_v14 = vadd.f32 %v3331_v63, %v3330_v56  ;;  %3993 = vst.msk [vmem:[%s6199_s24 + $0x98] sm:$0xf] %vm3589_vm4, %v4030_v28 }
 0x275   : > { %v4527_v15 = vadd.f32 %v3166_v19, %v2323_v29  ;;  %v4495_v54 = vpop.f32.mrb[22].mxu0  ;;  %v3434_v45 = vsel %vm1134_vm1, %v3373_v40, 0.0 }
 0x276   : > { %v3376_v4 = vmul.f32 %v4526_v38, %v4526_v38  ;;  %v4035_v59 = vpack.c.bf16 %v4526_v38, %v4526_v38  ;;  %v4528_v2 = vadd.f32 %v4495_v54, %v4359_v13  ;;  %v3169_v0 = vpop.f32.mrb[23].mxu0  ;;  %v3304_v10 = vsel %vm1134_vm1, %v4526_v38, 0.0 }
 0x277   : > { %v3302_v32 = vsel %vm1134_vm1, %v4527_v15, 0.0  ;;  %v3374_v6 = vmul.f32 %v4527_v15, %v4527_v15  ;;  %v4033_v27 = vpack.c.bf16 %v4527_v15, %v4527_v15  ;;  %v4529_v52 = vadd.f32 %v3169_v0, %v2326_v20 }
 0x278   : > { %v3407_v5 = vsel %vm1134_vm1, %v3376_v4, 0.0  ;;  %3998 = vst.msk [vmem:[%s6199_s24 + $0xc4] sm:$0xf] %vm3589_vm4, %v4035_v59  ;;  %v3303_v57 = vadd.f32 %v3302_v32, %v3301_v42  ;;  %v4036_v39 = vpack.c.bf16 %v4528_v2, %v4528_v2  ;;  %v3335_v43 = vsel %vm1134_vm1, %v4528_v2, 0.0 }
 0x279   : > { %v4362_v1 = vpop.f32.mrb[24].mxu1  ;;  %v3405_v23 = vsel %vm1134_vm1, %v3374_v6, 0.0  ;;  %3996 = vst.msk [vmem:[%s6199_s24 + $0xb4] sm:$0xf] %vm3589_vm4, %v4033_v27  ;;  %v3333_v41 = vsel %vm1134_vm1, %v4529_v52, 0.0  ;;  %v3375_v7 = vmul.f32 %v4529_v52, %v4529_v52  ;;  %v3435_v49 = vadd.f32 %v3434_v45, %v3433_v17 }
 0x27a   : > { %v2339_v12 = vpop.f32.mrb[25].mxu1  ;;  %v3406_v62 = vadd.f32 %v3405_v23, %v3404_v18  ;;  %v3334_v31 = vadd.f32 %v3333_v41, %v3332_v14  ;;  %v3377_v36 = vmul.f32 %v4528_v2, %v4528_v2  ;;  %3999 = vst.msk [vmem:[%s6199_s24 + $0xc8] sm:$0xf] %vm3589_vm4, %v4036_v39  ;;  %v4034_v34 = vpack.c.bf16 %v4529_v52, %v4529_v52 }
 0x27b   : > { %v4363_v26 = vpop.f32.mrb[26].mxu1  ;;  %v3436_v3 = vsel %vm1134_vm1, %v3375_v7, 0.0  ;;  %v4498_v22 = vpop.f32.mrb[24].mxu0  ;;  %v3305_v61 = vadd.f32 %v3304_v10, %v3303_v57 }
 0x27c   : > { %v2342_v51 = vpop.f32.mrb[27].mxu1  ;;  %v3437_v50 = vadd.f32 %v3436_v3, %v3435_v49  ;;  %v4530_v30 = vadd.f32 %v4498_v22, %v4362_v1  ;;  %v3182_v21 = vpop.f32.mrb[25].mxu0  ;;  %v3408_v44 = vadd.f32 %v3407_v5, %v3406_v62  ;;  %v3336_v46 = vadd.f32 %v3335_v43, %v3334_v31  ;;  %3997 = vst.msk [vmem:[%s6199_s24 + $0xb8] sm:$0xf] %vm3589_vm4, %v4034_v34 }
 0x27d   : > { %v4531_v25 = vadd.f32 %v3182_v21, %v2339_v12  ;;  %v4499_v53 = vpop.f32.mrb[26].mxu0  ;;  %v3438_v33 = vsel %vm1134_vm1, %v3377_v36, 0.0 }
 0x27e   : > { %v3380_v55 = vmul.f32 %v4530_v30, %v4530_v30  ;;  %v4039_v24 = vpack.c.bf16 %v4530_v30, %v4530_v30  ;;  %v4532_v8 = vadd.f32 %v4499_v53, %v4363_v26  ;;  %v3185_v35 = vpop.f32.mrb[27].mxu0  ;;  %v3308_v29 = vsel %vm1134_vm1, %v4530_v30, 0.0 }
 0x27f   : > { %v3306_v47 = vsel %vm1134_vm1, %v4531_v25, 0.0  ;;  %v3378_v58 = vmul.f32 %v4531_v25, %v4531_v25  ;;  %v4037_v37 = vpack.c.bf16 %v4531_v25, %v4531_v25  ;;  %v4533_v48 = vadd.f32 %v3185_v35, %v2342_v51 }
 0x280   : > { %v3411_v16 = vsel %vm1134_vm1, %v3380_v55, 0.0  ;;  %4002 = vst.msk [vmem:[%s6199_s24 + $0xe4] sm:$0xf] %vm3589_vm4, %v4039_v24  ;;  %v3307_v63 = vadd.f32 %v3306_v47, %v3305_v61  ;;  %v4040_v13 = vpack.c.bf16 %v4532_v8, %v4532_v8  ;;  %v3339_v42 = vsel %vm1134_vm1, %v4532_v8, 0.0 }
 0x281   : > { %v4366_v56 = vpop.f32.mrb[28].mxu1  ;;  %v3409_v9 = vsel %vm1134_vm1, %v3378_v58, 0.0  ;;  %4000 = vst.msk [vmem:[%s6199_s24 + $0xd4] sm:$0xf] %vm3589_vm4, %v4037_v37  ;;  %v3337_v40 = vsel %vm1134_vm1, %v4533_v48, 0.0  ;;  %v3379_v60 = vmul.f32 %v4533_v48, %v4533_v48  ;;  %v3439_v17 = vadd.f32 %v3438_v33, %v3437_v50 }
 0x282   : > { %v2355_v28 = vpop.f32.mrb[29].mxu1  ;;  %v3410_v11 = vadd.f32 %v3409_v9, %v3408_v44  ;;  %v3338_v20 = vadd.f32 %v3337_v40, %v3336_v46  ;;  %v3381_v19 = vmul.f32 %v4532_v8, %v4532_v8  ;;  %4003 = vst.msk [vmem:[%s6199_s24 + $0xe8] sm:$0xf] %vm3589_vm4, %v4040_v13  ;;  %v4038_v14 = vpack.c.bf16 %v4533_v48, %v4533_v48 }
 0x283   : > { %v4367_v38 = vpop.f32.mrb[30].mxu1  ;;  %v3440_v18 = vsel %vm1134_vm1, %v3379_v60, 0.0  ;;  %v4502_v15 = vpop.f32.mrb[28].mxu0  ;;  %v3309_v54 = vadd.f32 %v3308_v29, %v3307_v63 }
 0x284   : > { %v2358_v4 = vpop.f32.mrb[31].mxu1  ;;  %v3441_v59 = vadd.f32 %v3440_v18, %v3439_v17  ;;  %v4534_v2 = vadd.f32 %v4502_v15, %v4366_v56  ;;  %v3198_v0 = vpop.f32.mrb[29].mxu0  ;;  %v3412_v32 = vadd.f32 %v3411_v16, %v3410_v11  ;;  %v3340_v6 = vadd.f32 %v3339_v42, %v3338_v20  ;;  %4001 = vst.msk [vmem:[%s6199_s24 + $0xd8] sm:$0xf] %vm3589_vm4, %v4038_v14 }
 0x285   : > { %v4535_v27 = vadd.f32 %v3198_v0, %v2355_v28  ;;  %v4503_v52 = vpop.f32.mrb[30].mxu0  ;;  %v3442_v7 = vsel %vm1134_vm1, %v3381_v19, 0.0 }
 0x286   : > { %v3384_v45 = vmul.f32 %v4534_v2, %v4534_v2  ;;  %v4043_v10 = vpack.c.bf16 %v4534_v2, %v4534_v2  ;;  %v4536_v5 = vadd.f32 %v4503_v52, %v4367_v38  ;;  %v3201_v57 = vpop.f32.mrb[31].mxu0  ;;  %v3312_v12 = vsel %vm1134_vm1, %v4534_v2, 0.0 }
 0x287   : > { %v3310_v1 = vsel %vm1134_vm1, %v4535_v27, 0.0  ;;  %v3382_v23 = vmul.f32 %v4535_v27, %v4535_v27  ;;  %v4041_v39 = vpack.c.bf16 %v4535_v27, %v4535_v27  ;;  %v4537_v41 = vadd.f32 %v3201_v57, %v2358_v4 }
 0x288   : > { %v3415_v62 = vsel %vm1134_vm1, %v3384_v45, 0.0  ;;  %4006 = vst.msk [vmem:[%s6199_s24 + $0x104] sm:$0xf] %vm3589_vm4, %v4043_v10  ;;  %v3311_v43 = vadd.f32 %v3310_v1, %v3309_v54  ;;  %v4044_v49 = vpack.c.bf16 %v4536_v5, %v4536_v5  ;;  %v3385_v22 = vmul.f32 %v4536_v5, %v4536_v5 }
 0x289   : > { %v3413_v31 = vsel %vm1134_vm1, %v3382_v23, 0.0  ;;  %4004 = vst.msk [vmem:[%s6199_s24 + $0xf4] sm:$0xf] %vm3589_vm4, %v4041_v39  ;;  %v3341_v26 = vsel %vm1134_vm1, %v4537_v41, 0.0  ;;  %v3383_v36 = vmul.f32 %v4537_v41, %v4537_v41  ;;  %v3343_v51 = vsel %vm1134_vm1, %v4536_v5, 0.0 }
 0x28a   : > { %v3313_v3 = vadd.f32 %v3312_v12, %v3311_v43  ;;  %v3414_v34 = vadd.f32 %v3413_v31, %v3412_v32  ;;  %v3342_v61 = vadd.f32 %v3341_v26, %v3340_v6  ;;  %4007 = vst.msk [vmem:[%s6199_s24 + $0x108] sm:$0xf] %vm3589_vm4, %v4044_v49  ;;  %v3443_v50 = vadd.f32 %v3442_v7, %v3441_v59 }
 0x28b   : > { %v3444_v30 = vsel %vm1134_vm1, %v3383_v36, 0.0  ;;  %v4042_v21 = vpack.c.bf16 %v4537_v41, %v4537_v41  ;;  %v3446_v55 = vsel %vm1134_vm1, %v3385_v22, 0.0 }
 0x28c   : > { %v3416_v44 = vadd.f32 %v3415_v62, %v3414_v34  ;;  %v3344_v46 = vadd.f32 %v3343_v51, %v3342_v61  ;;  %v3445_v25 = vadd.f32 %v3444_v30, %v3443_v50  ;;  %v3345_v53 = vsel %vm1134_vm1, %v3313_v3, 0.0 }
 0x28d   : > { %4005 = vst.msk [vmem:[%s6199_s24 + $0xf8] sm:$0xf] %vm3589_vm4, %v4042_v21 }
 0x28e   : > { %v3346_v24 = vsel %vm1134_vm1, %v3344_v46, 0.0 }
 0x28f   : > { %4993 = shalt.err (!%p4990_p4)
}
 0x290   : > { %s4994_s7 = scalar_lea.hbm %s6332_s30, 4608  ;;  %s4998_s13 = scalar_lea.hbm %s6424_s4, 9216 }
 0x291   : > { %p4995_p9 = scmp.ne.s32.totalorder %s6332_s30, %s4994_s7  ;;  %p4999_p8 = scmp.lt.u32.totalorder %s6332_s30, %s6424_s4 }
 0x292   : > { %p5000_p13 = scmp.lt.u32.totalorder %s4998_s13, %s4994_s7  ;;  %p5002_p10 = scmp.lt.u32.totalorder %s4994_s7, %s6332_s30 }
 0x293   : > { %p4996_p0 = pnand %p4995_p9, %p5280_p5 }
 0x294   : > { %p5001_p6 = por %p5000_p13, %p4999_p8 }
 0x295   : > { %p4997_p11 = pneg %p4996_p0 }
 0x296   : > { %p5003_p3 = por %p5002_p10, %p5001_p6 }
 0x298   : > { %p5004_p7 = pnand %p5003_p3, %p4997_p11 }
 0x29a   : > { %5007 = shalt.err (!%p5004_p7)
}
 0x29b   : > { %s5098_s28 = smov 64   ;;  %s5099_s17 = smov 4   ;;  %v3347_v8 = vadd.f32 %v3346_v24, %v3345_v53  ;;  %v3447_v35 = vadd.f32 %v3446_v55, %v3445_v25  ;;  %v3448_v47 = vsel %vm1134_vm1, %v3416_v44, 0.0  ;;  %vm3457_vm5 = vcmask 57344  }
 0x29c   : > { %4790 = dma.vmem_to_hbm [thread:$0]  (%p5280_p5), %s6338_s27, 4608, %s6332_s30, %s3623_s16, %s5098_s28, %s5098_s28, %s5099_s17  }
 0x29d   : > { %v3348_v58 = vrot.slane %v3347_v8, 4  ;;  %v3449_v37 = vsel %vm1134_vm1, %v3447_v35, 0.0  ;;  %s3799_s11 = sshll.u32 %s5331_s29, 1  ;;  %s4010_s27 = sshll.u32 %s5152_s22, 5 }
 0x29e   : > { %v3450_v48 = vadd.f32 %v3449_v37, %v3448_v47  ;;  %s293_s30 = scalar_lea.vmem [#allocation11], %s3799_s11  ;;  %s6376_s23 = scalar_lea.hbm %s6425_s5, %s4010_s27 }
 0x29f   : > { %v3349_v33 = vadd.f32 %v3348_v58, %v3347_v8  ;;  %s3657_s16 = sshll.u32 %s293_s30, 4  ;;  %s3628_s7 = scalar_lea.sflag [#allocation12], %s5331_s29  ;;  %s6378_s16 = int_to_ptr.vmem [resolvable:$true] %s3657_s16 }
 0x2a0   : > { %v3451_v29 = vrot.slane %v3450_v48, 4  ;;  %s5008_s12 = scalar_lea.vmem %s6378_s16, 32  ;;  %s5100_s22 = smov [#allocation11]  }
 0x2a1   : > { %v3350_v16 = vrot.slane %v3349_v33, 2  ;;  %p5009_p12 = scmp.ne.s32.totalorder %s6378_s16, %s5008_s12  ;;  %s5012_s15 = sshll.u32 %s5100_s22, 4  ;;  %s5013_s15 = int_to_ptr.vmem [resolvable:$false] %s5012_s15 }
 0x2a2   : > { %v3452_v63 = vadd.f32 %v3451_v29, %v3450_v48  ;;  %s5014_s13 = scalar_lea.vmem %s5013_s15, 64  ;;  %p5015_p4 = scmp.lt.s32.totalorder %s6378_s16, %s5013_s15 }
 0x2a3   : > { %v3351_v56 = vadd.f32 %v3350_v16, %v3349_v33  ;;  %p5010_p1 = pnand %p5009_p12, %p5280_p5  ;;  %p5016_p9 = scmp.lt.s32.totalorder %s5014_s13, %s5008_s12 }
 0x2a4   : > { %v3453_v9 = vrot.slane %v3452_v63, 2 }
 0x2a5   : > { %v3352_v13 = vrot.slane %v3351_v56, 1  ;;  %p5011_p2 = pneg %p5010_p1  ;;  %p5017_p0 = por %p5016_p9, %p5015_p4 }
 0x2a6   : > { %v3454_v40 = vadd.f32 %v3453_v9, %v3452_v63 }
 0x2a7   : > { %v3353_v60 = vadd.f32 %v3352_v13, %v3351_v56  ;;  %p5018_p11 = pnand %p5017_p0, %p5011_p2 }
 0x2a8   : > { %v3455_v28 = vrot.slane %v3454_v40, 1 }
 0x2a9   : > { %3458 = vst.msk [vmem:[%s293_s30] sm:$0x1] %vm3457_vm5, %v3353_v60 }
 0x2aa   : > { %v3456_v11 = vadd.f32 %v3455_v28, %v3454_v40 }
 0x2ac   : > { %3459 = vst.msk [vmem:[%s293_s30 + $0x1] sm:$0x1] %vm3457_vm5, %v3456_v11 }
 0x2ad   : > { %5021 = shalt.err (!%p5018_p11)
}
 0x2ae   : > { %s5022_s29 = scalar_lea.hbm %s6376_s23, 32  ;;  %s5026_s28 = scalar_lea.hbm %s6425_s5, 64 }
 0x2af   : > { %p5023_p8 = scmp.ne.s32.totalorder %s6376_s23, %s5022_s29  ;;  %p5027_p10 = scmp.lt.u32.totalorder %s6376_s23, %s6425_s5 }
 0x2b0   : > { %p5028_p3 = scmp.lt.u32.totalorder %s5026_s28, %s5022_s29  ;;  %p5030_p12 = scmp.lt.u32.totalorder %s5022_s29, %s6376_s23 }
 0x2b1   : > { %p5024_p13 = pnand %p5023_p8, %p5280_p5 }
 0x2b2   : > { %p5029_p7 = por %p5028_p3, %p5027_p10 }
 0x2b3   : > { %p5025_p6 = pneg %p5024_p13 }
 0x2b4   : > { %p5031_p1 = por %p5030_p12, %p5029_p7 }
 0x2b6   : > { %p5032_p2 = pnand %p5031_p1, %p5025_p6 }
 0x2b8   : > { %5035 = shalt.err (!%p5032_p2)
}
 0x2b9   : > { %4791 = dma.vmem_to_hbm [thread:$0]  (%p5280_p5), %s6378_s16, 32, %s6376_s23, %s3628_s7  }
 0x2ba PF: > { %s3669_s27 = sand.u32 1, %s5074_s18   ;;  %p6570_p4 = scmp.ne.s32.totalorder %s6479_s25, 0 }
 0x2bb   : > { %p6571_p9 = scmp.ge.s32.totalorder %s5086_s21, 2  ;;  %s3670_s30 = scalar_lea.sflag [#allocation4], %s3669_s27 }
 0x2bd   : > { %p4809_p0 = pnand %p6571_p9, %p6570_p4 }
 0x2bf   : > { %5065 = dma.done.wait (!%p4809_p0), %s3670_s30, 4608  }
 0x2c0   : > { %5067 = vsyncadd (!%p4809_p0), %s3670_s30, 4294962688  ;;  %s3679_s8 = scalar_lea.sflag [#allocation12], %s3669_s27 }
 0x2c1   : > { %5069 = dma.done.wait (!%p4809_p0), %s3679_s8, 32  }
 0x2c2   : > { %5071 = vsyncadd (!%p4809_p0), %s3679_s8, 4294967264  ;;  %p24_p5 = scmp.ge.s32.totalorder %s5266_s14, 4   ;;  %s6572_s18 = smov %s5078_s19 }
 0x2c3   : > { %s6573_s19 = smov %s5082_s20  ;;  %s6574_s20 = smov %s5276_s9 }
 0x2c4   : > { %s6575_s21 = smov %s5266_s14  ;;  %26 = sbr.rel (!%p24_p5) target bundleno = 9 (0x9), region = 119 }
 0x2cb   :  { %3684 = vsyncpa [#allocation3], 1 }
 0x2cc   :  { %3686 = vsyncpa [#allocation3 + $0x1], 1 }
 0x2cd   :  { %3687 = vsyncpa [#allocation6], 1 }
 0x2ce   :  { %3688 = vsyncpa [#allocation9], 1 }
 0x2cf   :  { %3689 = vsyncpa [#allocation4], 1 }
 0x2d0   :  { %3691 = vsyncpa [#allocation4 + $0x1], 1 }
 0x2d1   :  { %3692 = vsyncpa [#allocation12], 1 }
 0x2d2   :  { %3694 = vsyncpa [#allocation12 + $0x1], 1 }

// kernel: basic_block_forward.3
= control target key start
LH: loop header
LB: loop body
LE: loop exit
PB: predicated region body
PF: predicated region fallthrough
CT: control target
= control target key end

     0   :  { %9 = vsyncpa [#allocation3], 0  ;;  %s5898_s0 = inlined_call_operand.hbm [shape: bf16[2,18,32,8], index: 0, kind: input, shape index: {}]   ;;  %s5899_s1 = inlined_call_operand.hbm [shape: bf16[3,3,8,8], index: 1, kind: input, shape index: {}]   ;;  %s5900_s2 = inlined_call_operand.hbm [shape: bf16[2,18,32,8], index: 2, kind: output, shape index: {0}]   ;;  %s5901_s3 = inlined_call_operand.hbm [shape: f32[2,2,8], index: 3, kind: output, shape index: {1}]  }
   0x1   :  { %11 = vsyncpa [#allocation3 + $0x1], 0 }
   0x2   :  { %12 = vsyncpa [#allocation6], 0 }
   0x3   :  { %13 = vsyncpa [#allocation4], 0 }
   0x4   :  { %15 = vsyncpa [#allocation4 + $0x1], 0 }
   0x5   :  { %16 = vsyncpa [#allocation9], 0 }
   0x6   :  { %18 = vsyncpa [#allocation9 + $0x1], 0  ;;  %s4731_s12 = smov 0   ;;  %s4733_s13 = smov 0  }
   0x7   :  { %s4735_s14 = smov 0   ;;  %s4737_s15 = smov 0  }
   0x8 LB: > { %s4752_s16 = sadd.s32 4294967295, %s4701_s15   ;;  %s3346_s17 = sadd.s32 4294967294, %s4701_s15   ;;  %s4701_s15 = sphi %s4737_s15, %s6005_s15   ;;  %s4697_s14 = sphi %s4735_s14, %s6004_s14   ;;  %s4693_s13 = sphi %s4733_s13, %s6003_s13   ;;  %s4689_s12 = sphi %s4731_s12, %s6002_s12  }
   0x9   : > { %p44_p0 = scmp.ne.s32.totalorder %s4693_s13, %s4689_s12  ;;  %p5902_p1 = scmp.eq.s32.totalorder %s4752_s16, 0 }
   0xa   : > { %p95_p3 = scmp.eq.s32.totalorder %s3346_s17, 1  ;;  %p3347_p5 = scmp.ge.s32.totalorder %s4701_s15, 1 }
   0xb   : > { %p4761_p4 = por %p5902_p1, %p44_p0  ;;  %p128_p7 = scmp.lt.s32.totalorder %s4701_s15, 3 }
   0xc   : > { %p4766_p6 = por %p95_p3, %p44_p0  ;;  %s4703_s21 = smov [#allocation5]  }
   0xd   : > { %s5941_s18 = scalar_select %p4761_p4, 1, 0 }
   0xe   : > { %s5942_s19 = scalar_select %p4766_p6, 1, 0 }
   0xf   : > { %p4771_p8 = pnand %p3347_p5, %p128_p7  ;;  %s140_s22 = sshll.u32 %s4703_s21, 4  ;;  %s4775_s22 = int_to_ptr.vmem [resolvable:$true] %s140_s22 }
  0x10   : > { %s4787_s24 = sadd.s32 1, %s4701_s15   ;;  %s31_s25 = sadd.s32 1, %s4697_s14 }
  0x11   : > { %s5943_s20 = scalar_select %p4771_p8, 1, 0 }
  0x12   : > { %p4412_p9 = pneg %p4771_p8  ;;  %s28_s26 = ssub.s32 %s4701_s15, %s4787_s24 }
  0x13   : > { %s4541_s29 = scalar_lea.hbm %s5899_s1, 576 }
  0x14   : > { %p4782_p11 = pnand %p4412_p9, %p5902_p1  ;;  %p4542_p12 = scmp.ne.s32.totalorder %s5899_s1, %s4541_s29 }
  0x15   : > { %p4548_p5 = scmp.lt.u32.totalorder %s4541_s29, %s5899_s1 }
  0x16   : > { %p4543_p13 = pneg %p4782_p11 }
  0x18   : > { %p4544_p0 = pnand %p4543_p13, %p4542_p12 }
  0x1a   : > { %p4545_p3 = pneg %p4544_p0 }
  0x1c   : > { %p4550_p7 = pnand %p4548_p5, %p4545_p3 }
  0x1e   : > { %4553 = shalt.err (!%p4550_p7)
}
  0x1f   : > { %s4554_s7 = scalar_lea.vmem %s4775_s22, 576  ;;  %p4562_p2 = scmp.lt.s32.totalorder %s4775_s22, %s4775_s22 }
  0x20   : > { %p4555_p9 = scmp.ne.s32.totalorder %s4775_s22, %s4554_s7  ;;  %p4563_p6 = scmp.lt.s32.totalorder %s4554_s7, %s4554_s7 }
  0x22   : > { %p4557_p10 = pnand %p4555_p9, %p4543_p13  ;;  %p4564_p4 = por %p4563_p6, %p4562_p2 }
  0x24   : > { %p4558_p1 = pneg %p4557_p10 }
  0x26   : > { %p4565_p8 = pnand %p4564_p4, %p4558_p1 }
  0x28   : > { %4568 = shalt.err (!%p4565_p8)
}
  0x29   : > { %s4704_s8 = smov 64   ;;  %s4705_s9 = smov 4  }
  0x2a   : > { %4415 = dma.hbm_to_vmem [thread:$0]  (!%p4782_p11), %s5899_s1, 576, %s4775_s22, [#allocation6], %s4704_s8, %s4704_s8, %s4705_s9  }
  0x2b   : > { %p29_p1 = scmp.eq.s32.totalorder %s28_s26, 0  ;;  %p38_p2 = scmp.ne.s32.totalorder %s4697_s14, %s4693_s13 }
  0x2c   : > { %p39_p4 = scmp.eq.s32.totalorder %s4701_s15, 0  ;;  %p4428_p6 = scmp.lt.s32.totalorder %s4701_s15, 2 }
  0x2d   : > { %s4821_s17 = scalar_select %p29_p1, %s4697_s14, %s31_s25  }
  0x2e   : > { %p40_p8 = por %p39_p4, %p38_p2  ;;  %p5945_p10 = scmp.eq.s32.totalorder %s4752_s16, 1 }
  0x2f   : > { %s154_s23 = sand.u32 1, %s4697_s14   ;;  %s4399_s27 = smul.u32 4608, %s4701_s15 }
  0x30   : > { %p4825_p12 = por %p5945_p10, %p38_p2  ;;  %s4398_s28 = smul.u32 288, %s154_s23 }
  0x31   : > { %p4831_p13 = pnand %p4428_p6, %p40_p8  ;;  %s4838_s25 = scalar_lea.hbm %s5898_s0, %s4399_s27 }
  0x32   : > { %s158_s30 = scalar_lea.vmem [#allocation2], %s4398_s28  ;;  %s4842_s5 = scalar_lea.sflag [#allocation3], %s154_s23 }
  0x33   : > { %s165_s4 = sshll.u32 %s158_s30, 4  ;;  %s4569_s6 = scalar_lea.hbm %s4838_s25, 4608  ;;  %s4840_s4 = int_to_ptr.vmem [resolvable:$true] %s165_s4 }
  0x34   : > { %p4570_p11 = scmp.ne.s32.totalorder %s4838_s25, %s4569_s6  ;;  %p4571_p0 = pneg %p4831_p13 }
  0x35   : > { %s4574_s11 = scalar_lea.hbm %s5898_s0, 9216  ;;  %p4575_p7 = scmp.lt.u32.totalorder %s4838_s25, %s5898_s0 }
  0x36   : > { %p4572_p3 = pnand %p4571_p0, %p4570_p11  ;;  %p4576_p9 = scmp.lt.u32.totalorder %s4574_s11, %s4569_s6 }
  0x37   : > { %p4578_p2 = scmp.lt.u32.totalorder %s4569_s6, %s4838_s25 }
  0x38   : > { %p4573_p5 = pneg %p4572_p3  ;;  %p4577_p1 = por %p4576_p9, %p4575_p7 }
  0x3a   : > { %p4579_p4 = por %p4578_p2, %p4577_p1 }
  0x3c   : > { %p4580_p6 = pnand %p4579_p4, %p4573_p5 }
  0x3e   : > { %4583 = shalt.err (!%p4580_p6)
}
  0x3f   : > { %s4584_s23 = scalar_lea.vmem %s4840_s4, 4608  ;;  %s4706_s28 = smov [#allocation2]  }
  0x40   : > { %p4585_p8 = scmp.ne.s32.totalorder %s4840_s4, %s4584_s23  ;;  %s4589_s26 = sshll.u32 %s4706_s28, 4  ;;  %s4590_s26 = int_to_ptr.vmem [resolvable:$false] %s4589_s26 }
  0x41   : > { %s4591_s30 = scalar_lea.vmem %s4590_s26, 9216  ;;  %p4592_p3 = scmp.lt.s32.totalorder %s4840_s4, %s4590_s26 }
  0x42   : > { %p4587_p10 = pnand %p4585_p8, %p4571_p0  ;;  %p4593_p7 = scmp.lt.s32.totalorder %s4591_s30, %s4584_s23 }
  0x44   : > { %p4588_p11 = pneg %p4587_p10  ;;  %p4594_p9 = por %p4593_p7, %p4592_p3 }
  0x46   : > { %p4595_p1 = pnand %p4594_p9, %p4588_p11 }
  0x48   : > { %4598 = shalt.err (!%p4595_p1)
}
  0x49   : > { %4419 = dma.hbm_to_vmem [thread:$0]  (!%p4831_p13), %s4838_s25, 4608, %s4840_s4, %s4842_s5, %s4704_s8, %s4704_s8, %s4705_s9  }
  0x4a   : > { %p5948_p0 = scmp.ne.s32.totalorder %s5943_s20, 0 }
  0x4c   : > { %177 = sbr.rel (%p5948_p0) target bundleno = 645 (0x285), region = 28 }
  0x53   : > { %s4876_s6 = sand.u32 1, %s4693_s13   ;;  %p5949_p5 = scmp.ne.s32.totalorder %s5941_s18, 0 }
  0x54   : > { %s4400_s7 = smul.u32 288, %s4876_s6  ;;  %s180_s10 = scalar_lea.sflag [#allocation3], %s4876_s6 }
  0x56   : > { %s4882_s29 = scalar_lea.vmem [#allocation2], %s4400_s7 }
  0x57   : > { %4672 = dma.done.wait (%p5949_p5), %s180_s10, 4608  }
  0x58   : > { %4674 = vsyncadd (%p5949_p5), %s180_s10, 4294962688  ;;  %p5950_p13 = scmp.eq.s32.totalorder %s4752_s16, 0 }
  0x5a   : > { %4676 = dma.done.wait (%p5950_p13), [#allocation6], 576   ;;  %p5951_p2 = pmov %p5950_p13 }
  0x5b   : > { %vm757_vm0 = vcmask 1043456   ;;  %v707_v0 = vld [vmem:[#allocation5 + $0x4] sm:$0xf]  ;;  %v1776_v1 = vld [vmem:[#allocation5 + $0x10] sm:$0xf]  ;;  %vm708_vm1 = vcmask 64512  }
  0x5c   : > { %4678 = vsyncadd (%p5951_p2), [#allocation6], 4294966720  ;;  %4388 = vmatprep.subr.msk.bf16.mxu1 %vm757_vm0, %v707_v0  ;;  %4392 = vmatprep.subr.msk.bf16.mxu0 %vm757_vm0, %v1776_v1  ;;  %v759_v2 = vsel %vm757_vm0, %v707_v0, 0  ;;  %v4896_v3 = vsel %vm757_vm0, %v1776_v1, 0  ;;  %v217_v4 = vld [vmem:[%s4882_s29 + $0x4] sm:$0xf] }
  0x5d   : > { %5952 = vst [vmem:[#allocation14_spill] sm:$0xff] %v4896_v3  ;;  %v218_v5 = vld [vmem:[%s4882_s29 + $0x8] sm:$0xf]  ;;  %3825 = vmatpush3.bf16.msra.mxu1 %v759_v2  ;;  %3961 = vmatpush3.bf16.msra.mxu0 %v4896_v3  ;;  %v221_v7 = vld [vmem:[%s4882_s29 + $0x14] sm:$0xf]  ;;  %vm3166_vm4 = vcmask 60416  }
  0x5e   : > { %v4901_v6 = vcombine.low %v217_v4, %v218_v5  ;;  %v222_v8 = vld [vmem:[%s4882_s29 + $0x18] sm:$0xf]  ;;  %v705_v10 = vld [vmem:[#allocation5] sm:$0xf]  ;;  %v1988_v11 = vld [vmem:[#allocation5 + $0x14] sm:$0xf]  ;;  %v3355_v32 = vcombine.low %v218_v5, %v218_v5 }
  0x5f   : > { %v4905_v9 = vcombine.low %v221_v7, %v222_v8  ;;  %4389 = vmatprep.subr.msk.bf16.mxu1 %vm757_vm0, %v705_v10  ;;  %v4915_v12 = vld [vmem:[%s4882_s29 + $0x24] sm:$0xf]  ;;  %v4918_v13 = vld [vmem:[%s4882_s29 + $0x28] sm:$0xf]  ;;  %4394 = vmatprep.subr.msk.bf16.mxu0 %vm757_vm0, %v1988_v11  ;;  %v4922_v14 = vld [vmem:[%s4882_s29 + $0x34] sm:$0xf]  ;;  %v3357_v43 = vcombine.low %v222_v8, %v222_v8 }
  0x60   : > { %5953 = vst [vmem:[#allocation15_spill] sm:$0xff] %v4901_v6  ;;  %3826 = vmatprep.mubr.msk.bf16.mxu1 %vm708_vm1, %v4901_v6  ;;  %v4925_v15 = vld [vmem:[%s4882_s29 + $0x38] sm:$0xf]  ;;  %v4929_v16 = vcombine.low %v4915_v12, %v4918_v13  ;;  %v971_v17 = vsel %vm757_vm0, %v705_v10, 0  ;;  %v1993_v18 = vsel %vm757_vm0, %v1988_v11, 0  ;;  %v442_v41 = vshrl.u32 %v3355_v32, 16 }
  0x61   : > { %3962 = vmatprep.mubr.msk.bf16.mxu0 %vm708_vm1, %v4905_v9  ;;  %3827 = vmatmul.mubr.msk.bf16.vlgmr.msra.gmra.mrb[0].mxu1 %vm708_vm1, %v4905_v9  ;;  %v4935_v19 = vcombine.low %v4922_v14, %v4925_v15  ;;  %v4938_v20 = vld [vmem:[%s4882_s29 + $0x44] sm:$0xf]  ;;  %v4941_v21 = vld [vmem:[%s4882_s29 + $0x48] sm:$0xf]  ;;  %v216_v22 = vld [vmem:[%s4882_s29] sm:$0xf] }
  0x62   : > { %5954 = vst [vmem:[#allocation16_spill] sm:$0xff] %v4929_v16  ;;  %3859 = vmatpush3.bf16.msra.mxu1 %v971_v17  ;;  %3963 = vmatmul.mubr.msk.bf16.vlgmr.msra.gmra.mrb[0].mxu0 %vm708_vm1, %v4929_v16  ;;  %v4952_v23 = vcombine.low %v4938_v20, %v4941_v21  ;;  %v4955_v24 = vld [vmem:[%s4882_s29 + $0x54] sm:$0xf]  ;;  %v4958_v25 = vld [vmem:[%s4882_s29 + $0x58] sm:$0xf]  ;;  %v3354_v26 = vcombine.low %v216_v22, %v217_v4  ;;  %v1148_v36 = vshll.u32 %v4905_v9, 16 }
  0x63   : > { %5955 = vst [vmem:[#allocation17_spill] sm:$0xff] %v4935_v19  ;;  %3830 = vmatprep.mubr.msk.bf16.mxu1 %vm708_vm1, %v4929_v16  ;;  %3995 = vmatpush3.bf16.msra.mxu0 %v1993_v18  ;;  %v4966_v27 = vcombine.low %v4955_v24, %v4958_v25  ;;  %v4968_v28 = vld [vmem:[#allocation5 + $0x18] sm:$0xf]  ;;  %v220_v29 = vld [vmem:[%s4882_s29 + $0x10] sm:$0xf]  ;;  %v445_v42 = vshll.u32 %v3355_v32, 16 }
  0x64   : > { %3966 = vmatprep.mubr.msk.bf16.mxu0 %vm708_vm1, %v4935_v19  ;;  %5956 = vst [vmem:[#allocation18_spill] sm:$0xff] %v4952_v23  ;;  %4395 = vmatprep.subr.msk.bf16.mxu0 %vm757_vm0, %v4968_v28  ;;  %v4974_v30 = vld [vmem:[%s4882_s29 + $0x64] sm:$0xf]  ;;  %v4977_v31 = vld [vmem:[%s4882_s29 + $0x68] sm:$0xf]  ;;  %v434_v33 = vshrl.u32 %v3354_v26, 16  ;;  %v3356_v34 = vcombine.low %v220_v29, %v221_v7 }
  0x65   : > { %5957 = vst [vmem:[#allocation19_spill] sm:$0xff] %v4966_v27  ;;  %v4984_v35 = vld [vmem:[%s4882_s29 + $0x74] sm:$0xf]  ;;  %v4989_v37 = vcombine.low %v4974_v30, %v4977_v31  ;;  %v4992_v38 = vld [vmem:[%s4882_s29 + $0x78] sm:$0xf]  ;;  %v437_v40 = vshll.u32 %v3354_v26, 16 }
  0x66   : > { %v4481_v39 = vld [vmem:[%s4882_s29 + $0x1c] ss:$0 sps:$4 sm:$0xff]   ;;  %v451_v44 = vshrl.u32 %v3356_v34, 16  ;;  %v454_v45 = vshll.u32 %v3356_v34, 16  ;;  %v5001_v46 = vcombine.low %v4984_v35, %v4992_v38  ;;  %vm1134_vm2 = vsmask.f32 7424 }
  0x67   : > { %5958 = vst [vmem:[#allocation20_spill] sm:$0xff] %v4989_v37  ;;  %v5003_v47 = vrot.slane %v434_v33, 3  ;;  %v1146_v48 = vshrl.u32 %v4905_v9, 16  ;;  %v1150_v49 = vrot.slane %v1148_v36, 1  ;;  %v1153_v50 = vshll.u32 %v4481_v39, 16  ;;  %s5677_s18 = scalar_lea.vmem [#allocation7], %s4400_s7 }
  0x68   : > { %5959 = vst [vmem:[#allocation21_spill] sm:$0xff] %v5001_v46  ;;  %v5007_v51 = vld [vmem:[%s4882_s29 + $0x84] sm:$0xf]  ;;  %v5010_v52 = vld [vmem:[%s4882_s29 + $0x88] sm:$0xf]  ;;  %v5012_v53 = vrot.slane %v437_v40, 4 }
  0x69   : > { %3831 = vmatmul.mubr.msk.bf16.gmra.mrb[4].mxu1 %vm708_vm1, %v4935_v19  ;;  %v5014_v54 = vrot.slane %v442_v41, 3  ;;  %v5016_v55 = vrot.slane %v445_v42, 4  ;;  %v459_v56 = vshrl.u32 %v3357_v43, 16  ;;  %v5020_v57 = vrot.slane %v451_v44, 3  ;;  %v4483_v58 = vld [vmem:[%s4882_s29 + $0x2c] ss:$0 sps:$4 sm:$0xff]  }
  0x6a   : > { %3834 = vmatprep.mubr.msk.bf16.mxu1 %vm708_vm1, %v4952_v23  ;;  %3967 = vmatmul.mubr.msk.bf16.gmra.mrb[4].mxu0 %vm708_vm1, %v4952_v23  ;;  %v1159_v59 = vshll.u32 %v4929_v16, 16  ;;  %v5028_v60 = vcombine.low %v5007_v51, %v5010_v52  ;;  %v1151_v61 = vor.u32 %v1150_v49, %v1146_v48  ;;  %v1155_v62 = vrot.slane %v1153_v50, 1  ;;  %v4485_v63 = vld [vmem:[%s4882_s29 + $0x3c] ss:$0 sps:$4 sm:$0xff]   ;;  %v5035_v4 = vld [vmem:[%s4882_s29 + $0x94] sm:$0xf] }
  0x6b   : > { %3970 = vmatprep.mubr.msk.bf16.mxu0 %vm708_vm1, %v4966_v27  ;;  %v1170_v0 = vshll.u32 %v4935_v19, 16  ;;  %v456_v1 = vrot.slane %v454_v45, 4  ;;  %v462_v2 = vshll.u32 %v3357_v43, 16  ;;  %v5038_v5 = vld [vmem:[%s4882_s29 + $0x98] sm:$0xf]  ;;  %v461_v7 = vrot.slane %v459_v56, 3 }
  0x6c   : > { %5960 = vst [vmem:[#allocation22_spill] sm:$0xff] %v5028_v60  ;;  %v1157_v8 = vshrl.u32 %v4929_v16, 16  ;;  %v5044_v9 = vld [vmem:[%s4882_s29 + $0xa4] sm:$0xf]  ;;  %v5046_v10 = vld [vmem:[#allocation5 + $0x8] sm:$0xf]  ;;  %v5054_v22 = vsel %vm1134_vm2, %v1151_v61, %v1155_v62  ;;  %v5059_v34 = vcombine.low %v5035_v4, %v5038_v5  ;;  %v440_v45 = vor.u32 %v5012_v53, %v5003_v47 }
  0x6d   : > { %v1161_v11 = vrot.slane %v1159_v59, 1  ;;  %v1164_v17 = vshll.u32 %v4483_v58, 16  ;;  %v5049_v18 = vld [vmem:[%s4882_s29 + $0xa8] sm:$0xf]  ;;  %4390 = vmatprep.subr.msk.bf16.mxu1 %vm757_vm0, %v5046_v10  ;;  %5961 = vst [vmem:[#allocation23_spill] sm:$0xff] %v5054_v22  ;;  %v1168_v26 = vshrl.u32 %v4935_v19, 16  ;;  %v448_v50 = vor.u32 %v5016_v55, %v5014_v54 }
  0x6e   : > { %v1172_v29 = vrot.slane %v1170_v0, 1  ;;  %v1175_v32 = vshll.u32 %v4485_v63, 16  ;;  %v464_v33 = vrot.slane %v462_v2, 4  ;;  %5962 = vst [vmem:[#allocation24_spill] sm:$0xff] %v5059_v34  ;;  %v4487_v36 = vld [vmem:[%s4882_s29 + $0x4c] ss:$0 sps:$4 sm:$0xff]   ;;  %v5067_v40 = vcombine.low %v5044_v9, %v5049_v18 }
  0x6f   : > { %v1181_v39 = vshll.u32 %v4952_v23, 16  ;;  %vm432_vm3 = vsmask.f32 4352  ;;  %v1162_v41 = vor.u32 %v1161_v11, %v1157_v8  ;;  %v1166_v42 = vrot.slane %v1164_v17, 1  ;;  %v4489_v43 = vld [vmem:[%s4882_s29 + $0x5c] ss:$0 sps:$4 sm:$0xff]  }
  0x70   : > { %5963 = vst [vmem:[#allocation25_spill] sm:$0xff] %v5067_v40  ;;  %v1192_v44 = vshll.u32 %v4966_v27, 16  ;;  %v1173_v48 = vor.u32 %v1172_v29, %v1168_v26  ;;  %v1177_v49 = vrot.slane %v1175_v32, 1  ;;  %v457_v56 = vor.u32 %v456_v1, %v5020_v57  ;;  %v5081_v58 = vld [vmem:[%s4882_s29 + $0xb4] sm:$0xf]  ;;  %s4401_s20 = smul.u32 4608, %s4752_s16 }
  0x71   : > { %3835 = vmatmul.mubr.msk.bf16.gmra.mrb[8].mxu1 %vm708_vm1, %v4966_v27  ;;  %v1179_v59 = vshrl.u32 %v4952_v23, 16  ;;  %v1183_v61 = vrot.slane %v1181_v39, 1  ;;  %v1186_v62 = vshll.u32 %v4487_v36, 16  ;;  %v465_v63 = vor.u32 %v464_v33, %v461_v7  ;;  %v5087_v47 = vld [vmem:[%s4882_s29 + $0xb8] sm:$0xf]  ;;  %s3218_s8 = sshll.u32 %s5677_s18, 4  ;;  %s5816_s8 = int_to_ptr.vmem [resolvable:$true] %s3218_s8 }
  0x72   : > { %3838 = vmatprep.mubr.msk.bf16.mxu1 %vm708_vm1, %v4989_v37  ;;  %3971 = vmatmul.mubr.msk.bf16.gmra.mrb[8].mxu0 %vm708_vm1, %v4989_v37  ;;  %v5090_v53 = vld [vmem:[%s4882_s29 + $0xc4] sm:$0xf]  ;;  %v5093_v54 = vld [vmem:[%s4882_s29 + $0xc8] sm:$0xf]  ;;  %v5097_v55 = vcombine.low %v4918_v13, %v4918_v13  ;;  %v5100_v57 = vsel %vm1134_vm2, %v1162_v41, %v1166_v42  ;;  %v1190_v0 = vshrl.u32 %v4966_v27, 16  ;;  %v1194_v1 = vrot.slane %v1192_v44, 1  ;;  %s5810_s4 = scalar_lea.hbm %s5900_s2, %s4401_s20 }
  0x73   : > { %3974 = vmatprep.mubr.msk.bf16.mxu0 %vm708_vm1, %v5001_v46  ;;  %5964 = vst [vmem:[#allocation26_spill] sm:$0xff] %v5100_v57  ;;  %v1197_v2 = vshll.u32 %v4489_v43, 16  ;;  %v2211_v7 = vsel %vm757_vm0, %v4968_v28, 0  ;;  %v5106_v8 = vsel %vm1134_vm2, %v1173_v48, %v1177_v49  ;;  %v5109_v11 = vld [vmem:[%s4882_s29 + $0xd4] sm:$0xf]  ;;  %v5112_v13 = vsel %vm432_vm3, %v440_v45, %v448_v50  ;;  %s3200_s5 = scalar_lea.sflag [#allocation4], %s4876_s6 }
  0x74   : > { %5965 = vst [vmem:[#allocation27_spill] sm:$0xff] %v5106_v8  ;;  %v5116_v17 = vcombine.low %v4925_v15, %v4925_v15  ;;  %v5120_v26 = vcombine.low %v5081_v58, %v5087_v47  ;;  %v1184_v29 = vor.u32 %v1183_v61, %v1179_v59  ;;  %v1188_v32 = vrot.slane %v1186_v62, 1  ;;  %v4491_v28 = vld [vmem:[%s4882_s29 + $0x6c] ss:$0 sps:$4 sm:$0xff]   ;;  %v5133_v36 = vld [vmem:[%s4882_s29 + $0xd8] sm:$0xf] }
  0x75   : > { %v5124_v33 = vsel %vm432_vm3, %v457_v56, %v465_v63  ;;  %v5130_v15 = vcombine.low %v5090_v53, %v5093_v54  ;;  %v1203_v39 = vshll.u32 %v4989_v37, 16  ;;  %v4493_v41 = vld [vmem:[%s4882_s29 + $0x7c] ss:$0 sps:$4 sm:$0xff]   ;;  %v1214_v42 = vshll.u32 %v5001_v46, 16  ;;  %v5146_v49 = vld [vmem:[%s4882_s29 + $0xe4] sm:$0xf] }
  0x76   : > { %5966 = vst [vmem:[#allocation28_spill] sm:$0xff] %v5120_v26  ;;  %v5140_v43 = vcombine.low %v4941_v21, %v4941_v21  ;;  %v1195_v44 = vor.u32 %v1194_v1, %v1190_v0  ;;  %v1199_v45 = vrot.slane %v1197_v2, 1  ;;  %v1201_v48 = vshrl.u32 %v4989_v37, 16  ;;  %v5149_v50 = vld [vmem:[%s4882_s29 + $0xe8] sm:$0xf]  ;;  %s4599_s11 = scalar_lea.vmem %s5816_s8, 4608 }
  0x77   : > { %5967 = vst [vmem:[#allocation29_spill] sm:$0xff] %v5130_v15  ;;  %v5153_v56 = vcombine.low %v4958_v25, %v4958_v25  ;;  %v4495_v59 = vld [vmem:[%s4882_s29 + $0x8c] ss:$0 sps:$4 sm:$0xff]   ;;  %v1225_v21 = vshll.u32 %v5028_v60, 16  ;;  %v4496_v61 = vld [vmem:[%s4882_s29 + $0x9c] ss:$0 sps:$4 sm:$0xff]   ;;  %v5161_v63 = vcombine.low %v4977_v31, %v4977_v31  ;;  %v5165_v0 = vcombine.low %v4992_v38, %v4992_v38  ;;  %p4600_p4 = scmp.ne.s32.totalorder %s5816_s8, %s4599_s11 }
  0x78   : > { %v1236_v62 = vshll.u32 %v5059_v34, 16  ;;  %v5170_v25 = vsel %vm1134_vm2, %v1184_v29, %v1188_v32  ;;  %v5174_v1 = vcombine.low %v5109_v11, %v5133_v36  ;;  %v1208_v2 = vshll.u32 %v4491_v28, 16  ;;  %v224_v23 = vld [vmem:[%s4882_s29 + $0x20] sm:$0xf]  ;;  %s4707_s27 = smov [#allocation7]  }
  0x79   : > { %3839 = vmatmul.mubr.msk.bf16.gmra.mrb[12].mxu1 %vm708_vm1, %v5001_v46  ;;  %5968 = vst [vmem:[#allocation30_spill] sm:$0xff] %v5170_v25  ;;  %v1247_v3 = vshll.u32 %v5067_v40, 16  ;;  %v1205_v31 = vrot.slane %v1203_v39, 1  ;;  %v1212_v38 = vshrl.u32 %v5001_v46, 16  ;;  %v1216_v37 = vrot.slane %v1214_v42, 1  ;;  %p4601_p6 = pnand %p4600_p4, %p4825_p12  ;;  %s4603_s22 = sshll.u32 %s4707_s27, 4  ;;  %s4604_s22 = int_to_ptr.vmem [resolvable:$false] %s4603_s22 }
  0x7a   : > { %3842 = vmatprep.mubr.msk.bf16.mxu1 %vm708_vm1, %v5028_v60  ;;  %3975 = vmatmul.mubr.msk.bf16.gmra.mrb[12].mxu0 %vm708_vm1, %v5028_v60  ;;  %v1219_v27 = vshll.u32 %v4493_v41, 16  ;;  %v5183_v29 = vsel %vm1134_vm2, %v1195_v44, %v1199_v45  ;;  %v5187_v32 = vcombine.low %v5146_v49, %v5149_v50  ;;  %v1223_v28 = vshrl.u32 %v5028_v60, 16  ;;  %v5191_v42 = vld [vmem:[#allocation5 + $0x1c] sm:$0xf]  ;;  %s4605_s23 = scalar_lea.vmem %s4604_s22, 9216  ;;  %p4606_p10 = scmp.lt.s32.totalorder %s5816_s8, %s4604_s22 }
  0x7b   : > { %3996 = vmatprep.mubr.msk.bf16.mxu0 %vm708_vm1, %v5054_v22  ;;  %5969 = vst [vmem:[#allocation31_spill] sm:$0xff] %v5183_v29  ;;  %v1234_v19 = vshrl.u32 %v5059_v34, 16  ;;  %v1227_v16 = vrot.slane %v1225_v21, 1  ;;  %v1238_v39 = vrot.slane %v1236_v62, 1  ;;  %v1241_v46 = vshll.u32 %v4496_v61, 16  ;;  %5970 = vst [vmem:[#allocation32_spill] sm:$0xff] %v5191_v42  ;;  %p4602_p8 = pneg %p4601_p6  ;;  %p4607_p11 = scmp.lt.s32.totalorder %s4605_s23, %s4599_s11 }
  0x7c   : > { %v1245_v41 = vshrl.u32 %v5067_v40, 16  ;;  %v1249_v44 = vrot.slane %v1247_v3, 1  ;;  %v1206_v21 = vor.u32 %v1205_v31, %v1201_v48  ;;  %v1217_v62 = vor.u32 %v1216_v37, %v1212_v38  ;;  %v5205_v3 = vld [vmem:[%s4882_s29 + $0xf8] sm:$0xf]  ;;  %v232_v38 = vld [vmem:[%s4882_s29 + $0x40] sm:$0xf] }
  0x7d   : > { %v1221_v61 = vrot.slane %v1219_v27, 1  ;;  %5972 = vst [vmem:[#allocation34_spill] sm:$0xff] %v5205_v3  ;;  %v5216_v27 = vcombine.low %v5038_v5, %v5038_v5  ;;  %v1228_v37 = vor.u32 %v1227_v16, %v1223_v28  ;;  %v1243_v31 = vrot.slane %v1241_v46, 1  ;;  %p4608_p3 = por %p4607_p11, %p4606_p10 }
  0x7e   : > { %v1250_v60 = vor.u32 %v1249_v44, %v1245_v41  ;;  %v1278_v6 = vshrl.u32 %v5174_v1, 16 }
  0x7f   : > { %v5227_v5 = vsel %vm1134_vm2, %v1217_v62, %v1221_v61  ;;  %v493_v62 = vshrl.u32 %v5116_v17, 16  ;;  %v4503_v61 = vld [vmem:[%s4882_s29 + $0xcc] ss:$0 sps:$4 sm:$0xff]   ;;  %p4609_p7 = pnand %p4608_p3, %p4602_p8 }
  0x80   : > { %5974 = vst [vmem:[#allocation36_spill] sm:$0xff] %v5227_v5 }
  0x81   : > { %3843 = vmatmul.mubr.msk.bf16.gmra.mrb[16].mxu1 %vm708_vm1, %v5059_v34  ;;  %v5200_v34 = vld [vmem:[%s4882_s29 + $0xf4] sm:$0xf] }
  0x82   : > { %3846 = vmatprep.mubr.msk.bf16.mxu1 %vm708_vm1, %v5067_v40  ;;  %3997 = vmatmul.mubr.msk.bf16.vlgmr.msra.gmra.mrb[0].mxu0 %vm708_vm1, %v5100_v57  ;;  %v3358_v57 = vcombine.low %v224_v23, %v4915_v12  ;;  %5971 = vst [vmem:[#allocation33_spill] sm:$0xff] %v5200_v34  ;;  %v476_v12 = vshrl.u32 %v5097_v55, 16  ;;  %v479_v23 = vshll.u32 %v5097_v55, 16  ;;  %v5212_v40 = vcombine.low %v5010_v52, %v5010_v52 }
  0x83   : > { %4029 = vmatpush3.bf16.msra.mxu0 %v2211_v7  ;;  %4000 = vmatprep.mubr.msk.bf16.mxu0 %vm708_vm1, %v5106_v8  ;;  %v4497_v7 = vld [vmem:[%s4882_s29 + $0xac] ss:$0 sps:$4 sm:$0xff]   ;;  %v1230_v8 = vshll.u32 %v4495_v59, 16  ;;  %v1210_v59 = vrot.slane %v1208_v2, 1  ;;  %v1239_v2 = vor.u32 %v1238_v39, %v1234_v19  ;;  %v5231_v16 = vcombine.low %v5200_v34, %v5205_v3  ;;  %v4500_v19 = vld [vmem:[%s4882_s29 + $0xbc] ss:$0 sps:$4 sm:$0xff]  }
  0x84   : > { %v1252_v45 = vshll.u32 %v4497_v7, 16  ;;  %4396 = vmatprep.subr.msk.bf16.mxu0 %vm757_vm0, %v5191_v42  ;;  %v228_v7 = vld [vmem:[%s4882_s29 + $0x30] sm:$0xf]  ;;  %v481_v28 = vrot.slane %v479_v23, 4  ;;  %v3362_v39 = vcombine.low %v232_v38, %v4938_v20  ;;  %v1263_v20 = vshll.u32 %v4500_v19, 16 }
  0x85   : > { %v1232_v48 = vrot.slane %v1230_v8, 1  ;;  %v5222_v52 = vsel %vm1134_vm2, %v1206_v21, %v1210_v59  ;;  %5975 = vst [vmem:[#allocation37_spill] sm:$0xff] %v5231_v16  ;;  %v3360_v46 = vcombine.low %v228_v7, %v4922_v14  ;;  %v478_v8 = vrot.slane %v476_v12, 3  ;;  %v240_v34 = vld [vmem:[%s4882_s29 + $0x60] sm:$0xf] }
  0x86   : > { %v1254_v55 = vrot.slane %v1252_v45, 1  ;;  %5973 = vst [vmem:[#allocation35_spill] sm:$0xff] %v5222_v52  ;;  %v5244_v44 = vsel %vm1134_vm2, %v1239_v2, %v1243_v31  ;;  %v1256_v45 = vshrl.u32 %v5120_v26, 16  ;;  %v1258_v21 = vshll.u32 %v5120_v26, 16 }
  0x87   : > { %v5241_v41 = vsel %vm1134_vm2, %v1228_v37, %v1232_v48  ;;  %v485_v12 = vshrl.u32 %v3360_v46, 16  ;;  %v488_v23 = vshll.u32 %v3360_v46, 16  ;;  %v496_v7 = vshll.u32 %v5116_v17, 16  ;;  %v236_v37 = vld [vmem:[%s4882_s29 + $0x50] sm:$0xf] }
  0x88   : > { %v5249_v14 = vsel %vm1134_vm2, %v1250_v60, %v1254_v55  ;;  %v482_v60 = vor.u32 %v481_v28, %v478_v8  ;;  %v510_v48 = vshrl.u32 %v5140_v43, 16  ;;  %v1260_v2 = vrot.slane %v1258_v21, 1  ;;  %v4506_v55 = vld [vmem:[%s4882_s29 + $0xdc] ss:$0 sps:$4 sm:$0xff]  }
  0x89   : > { %3847 = vmatmul.mubr.msk.bf16.gmra.mrb[20].mxu1 %vm708_vm1, %v5120_v26  ;;  %v505_v31 = vshll.u32 %v3362_v39, 16  ;;  %v513_v38 = vshll.u32 %v5140_v43, 16  ;;  %v1280_v19 = vshll.u32 %v5174_v1, 16  ;;  %v495_v46 = vrot.slane %v493_v62, 3 }
  0x8a   : > { %3850 = vmatprep.mubr.msk.bf16.mxu1 %vm708_vm1, %v5130_v15  ;;  %4001 = vmatmul.mubr.msk.bf16.gmra.mrb[4].mxu0 %vm708_vm1, %v5170_v25  ;;  %v471_v25 = vshll.u32 %v3358_v57, 16  ;;  %v1267_v8 = vshrl.u32 %v5130_v15, 16  ;;  %v3364_v28 = vcombine.low %v236_v37, %v4955_v24  ;;  %v487_v21 = vrot.slane %v485_v12, 3 }
  0x8b   : > { %4004 = vmatprep.mubr.msk.bf16.mxu0 %vm708_vm1, %v5183_v29  ;;  %v468_v29 = vshrl.u32 %v3358_v57, 16  ;;  %v5237_v57 = vsel %vm757_vm0, %v5046_v10, 0  ;;  %v498_v26 = vrot.slane %v496_v7, 4  ;;  %v1274_v43 = vshll.u32 %v4503_v61, 16 }
  0x8c   : > { %v473_v59 = vrot.slane %v471_v25, 4  ;;  %v502_v25 = vshrl.u32 %v3362_v39, 16  ;;  %v490_v39 = vrot.slane %v488_v23, 4  ;;  %v512_v22 = vrot.slane %v510_v48, 3 }
  0x8d   : > { %v470_v10 = vrot.slane %v468_v29, 3  ;;  %v1269_v29 = vshll.u32 %v5130_v15, 16  ;;  %v507_v3 = vrot.slane %v505_v31, 4  ;;  %v1285_v62 = vshll.u32 %v4506_v55, 16 }
  0x8e   : > { %v519_v15 = vshrl.u32 %v3364_v28, 16  ;;  %v522_v42 = vshll.u32 %v3364_v28, 16  ;;  %v527_v24 = vshrl.u32 %v5153_v56, 16  ;;  %v1261_v61 = vor.u32 %v1260_v2, %v1256_v45  ;;  %v4509_v45 = vld [vmem:[%s4882_s29 + $0xec] ss:$0 sps:$4 sm:$0xff]  }
  0x8f   : > { %v474_v17 = vor.u32 %v473_v59, %v470_v10  ;;  %v515_v10 = vrot.slane %v513_v38, 4  ;;  %v1282_v59 = vrot.slane %v1280_v19, 1  ;;  %v1265_v12 = vrot.slane %v1263_v20, 1  ;;  %v5283_v20 = vld [vmem:[#allocation5 + $0xc] sm:$0xf] }
  0x90   : > { %v491_v23 = vor.u32 %v490_v39, %v487_v21  ;;  %v499_v7 = vor.u32 %v498_v26, %v495_v46  ;;  %v3366_v48 = vcombine.low %v240_v34, %v4974_v30  ;;  %v1287_v55 = vrot.slane %v1285_v62, 1 }
  0x91   : > { %3851 = vmatmul.mubr.msk.bf16.gmra.mrb[24].mxu1 %vm708_vm1, %v5174_v1  ;;  %v5279_v37 = vsel %vm432_vm3, %v474_v17, %v482_v60  ;;  %v1283_v38 = vor.u32 %v1282_v59, %v1278_v6  ;;  %v521_v26 = vrot.slane %v519_v15, 3  ;;  %v524_v2 = vrot.slane %v522_v42, 4  ;;  %v4512_v15 = vld [vmem:[%s4882_s29 + $0xfc] ss:$0 sps:$4 sm:$0xff]   ;;  %v248_v17 = vld [vmem:[%s4882_s29 + $0x80] sm:$0xf] }
  0x92   : > { %3854 = vmatprep.mubr.msk.bf16.mxu1 %vm708_vm1, %v5187_v32  ;;  %4005 = vmatmul.mubr.msk.bf16.gmra.mrb[8].mxu0 %vm708_vm1, %v5222_v52  ;;  %v504_v52 = vrot.slane %v502_v25, 3  ;;  %v1276_v25 = vrot.slane %v1274_v43, 1  ;;  %v529_v60 = vrot.slane %v527_v24, 3  ;;  %v5292_v6 = vsel %vm1134_vm2, %v1261_v61, %v1265_v12  ;;  %v5317_v59 = vld [vmem:[%s4882_s29 + $0x104] sm:$0xf] }
  0x93   : > { %4008 = vmatprep.mubr.msk.bf16.mxu0 %vm708_vm1, %v5227_v5  ;;  %v1271_v5 = vrot.slane %v1269_v29, 1  ;;  %v5295_v30 = vsel %vm432_vm3, %v491_v23, %v499_v7  ;;  %v544_v34 = vshrl.u32 %v5161_v63, 16  ;;  %v1302_v28 = vshll.u32 %v5231_v16, 16  ;;  %v5323_v61 = vld [vmem:[%s4882_s29 + $0x108] sm:$0xf] }
  0x94   : > { %v508_v31 = vor.u32 %v507_v3, %v504_v52  ;;  %v536_v3 = vshrl.u32 %v3366_v48, 16  ;;  %v539_v52 = vshll.u32 %v3366_v48, 16  ;;  %v5313_v39 = vsel %vm1134_vm2, %v1283_v38, %v1287_v55 }
  0x95   : > { %v1272_v29 = vor.u32 %v1271_v5, %v1267_v8  ;;  %v244_v5 = vld [vmem:[%s4882_s29 + $0x70] sm:$0xf]  ;;  %v1296_v8 = vshll.u32 %v4509_v45, 16  ;;  %v525_v43 = vor.u32 %v524_v2, %v521_v26  ;;  %v546_v24 = vrot.slane %v544_v34, 3 }
  0x96   : > { %v3368_v21 = vcombine.low %v244_v5, %v4984_v35  ;;  %v3370_v35 = vcombine.low %v248_v17, %v5007_v51  ;;  %v538_v12 = vrot.slane %v536_v3, 3  ;;  %v541_v23 = vrot.slane %v539_v52, 4  ;;  %v252_v26 = vld [vmem:[%s4882_s29 + $0x90] sm:$0xf]  ;;  %v4516_v17 = vld [vmem:[%s4882_s29 + $0x10c] ss:$0 sps:$4 sm:$0xff]  }
  0x97   : > { %v5301_v42 = vsel %vm1134_vm2, %v1272_v29, %v1276_v25  ;;  %v1307_v29 = vshll.u32 %v4512_v15, 16  ;;  %v1298_v25 = vrot.slane %v1296_v8, 1  ;;  %v1304_v48 = vrot.slane %v1302_v28, 1  ;;  %v256_v28 = vld [vmem:[%s4882_s29 + $0xa0] sm:$0xf] }
  0x98   : > { %v556_v38 = vshll.u32 %v3368_v21, 16  ;;  %v564_v55 = vshll.u32 %v5165_v0, 16  ;;  %v5334_v51 = vcombine.low %v5317_v59, %v5323_v61  ;;  %v578_v45 = vshrl.u32 %v5212_v40, 16 }
  0x99   : > { %3855 = vmatmul.mubr.msk.bf16.gmra.mrb[28].mxu1 %vm708_vm1, %v5231_v16  ;;  %v581_v5 = vshll.u32 %v5212_v40, 16  ;;  %v1309_v15 = vrot.slane %v1307_v29, 1  ;;  %v3372_v8 = vcombine.low %v252_v26, %v5035_v4 }
  0x9a   : > { %3860 = vmatprep.mubr.msk.bf16.mxu1 %vm708_vm1, %v5112_v13  ;;  %v530_v13 = vshll.u32 %v5153_v56, 16  ;;  %4009 = vmatmul.mubr.msk.bf16.gmra.mrb[12].mxu0 %vm708_vm1, %v5241_v41  ;;  %v516_v56 = vor.u32 %v515_v10, %v512_v22  ;;  %v1291_v22 = vshll.u32 %v5187_v32, 16 }
  0x9b   : > { %4012 = vmatprep.mubr.msk.bf16.mxu0 %vm708_vm1, %v5244_v44  ;;  %v590_v29 = vshll.u32 %v3372_v8, 16 }
  0x9c   : > { %v532_v19 = vrot.slane %v530_v13, 4  ;;  %v5308_v46 = vsel %vm432_vm3, %v508_v31, %v516_v56  ;;  %v1293_v62 = vrot.slane %v1291_v22, 1  ;;  %v1300_v13 = vshrl.u32 %v5231_v16, 16 }
  0x9d   : > { %v553_v31 = vshrl.u32 %v3368_v21, 16  ;;  %v561_v56 = vshrl.u32 %v5165_v0, 16  ;;  %v542_v22 = vor.u32 %v541_v23, %v538_v12  ;;  %v558_v21 = vrot.slane %v556_v38, 4 }
  0x9e   : > { %v533_v10 = vor.u32 %v532_v19, %v529_v60  ;;  %v570_v60 = vshrl.u32 %v3370_v35, 16  ;;  %v573_v19 = vshll.u32 %v3370_v35, 16  ;;  %v1305_v3 = vor.u32 %v1304_v48, %v1300_v13 }
  0x9f   : > { %v555_v52 = vrot.slane %v553_v31, 3  ;;  %v566_v16 = vrot.slane %v564_v55, 4  ;;  %v3374_v35 = vcombine.low %v256_v28, %v5044_v9  ;;  %v3375_v12 = vcombine.low %v5049_v18, %v5049_v18  ;;  %v260_v9 = vld [vmem:[%s4882_s29 + $0xb0] sm:$0xf] }
  0xa0   : > { %v5341_v2 = vsel %vm432_vm3, %v525_v43, %v533_v10  ;;  %v1978_v43 = vshll.u32 %v5334_v51, 16  ;;  %v580_v10 = vrot.slane %v578_v45, 3  ;;  %v572_v40 = vrot.slane %v570_v60, 3 }
  0xa1   : > { %3861 = vmatmul.mubr.msk.bf16.vlgmr.msra.gmra.mrb[0].mxu1 %vm708_vm1, %v5124_v33  ;;  %v1983_v23 = vshll.u32 %v4516_v17, 16  ;;  %v598_v48 = vshll.u32 %v5216_v27, 16  ;;  %v559_v31 = vor.u32 %v558_v21, %v555_v52  ;;  %v1976_v38 = vshrl.u32 %v5334_v51, 16 }
  0xa2   : > { %3893 = vmatpush3.bf16.msra.mxu1 %v5237_v57  ;;  %3864 = vmatprep.mubr.msk.bf16.mxu1 %vm708_vm1, %v5279_v37  ;;  %v547_v57 = vshll.u32 %v5161_v63, 16  ;;  %v1289_v63 = vshrl.u32 %v5187_v32, 16  ;;  %v1980_v18 = vrot.slane %v1978_v43, 1  ;;  %v607_v60 = vshll.u32 %v3374_v35, 16 }
  0xa3   : > { %4391 = vmatprep.subr.msk.bf16.mxu1 %vm757_vm0, %v5283_v20  ;;  %4013 = vmatmul.mubr.msk.bf16.gmra.mrb[16].mxu0 %vm708_vm1, %v5249_v14  ;;  %v3377_v52 = vcombine.low %v5087_v47, %v5087_v47 }
  0xa4   : > { %4016 = vmatprep.mubr.msk.bf16.mxu0 %vm708_vm1, %v5292_v6  ;;  %v549_v7 = vrot.slane %v547_v57, 4  ;;  %v1294_v0 = vor.u32 %v1293_v62, %v1289_v63  ;;  %v563_v57 = vrot.slane %v561_v56, 3  ;;  %v575_v63 = vrot.slane %v573_v19, 4 }
  0xa5   : > { %v583_v62 = vrot.slane %v581_v5, 4  ;;  %v612_v19 = vshrl.u32 %v3375_v12, 16  ;;  %v615_v5 = vshll.u32 %v3375_v12, 16  ;;  %v609_v21 = vrot.slane %v607_v60, 4 }
  0xa6   : > { %v550_v34 = vor.u32 %v549_v7, %v546_v24  ;;  %v595_v24 = vshrl.u32 %v5216_v27, 16  ;;  %v5354_v4 = vsel %vm1134_vm2, %v1294_v0, %v1298_v25  ;;  %v587_v7 = vshrl.u32 %v3372_v8, 16  ;;  %v264_v0 = vld [vmem:[%s4882_s29 + $0xc0] sm:$0xf] }
  0xa7   : > { %v5366_v25 = vsel %vm1134_vm2, %v1305_v3, %v1309_v15  ;;  %v567_v56 = vor.u32 %v566_v16, %v563_v57  ;;  %v576_v55 = vor.u32 %v575_v63, %v572_v40  ;;  %v584_v45 = vor.u32 %v583_v62, %v580_v10  ;;  %v268_v62 = vld [vmem:[%s4882_s29 + $0xd0] sm:$0xf] }
  0xa8   : > { %v5357_v13 = vsel %vm432_vm3, %v542_v22, %v550_v34  ;;  %v597_v26 = vrot.slane %v595_v24, 3  ;;  %v604_v27 = vshrl.u32 %v3374_v35, 16  ;;  %v589_v22 = vrot.slane %v587_v7, 3 }
  0xa9   : > { %3865 = vmatmul.mubr.msk.bf16.gmra.mrb[4].mxu1 %vm708_vm1, %v5295_v30  ;;  %v592_v34 = vrot.slane %v590_v29, 4  ;;  %v600_v15 = vrot.slane %v598_v48, 4  ;;  %v3376_v16 = vcombine.low %v260_v9, %v5081_v58  ;;  %v1985_v3 = vrot.slane %v1983_v23, 1 }
  0xaa   : > { %3868 = vmatprep.mubr.msk.bf16.mxu1 %vm708_vm1, %v5308_v46  ;;  %v3379_v57 = vcombine.low %v5093_v54, %v5093_v54  ;;  %v5381_v17 = vsel %vm432_vm3, %v559_v31, %v567_v56  ;;  %v1981_v8 = vor.u32 %v1980_v18, %v1976_v38  ;;  %v5384_v28 = vsel %vm432_vm3, %v576_v55, %v584_v45  ;;  %v5398_v31 = vld [vmem:[%s4882_s29 + $0x118] sm:$0xf] }
  0xab   : > { %4017 = vmatmul.mubr.msk.bf16.gmra.mrb[20].mxu0 %vm708_vm1, %v5301_v42  ;;  %v3378_v58 = vcombine.low %v264_v0, %v5090_v53  ;;  %v606_v47 = vrot.slane %v604_v27, 3  ;;  %v614_v43 = vrot.slane %v612_v19, 3  ;;  %v617_v54 = vrot.slane %v615_v5, 4  ;;  %v5393_v53 = vld [vmem:[%s4882_s29 + $0x114] sm:$0xf] }
  0xac   : > { %4020 = vmatprep.mubr.msk.bf16.mxu0 %vm708_vm1, %v5313_v39  ;;  %v593_v10 = vor.u32 %v592_v34, %v589_v22  ;;  %v601_v40 = vor.u32 %v600_v15, %v597_v26  ;;  %v621_v63 = vshrl.u32 %v3376_v16, 16  ;;  %v624_v24 = vshll.u32 %v3376_v16, 16  ;;  %v272_v27 = vld [vmem:[%s4882_s29 + $0xe0] sm:$0xf] }
  0xad   : > { %v629_v35 = vshrl.u32 %v3377_v52, 16  ;;  %v632_v12 = vshll.u32 %v3377_v52, 16  ;;  %v638_v23 = vshrl.u32 %v3378_v58, 16  ;;  %v641_v7 = vshll.u32 %v3378_v58, 16 }
  0xae   : > { %v646_v29 = vshrl.u32 %v3379_v57, 16  ;;  %v649_v48 = vshll.u32 %v3379_v57, 16  ;;  %v5401_v56 = vsel %vm1134_vm2, %v1981_v8, %v1985_v3  ;;  %v610_v38 = vor.u32 %v609_v21, %v606_v47 }
  0xaf   : > { %v618_v9 = vor.u32 %v617_v54, %v614_v43  ;;  %v5405_v18 = vcombine.low %v5393_v53, %v5398_v31  ;;  %v5408_v55 = vsel %vm432_vm3, %v593_v10, %v601_v40  ;;  %v623_v45 = vrot.slane %v621_v63, 3 }
  0xb0   : > { %v3381_v26 = vcombine.low %v5133_v36, %v5133_v36  ;;  %v626_v60 = vrot.slane %v624_v24, 4  ;;  %v631_v19 = vrot.slane %v629_v35, 3  ;;  %v634_v5 = vrot.slane %v632_v12, 4 }
  0xb1   : > { %3869 = vmatmul.mubr.msk.bf16.gmra.mrb[8].mxu1 %vm708_vm1, %v5341_v2  ;;  %v3380_v0 = vcombine.low %v268_v62, %v5109_v11  ;;  %v640_v22 = vrot.slane %v638_v23, 3  ;;  %v643_v34 = vrot.slane %v641_v7, 4  ;;  %v648_v15 = vrot.slane %v646_v29, 3  ;;  %v276_v62 = vld [vmem:[%s4882_s29 + $0xf0] sm:$0xf] }
  0xb2   : > { %3872 = vmatprep.mubr.msk.bf16.mxu1 %vm708_vm1, %v5357_v13  ;;  %v651_v16 = vrot.slane %v649_v48, 4  ;;  %v5419_v3 = vsel %vm432_vm3, %v610_v38, %v618_v9  ;;  %v3382_v36 = vcombine.low %v272_v27, %v5146_v49  ;;  %v3383_v52 = vcombine.low %v5149_v50, %v5149_v50  ;;  %v5976_v50 = vld [vmem:[#allocation32_spill] sm:$0xff]  ;;  %v5431_v29 = vld [vmem:[#allocation5 + $0x20] sm:$0xf] }
  0xb3   : > { %4021 = vmatmul.mubr.msk.bf16.gmra.mrb[24].mxu0 %vm708_vm1, %v5354_v4  ;;  %v655_v11 = vshrl.u32 %v3380_v0, 16  ;;  %v658_v57 = vshll.u32 %v3380_v0, 16  ;;  %v663_v8 = vshrl.u32 %v3381_v26, 16  ;;  %v666_v58 = vshll.u32 %v3381_v26, 16  ;;  %v5977_v9 = vld [vmem:[#allocation33_spill] sm:$0xff]  ;;  %v5978_v26 = vld [vmem:[#allocation34_spill] sm:$0xff] }
  0xb4   : > { %4024 = vmatprep.mubr.msk.bf16.mxu0 %vm708_vm1, %v5366_v25  ;;  %v627_v47 = vor.u32 %v626_v60, %v623_v45  ;;  %v635_v21 = vor.u32 %v634_v5, %v631_v19  ;;  %v644_v43 = vor.u32 %v643_v34, %v640_v22  ;;  %v652_v54 = vor.u32 %v651_v16, %v648_v15 }
  0xb5   : > { %v672_v10 = vshrl.u32 %v3382_v36, 16  ;;  %v675_v49 = vshll.u32 %v3382_v36, 16  ;;  %v680_v40 = vshrl.u32 %v3383_v52, 16  ;;  %v683_v63 = vshll.u32 %v3383_v52, 16 }
  0xb6   : > { %v2412_v24 = vsel %vm757_vm0, %v5976_v50, 0  ;;  %v657_v35 = vrot.slane %v655_v11, 3  ;;  %v660_v12 = vrot.slane %v658_v57, 4  ;;  %v665_v23 = vrot.slane %v663_v8, 3  ;;  %v5979_v11 = vld [vmem:[#allocation15_spill] sm:$0xff] }
  0xb7   : > { %v668_v7 = vrot.slane %v666_v58, 4  ;;  %v5436_v48 = vsel %vm432_vm3, %v627_v47, %v635_v21  ;;  %v5439_v38 = vsel %vm432_vm3, %v644_v43, %v652_v54  ;;  %v3384_v45 = vcombine.low %v276_v62, %v5977_v9  ;;  %v4533_v47 = vld [vmem:[%s4882_s29 + $0xc] ss:$0 sps:$4 sm:$0xff]  }
  0xb8   : > { %v3385_v27 = vcombine.low %v5978_v26, %v5978_v26  ;;  %v674_v60 = vrot.slane %v672_v10, 3  ;;  %v677_v19 = vrot.slane %v675_v49, 4  ;;  %v682_v5 = vrot.slane %v680_v40, 3  ;;  %v5980_v26 = vld [vmem:[#allocation23_spill] sm:$0xff] }
  0xb9   : > { %3873 = vmatmul.mubr.msk.bf16.gmra.mrb[12].mxu1 %vm708_vm1, %v5381_v17  ;;  %v685_v0 = vrot.slane %v683_v63, 4  ;;  %v661_v22 = vor.u32 %v660_v12, %v657_v35  ;;  %v669_v34 = vor.u32 %v668_v7, %v665_v23  ;;  %v689_v15 = vshrl.u32 %v3384_v45, 16 }
  0xba   : > { %3876 = vmatprep.mubr.msk.bf16.mxu1 %vm708_vm1, %v5384_v28  ;;  %v692_v16 = vshll.u32 %v3384_v45, 16  ;;  %v697_v36 = vshrl.u32 %v3385_v27, 16  ;;  %v700_v52 = vshll.u32 %v3385_v27, 16  ;;  %v1137_v57 = vshll.u32 %v5979_v11, 16  ;;  %v280_v27 = vld [vmem:[%s4882_s29 + $0x100] sm:$0xf] }
  0xbb   : > { %4025 = vmatmul.mubr.msk.bf16.gmra.mrb[28].mxu0 %vm708_vm1, %v5401_v56  ;;  %v678_v8 = vor.u32 %v677_v19, %v674_v60  ;;  %v686_v58 = vor.u32 %v685_v0, %v682_v5  ;;  %v5455_v21 = vsel %vm432_vm3, %v661_v22, %v669_v34  ;;  %v691_v43 = vrot.slane %v689_v15, 3  ;;  %v5981_v60 = vld [vmem:[#allocation26_spill] sm:$0xff]  ;;  %v4540_v19 = vld [vmem:[#allocation5 + $0x10] sm:$0xf] }
  0xbc   : > { %4030 = vmatprep.mubr.msk.bf16.mxu0 %vm708_vm1, %v5279_v37  ;;  %v694_v54 = vrot.slane %v692_v16, 4  ;;  %v699_v10 = vrot.slane %v697_v36, 3  ;;  %v702_v49 = vrot.slane %v700_v52, 4  ;;  %v1135_v40 = vshrl.u32 %v5979_v11, 16  ;;  %v284_v16 = vld [vmem:[%s4882_s29 + $0x110] sm:$0xf] }
  0xbd   : > { %v1139_v63 = vrot.slane %v1137_v57, 1  ;;  %v5463_v62 = vsel %vm432_vm3, %v678_v8, %v686_v58  ;;  %v1142_v50 = vshll.u32 %v4533_v47, 16  ;;  %v1580_v45 = vsel %vm757_vm0, %v5283_v20, 0  ;;  %v5982_v36 = vld [vmem:[#allocation27_spill] sm:$0xff]  ;;  %v5983_v52 = vld [vmem:[#allocation30_spill] sm:$0xff] }
  0xbe   : > { %v703_v35 = vor.u32 %v702_v49, %v699_v10  ;;  %v3386_v5 = vcombine.low %v280_v27, %v5317_v59  ;;  %v3387_v0 = vcombine.low %v5323_v61, %v5323_v61  ;;  %v3388_v59 = vcombine.low %v284_v16, %v5393_v53  ;;  %v5984_v53 = vld [vmem:[#allocation31_spill] sm:$0xff]  ;;  %v5987_v27 = vld [vmem:[#allocation16_spill] sm:$0xff]  ;;  %v5995_v16 = vld [vmem:[#allocation25_spill] sm:$0xff] }
  0xbf   : > { %v1140_v12 = vor.u32 %v1139_v63, %v1135_v40  ;;  %v1144_v23 = vrot.slane %v1142_v50, 1  ;;  %v3389_v61 = vcombine.low %v5398_v31, %v5398_v31  ;;  %v5985_v31 = vld [vmem:[#allocation35_spill] sm:$0xff] }
  0xc0   : > { %v1558_v20 = vshrl.u32 %v3386_v5, 16  ;;  %v1561_v22 = vshll.u32 %v3386_v5, 16  ;;  %v1566_v34 = vshrl.u32 %v3387_v0, 16  ;;  %v1569_v15 = vshll.u32 %v3387_v0, 16  ;;  %v5988_v5 = vld [vmem:[#allocation17_spill] sm:$0xff]  ;;  %v5989_v0 = vld [vmem:[#allocation18_spill] sm:$0xff] }
  0xc1   : > { %3877 = vmatmul.mubr.msk.bf16.gmra.mrb[16].mxu1 %vm708_vm1, %v5408_v55  ;;  %v1145_v9 = vsel %vm1134_vm2, %v1140_v12, %v1144_v23  ;;  %v2189_v47 = vshrl.u32 %v3388_v59, 16  ;;  %v2200_v10 = vshll.u32 %v3389_v61, 16 }
  0xc2   : > { %3880 = vmatprep.mubr.msk.bf16.mxu1 %vm708_vm1, %v5419_v3  ;;  %v1560_v11 = vrot.slane %v1558_v20, 3  ;;  %v1563_v57 = vrot.slane %v1561_v22, 4  ;;  %v1568_v8 = vrot.slane %v1566_v34, 3  ;;  %v1571_v58 = vrot.slane %v1569_v15, 4  ;;  %v5990_v20 = vld [vmem:[#allocation19_spill] sm:$0xff]  ;;  %v5991_v22 = vld [vmem:[#allocation20_spill] sm:$0xff] }
  0xc3   : > { %4031 = vmatmul.mubr.msk.bf16.vlgmr.msra.gmra.mrb[0].mxu0 %vm708_vm1, %v5295_v30  ;;  %v2191_v63 = vrot.slane %v2189_v47, 3  ;;  %v5993_v34 = vld [vmem:[#allocation22_spill] sm:$0xff]  ;;  %v5994_v15 = vld [vmem:[#allocation24_spill] sm:$0xff] }
  0xc4   : > { %4063 = vmatpush3.bf16.msra.mxu0 %v2412_v24  ;;  %4034 = vmatprep.mubr.msk.bf16.mxu0 %vm708_vm1, %v5308_v46  ;;  %v695_v24 = vor.u32 %v694_v54, %v691_v43  ;;  %v2192_v43 = vshll.u32 %v3388_v59, 16  ;;  %v2197_v54 = vshrl.u32 %v3389_v61, 16  ;;  %v1564_v49 = vor.u32 %v1563_v57, %v1560_v11  ;;  %v5996_v59 = vld [vmem:[#allocation14_spill] sm:$0xff]  ;;  %v5997_v61 = vld [vmem:[#allocation28_spill] sm:$0xff]  ;;  %v5998_v11 = vld [vmem:[#allocation29_spill] sm:$0xff] }
  0xc5   : > { %4397 = vmatprep.subr.msk.bf16.mxu0 %vm757_vm0, %v5431_v29  ;;  %v1572_v40 = vor.u32 %v1571_v58, %v1568_v8 }
  0xc6   : > { %v5472_v7 = vsel %vm432_vm3, %v695_v24, %v703_v35  ;;  %v2194_v50 = vrot.slane %v2192_v43, 4  ;;  %v2199_v24 = vrot.slane %v2197_v54, 3  ;;  %v2202_v35 = vrot.slane %v2200_v10, 4 }
  0xc7   : > { %v1573_v12 = vsel %vm432_vm3, %v1564_v49, %v1572_v40 }
  0xc8   : > { %v2195_v23 = vor.u32 %v2194_v50, %v2191_v63 }
  0xc9   : > { %3881 = vmatmul.mubr.msk.bf16.gmra.mrb[20].mxu1 %vm708_vm1, %v5436_v48 }
  0xca   : > { %3884 = vmatprep.mubr.msk.bf16.mxu1 %vm708_vm1, %v5439_v38 }
  0xcb   : > { %4035 = vmatmul.mubr.msk.bf16.gmra.mrb[4].mxu0 %vm708_vm1, %v5341_v2 }
  0xcc   : > { %4038 = vmatprep.mubr.msk.bf16.mxu0 %vm708_vm1, %v5357_v13 }
  0xd1   : > { %3885 = vmatmul.mubr.msk.bf16.gmra.mrb[24].mxu1 %vm708_vm1, %v5455_v21 }
  0xd2   : > { %3888 = vmatprep.mubr.msk.bf16.mxu1 %vm708_vm1, %v5463_v62 }
  0xd3   : > { %4039 = vmatmul.mubr.msk.bf16.gmra.mrb[8].mxu0 %vm708_vm1, %v5381_v17 }
  0xd4   : > { %4042 = vmatprep.mubr.msk.bf16.mxu0 %vm708_vm1, %v5384_v28 }
  0xd9   : > { %3889 = vmatmul.mubr.msk.bf16.gmra.mrb[28].mxu1 %vm708_vm1, %v5472_v7 }
  0xda   : > { %3894 = vmatprep.mubr.msk.bf16.mxu1 %vm708_vm1, %v1145_v9  ;;  %v2203_v9 = vor.u32 %v2202_v35, %v2199_v24 }
  0xdb   : > { %4043 = vmatmul.mubr.msk.bf16.gmra.mrb[12].mxu0 %vm708_vm1, %v5408_v55 }
  0xdc   : > { %4046 = vmatprep.mubr.msk.bf16.mxu0 %vm708_vm1, %v5419_v3 }
  0xe1   : > { %3895 = vmatmul.mubr.msk.bf16.vlgmr.msra.gmra.mrb[0].mxu1 %vm708_vm1, %v5980_v26  ;;  %v2204_v26 = vsel %vm432_vm3, %v2195_v23, %v2203_v9 }
  0xe2   : > { %3927 = vmatpush3.bf16.msra.mxu1 %v1580_v45  ;;  %3898 = vmatprep.mubr.msk.bf16.mxu1 %vm708_vm1, %v5981_v60  ;;  %v5986_v45 = vld [vmem:[#allocation36_spill] sm:$0xff] }
  0xe3   : > { %4393 = vmatprep.subr.msk.bf16.mxu1 %vm757_vm0, %v4540_v19  ;;  %4047 = vmatmul.mubr.msk.bf16.gmra.mrb[16].mxu0 %vm708_vm1, %v5436_v48  ;;  %v2624_v19 = vsel %vm757_vm0, %v5431_v29, 0  ;;  %v5992_v29 = vld [vmem:[#allocation21_spill] sm:$0xff] }
  0xe4   : > { %4050 = vmatprep.mubr.msk.bf16.mxu0 %vm708_vm1, %v5439_v38 }
  0xe9   : > { %3899 = vmatmul.mubr.msk.bf16.gmra.mrb[4].mxu1 %vm708_vm1, %v5982_v36 }
  0xea   : > { %3902 = vmatprep.mubr.msk.bf16.mxu1 %vm708_vm1, %v5983_v52 }
  0xeb   : > { %4051 = vmatmul.mubr.msk.bf16.gmra.mrb[20].mxu0 %vm708_vm1, %v5455_v21 }
  0xec   : > { %4054 = vmatprep.mubr.msk.bf16.mxu0 %vm708_vm1, %v5463_v62 }
  0xf1   : > { %3903 = vmatmul.mubr.msk.bf16.gmra.mrb[8].mxu1 %vm708_vm1, %v5984_v53 }
  0xf2   : > { %3906 = vmatprep.mubr.msk.bf16.mxu1 %vm708_vm1, %v5985_v31 }
  0xf3   : > { %4055 = vmatmul.mubr.msk.bf16.gmra.mrb[24].mxu0 %vm708_vm1, %v5472_v7 }
  0xf4   : > { %4058 = vmatprep.mubr.msk.bf16.mxu0 %vm708_vm1, %v1573_v12 }
  0xf9   : > { %3907 = vmatmul.mubr.msk.bf16.gmra.mrb[12].mxu1 %vm708_vm1, %v5986_v45 }
  0xfa   : > { %3910 = vmatprep.mubr.msk.bf16.mxu1 %vm708_vm1, %v5241_v41 }
  0xfb   : > { %4059 = vmatmul.mubr.msk.bf16.gmra.mrb[28].mxu0 %vm708_vm1, %v2204_v26 }
  0xfc   : > { %4064 = vmatprep.mubr.msk.bf16.mxu0 %vm708_vm1, %v5987_v27 }
 0x101   : > { %3911 = vmatmul.mubr.msk.bf16.gmra.mrb[16].mxu1 %vm708_vm1, %v5244_v44 }
 0x102   : > { %3914 = vmatprep.mubr.msk.bf16.mxu1 %vm708_vm1, %v5249_v14 }
 0x103   : > { %4065 = vmatmul.mubr.msk.bf16.vlgmr.msra.gmra.mrb[0].mxu0 %vm708_vm1, %v5988_v5 }
 0x104   : > { %4097 = vmatpush3.bf16.msra.mxu0 %v2624_v19  ;;  %4068 = vmatprep.mubr.msk.bf16.mxu0 %vm708_vm1, %v5989_v0 }
 0x109   : > { %3915 = vmatmul.mubr.msk.bf16.gmra.mrb[20].mxu1 %vm708_vm1, %v5292_v6 }
 0x10a   : > { %3918 = vmatprep.mubr.msk.bf16.mxu1 %vm708_vm1, %v5301_v42 }
 0x10b   : > { %4069 = vmatmul.mubr.msk.bf16.gmra.mrb[4].mxu0 %vm708_vm1, %v5990_v20 }
 0x10c   : > { %4072 = vmatprep.mubr.msk.bf16.mxu0 %vm708_vm1, %v5991_v22 }
 0x111   : > { %3919 = vmatmul.mubr.msk.bf16.gmra.mrb[24].mxu1 %vm708_vm1, %v5313_v39 }
 0x112   : > { %3922 = vmatprep.mubr.msk.bf16.mxu1 %vm708_vm1, %v5354_v4 }
 0x113   : > { %4073 = vmatmul.mubr.msk.bf16.gmra.mrb[8].mxu0 %vm708_vm1, %v5992_v29 }
 0x114   : > { %4076 = vmatprep.mubr.msk.bf16.mxu0 %vm708_vm1, %v5993_v34 }
 0x119   : > { %3923 = vmatmul.mubr.msk.bf16.gmra.mrb[28].mxu1 %vm708_vm1, %v5366_v25 }
 0x11a   : > { %3928 = vmatprep.mubr.msk.bf16.mxu1 %vm708_vm1, %v5124_v33  ;;  %v5999_v33 = vld [vmem:[#allocation37_spill] sm:$0xff] }
 0x11b   : > { %4077 = vmatmul.mubr.msk.bf16.gmra.mrb[12].mxu0 %vm708_vm1, %v5994_v15 }
 0x11c   : > { %4080 = vmatprep.mubr.msk.bf16.mxu0 %vm708_vm1, %v5995_v16 }
 0x121   : > { %3929 = vmatmul.mubr.msk.bf16.vlgmr.msra.gmra.mrb[0].mxu1 %vm708_vm1, %v5279_v37 }
 0x122   : > { %4131 = vmatpush3.bf16.msra.mxu1 %v5996_v59  ;;  %3932 = vmatprep.mubr.msk.bf16.mxu1 %vm708_vm1, %v5295_v30 }
 0x123   : > { %4081 = vmatmul.mubr.msk.bf16.gmra.mrb[16].mxu0 %vm708_vm1, %v5997_v61 }
 0x124   : > { %4084 = vmatprep.mubr.msk.bf16.mxu0 %vm708_vm1, %v5998_v11 }
 0x129   : > { %3933 = vmatmul.mubr.msk.bf16.gmra.mrb[4].mxu1 %vm708_vm1, %v5308_v46 }
 0x12a   : > { %3936 = vmatprep.mubr.msk.bf16.mxu1 %vm708_vm1, %v5341_v2 }
 0x12b   : > { %4085 = vmatmul.mubr.msk.bf16.gmra.mrb[20].mxu0 %vm708_vm1, %v5174_v1 }
 0x12c   : > { %4088 = vmatprep.mubr.msk.bf16.mxu0 %vm708_vm1, %v5187_v32 }
 0x131   : > { %3937 = vmatmul.mubr.msk.bf16.gmra.mrb[8].mxu1 %vm708_vm1, %v5357_v13 }
 0x132   : > { %3940 = vmatprep.mubr.msk.bf16.mxu1 %vm708_vm1, %v5381_v17 }
 0x133   : > { %4089 = vmatmul.mubr.msk.bf16.gmra.mrb[24].mxu0 %vm708_vm1, %v5999_v33 }
 0x134   : > { %4092 = vmatprep.mubr.msk.bf16.mxu0 %vm708_vm1, %v5334_v51 }
 0x139   : > { %3941 = vmatmul.mubr.msk.bf16.gmra.mrb[12].mxu1 %vm708_vm1, %v5384_v28 }
 0x13a   : > { %3944 = vmatprep.mubr.msk.bf16.mxu1 %vm708_vm1, %v5408_v55 }
 0x13b   : > { %4093 = vmatmul.mubr.msk.bf16.gmra.mrb[28].mxu0 %vm708_vm1, %v5405_v18 }
 0x13c   : > { %4098 = vmatprep.mubr.msk.bf16.mxu0 %vm708_vm1, %v5981_v60 }
 0x141   : > { %3945 = vmatmul.mubr.msk.bf16.gmra.mrb[16].mxu1 %vm708_vm1, %v5419_v3 }
 0x142   : > { %3948 = vmatprep.mubr.msk.bf16.mxu1 %vm708_vm1, %v5436_v48 }
 0x143   : > { %4099 = vmatmul.mubr.msk.bf16.vlgmr.msra.gmra.mrb[0].mxu0 %vm708_vm1, %v5982_v36 }
 0x144   : > { %4102 = vmatprep.mubr.msk.bf16.mxu0 %vm708_vm1, %v5983_v52 }
 0x149   : > { %3949 = vmatmul.mubr.msk.bf16.gmra.mrb[20].mxu1 %vm708_vm1, %v5439_v38 }
 0x14a   : > { %3952 = vmatprep.mubr.msk.bf16.mxu1 %vm708_vm1, %v5455_v21 }
 0x14b   : > { %4103 = vmatmul.mubr.msk.bf16.gmra.mrb[4].mxu0 %vm708_vm1, %v5984_v53 }
 0x14c   : > { %4106 = vmatprep.mubr.msk.bf16.mxu0 %vm708_vm1, %v5985_v31 }
 0x151   : > { %3953 = vmatmul.mubr.msk.bf16.gmra.mrb[24].mxu1 %vm708_vm1, %v5463_v62 }
 0x152   : > { %3956 = vmatprep.mubr.msk.bf16.mxu1 %vm708_vm1, %v5472_v7 }
 0x153   : > { %4107 = vmatmul.mubr.msk.bf16.gmra.mrb[8].mxu0 %vm708_vm1, %v5986_v45 }
 0x154   : > { %4110 = vmatprep.mubr.msk.bf16.mxu0 %vm708_vm1, %v5241_v41  ;;  %v4539_v41 = vld [vmem:[%s4882_s29 + $0x11c] ss:$0 sps:$4 sm:$0xff]  }
 0x159   : > { %3957 = vmatmul.mubr.msk.bf16.gmra.mrb[28].mxu1 %vm708_vm1, %v1573_v12 }
 0x15a   : > { %3978 = vmatprep.mubr.msk.bf16.mxu1 %vm708_vm1, %v5994_v15 }
 0x15b   : > { %4111 = vmatmul.mubr.msk.bf16.gmra.mrb[12].mxu0 %vm708_vm1, %v5244_v44  ;;  %v2609_v44 = vshll.u32 %v5405_v18, 16 }
 0x15c   : > { %4114 = vmatprep.mubr.msk.bf16.mxu0 %vm708_vm1, %v5249_v14  ;;  %v2607_v14 = vshrl.u32 %v5405_v18, 16 }
 0x15d   : > { %v2611_v37 = vrot.slane %v2609_v44, 1 }
 0x161   : > { %3979 = vmatmul.mubr.msk.bf16.vlgmr.msra.gmra.mrb[16].mxu1 %vm708_vm1, %v5995_v16 }
 0x162   : > { %3982 = vmatprep.mubr.msk.bf16.mxu1 %vm708_vm1, %v5997_v61 }
 0x163   : > { %4115 = vmatmul.mubr.msk.bf16.gmra.mrb[16].mxu0 %vm708_vm1, %v5292_v6  ;;  %v2614_v6 = vshll.u32 %v4539_v41, 16 }
 0x164   : > { %4118 = vmatprep.mubr.msk.bf16.mxu0 %vm708_vm1, %v5301_v42 }
 0x165   : > { %v2616_v30 = vrot.slane %v2614_v6, 1 }
 0x169   : > { %3983 = vmatmul.mubr.msk.bf16.gmra.mrb[20].mxu1 %vm708_vm1, %v5998_v11 }
 0x16a   : > { %3986 = vmatprep.mubr.msk.bf16.mxu1 %vm708_vm1, %v5174_v1  ;;  %v2612_v1 = vor.u32 %v2611_v37, %v2607_v14 }
 0x16b   : > { %4119 = vmatmul.mubr.msk.bf16.gmra.mrb[20].mxu0 %vm708_vm1, %v5313_v39 }
 0x16c   : > { %4122 = vmatprep.mubr.msk.bf16.mxu0 %vm708_vm1, %v5354_v4 }
 0x171   : > { %3987 = vmatmul.mubr.msk.bf16.gmra.mrb[24].mxu1 %vm708_vm1, %v5187_v32  ;;  %v2617_v32 = vsel %vm1134_vm2, %v2612_v1, %v2616_v30 }
 0x172   : > { %3990 = vmatprep.mubr.msk.bf16.mxu1 %vm708_vm1, %v5999_v33 }
 0x173   : > { %4123 = vmatmul.mubr.msk.bf16.gmra.mrb[24].mxu0 %vm708_vm1, %v5366_v25 }
 0x174   : > { %4126 = vmatprep.mubr.msk.bf16.mxu0 %vm708_vm1, %v5401_v56 }
 0x179   : > { %3991 = vmatmul.mubr.msk.bf16.gmra.mrb[28].mxu1 %vm708_vm1, %v5334_v51 }
 0x17b   : > { %4127 = vmatmul.mubr.msk.bf16.gmra.mrb[28].mxu0 %vm708_vm1, %v2617_v32 }
 0x1f4   : > { %v3930_v42 = vpop.f32.mrb[0].mxu1 }
 0x1f5   : > { %v1616_v46 = vpop.f32.mrb[1].mxu1 }
 0x1f6   : > { %v3931_v39 = vpop.f32.mrb[2].mxu1 }
 0x1f7   : > { %v1619_v2 = vpop.f32.mrb[3].mxu1 }
 0x1fc   : > { %v3934_v4 = vpop.f32.mrb[4].mxu1 }
 0x1fd   : > { %v1632_v13 = vpop.f32.mrb[5].mxu1 }
 0x1fe   : > { %v3935_v17 = vpop.f32.mrb[6].mxu1 }
 0x1ff   : > { %v1635_v25 = vpop.f32.mrb[7].mxu1 }
 0x204   : > { %v5656_v28 = vpop.f32.mrb[8].mxu1 }
 0x205   : > { %v5658_v56 = vpop.f32.mrb[9].mxu1 }
 0x206   : > { %v5660_v18 = vpop.f32.mrb[10].mxu1 }
 0x207   : > { %v5662_v55 = vpop.f32.mrb[11].mxu1 }
 0x20c   : > { %v5664_v51 = vpop.f32.mrb[12].mxu1 }
 0x20d   : > { %v5666_v3 = vpop.f32.mrb[13].mxu1 }
 0x20e   : > { %v5668_v48 = vpop.f32.mrb[14].mxu1 }
 0x20f   : > { %v5670_v38 = vpop.f32.mrb[15].mxu1 }
 0x216   : > { %v4100_v21 = vpop.f32.mrb[0].mxu0 }
 0x217   : > { %v4132_v62 = vadd.f32 %v4100_v21, %v3930_v42  ;;  %v2660_v7 = vpop.f32.mrb[1].mxu0 }
 0x218   : > { %v4133_v60 = vadd.f32 %v2660_v7, %v1616_v46  ;;  %v4101_v36 = vpop.f32.mrb[2].mxu0 }
 0x219   : > { %v2861_v52 = vsel %vm708_vm1, %v4132_v62, 0.0  ;;  %v2933_v57 = vmul.f32 %v4132_v62, %v4132_v62  ;;  %v3641_v8 = vpack.c.bf16 %v4132_v62, %v4132_v62  ;;  %v4134_v58 = vadd.f32 %v4101_v36, %v3931_v39  ;;  %v2663_v47 = vpop.f32.mrb[3].mxu0 }
 0x21a   : > { %v2860_v43 = vsel %vm708_vm1, %v4133_v60, 0.0  ;;  %v2931_v54 = vmul.f32 %v4133_v60, %v4133_v60  ;;  %v3639_v10 = vpack.c.bf16 %v4133_v60, %v4133_v60  ;;  %v4135_v49 = vadd.f32 %v2663_v47, %v1619_v2 }
 0x21b   : > { %v2964_v40 = vsel %vm708_vm1, %v2933_v57, 0.0  ;;  %3604 = vst.msk [vmem:[%s5677_s18 + $0x24] sm:$0xf] %vm3166_vm4, %v3641_v8  ;;  %v2862_v53 = vadd.f32 %v2861_v52, %v2860_v43  ;;  %v2892_v31 = vsel %vm708_vm1, %v4134_v58, 0.0  ;;  %v2934_v63 = vmul.f32 %v4134_v58, %v4134_v58 }
 0x21c   : > { %v2963_v50 = vsel %vm708_vm1, %v2931_v54, 0.0  ;;  %3602 = vst.msk [vmem:[%s5677_s18 + $0x14] sm:$0xf] %vm3166_vm4, %v3639_v10  ;;  %v3642_v24 = vpack.c.bf16 %v4134_v58, %v4134_v58  ;;  %v2891_v35 = vsel %vm708_vm1, %v4135_v49, 0.0  ;;  %v2932_v12 = vmul.f32 %v4135_v49, %v4135_v49 }
 0x21d   : > { %v2965_v23 = vadd.f32 %v2964_v40, %v2963_v50  ;;  %v2995_v9 = vsel %vm708_vm1, %v2934_v63, 0.0  ;;  %v2893_v45 = vadd.f32 %v2892_v31, %v2891_v35  ;;  %v3640_v26 = vpack.c.bf16 %v4135_v49, %v4135_v49 }
 0x21e   : > { %3605 = vst.msk [vmem:[%s5677_s18 + $0x28] sm:$0xf] %vm3166_vm4, %v3642_v24  ;;  %v2994_v27 = vsel %vm708_vm1, %v2932_v12, 0.0  ;;  %v4104_v19 = vpop.f32.mrb[4].mxu0 }
 0x21f   : > { %v2996_v5 = vadd.f32 %v2995_v9, %v2994_v27  ;;  %3603 = vst.msk [vmem:[%s5677_s18 + $0x18] sm:$0xf] %vm3166_vm4, %v3640_v26  ;;  %v4136_v0 = vadd.f32 %v4104_v19, %v3934_v4  ;;  %v2676_v20 = vpop.f32.mrb[5].mxu0 }
 0x220   : > { %v4137_v22 = vadd.f32 %v2676_v20, %v1632_v13  ;;  %v4105_v29 = vpop.f32.mrb[6].mxu0 }
 0x221   : > { %v2937_v34 = vmul.f32 %v4136_v0, %v4136_v0  ;;  %v3645_v15 = vpack.c.bf16 %v4136_v0, %v4136_v0  ;;  %v4138_v16 = vadd.f32 %v4105_v29, %v3935_v17  ;;  %v2679_v59 = vpop.f32.mrb[7].mxu0  ;;  %v2865_v44 = vsel %vm708_vm1, %v4136_v0, 0.0 }
 0x222   : > { %v2863_v61 = vsel %vm708_vm1, %v4137_v22, 0.0  ;;  %v2935_v11 = vmul.f32 %v4137_v22, %v4137_v22  ;;  %v3643_v33 = vpack.c.bf16 %v4137_v22, %v4137_v22  ;;  %v4139_v41 = vadd.f32 %v2679_v59, %v1635_v25 }
 0x223   : > { %3608 = vst.msk [vmem:[%s5677_s18 + $0x44] sm:$0xf] %vm3166_vm4, %v3645_v15  ;;  %v2864_v14 = vadd.f32 %v2863_v61, %v2862_v53  ;;  %v3646_v6 = vpack.c.bf16 %v4138_v16, %v4138_v16  ;;  %v2968_v32 = vsel %vm708_vm1, %v2937_v34, 0.0  ;;  %v2896_v2 = vsel %vm708_vm1, %v4138_v16, 0.0 }
 0x224   : > { %v2966_v37 = vsel %vm708_vm1, %v2935_v11, 0.0  ;;  %3606 = vst.msk [vmem:[%s5677_s18 + $0x34] sm:$0xf] %vm3166_vm4, %v3643_v33  ;;  %v2894_v1 = vsel %vm708_vm1, %v4139_v41, 0.0  ;;  %v2936_v30 = vmul.f32 %v4139_v41, %v4139_v41  ;;  %v3644_v39 = vpack.c.bf16 %v4139_v41, %v4139_v41 }
 0x225   : > { %v2967_v42 = vadd.f32 %v2966_v37, %v2965_v23  ;;  %v2895_v46 = vadd.f32 %v2894_v1, %v2893_v45  ;;  %v2938_v4 = vmul.f32 %v4138_v16, %v4138_v16  ;;  %3609 = vst.msk [vmem:[%s5677_s18 + $0x48] sm:$0xf] %vm3166_vm4, %v3646_v6  ;;  %v2866_v25 = vadd.f32 %v2865_v44, %v2864_v14 }
 0x226   : > { %v2997_v13 = vsel %vm708_vm1, %v2936_v30, 0.0  ;;  %v4108_v17 = vpop.f32.mrb[8].mxu0  ;;  %3607 = vst.msk [vmem:[%s5677_s18 + $0x38] sm:$0xf] %vm3166_vm4, %v3644_v39 }
 0x227   : > { %v2998_v21 = vadd.f32 %v2997_v13, %v2996_v5  ;;  %v4140_v62 = vadd.f32 %v4108_v17, %v5656_v28  ;;  %v2692_v7 = vpop.f32.mrb[9].mxu0  ;;  %v2969_v60 = vadd.f32 %v2968_v32, %v2967_v42  ;;  %v2897_v36 = vadd.f32 %v2896_v2, %v2895_v46 }
 0x228   : > { %v4141_v52 = vadd.f32 %v2692_v7, %v5658_v56  ;;  %v4109_v57 = vpop.f32.mrb[10].mxu0  ;;  %v2999_v28 = vsel %vm708_vm1, %v2938_v4, 0.0 }
 0x229   : > { %v2941_v8 = vmul.f32 %v4140_v62, %v4140_v62  ;;  %v3649_v58 = vpack.c.bf16 %v4140_v62, %v4140_v62  ;;  %v4142_v47 = vadd.f32 %v4109_v57, %v5660_v18  ;;  %v2695_v43 = vpop.f32.mrb[11].mxu0  ;;  %v2869_v53 = vsel %vm708_vm1, %v4140_v62, 0.0 }
 0x22a   : > { %v2867_v54 = vsel %vm708_vm1, %v4141_v52, 0.0  ;;  %v2939_v10 = vmul.f32 %v4141_v52, %v4141_v52  ;;  %v3647_v49 = vpack.c.bf16 %v4141_v52, %v4141_v52  ;;  %v4143_v40 = vadd.f32 %v2695_v43, %v5662_v55 }
 0x22b   : > { %v2972_v56 = vsel %vm708_vm1, %v2941_v8, 0.0  ;;  %3612 = vst.msk [vmem:[%s5677_s18 + $0x64] sm:$0xf] %vm3166_vm4, %v3649_v58  ;;  %v2868_v31 = vadd.f32 %v2867_v54, %v2866_v25  ;;  %v3650_v18 = vpack.c.bf16 %v4142_v47, %v4142_v47  ;;  %v2900_v35 = vsel %vm708_vm1, %v4142_v47, 0.0 }
 0x22c   : > { %v2970_v63 = vsel %vm708_vm1, %v2939_v10, 0.0  ;;  %3610 = vst.msk [vmem:[%s5677_s18 + $0x54] sm:$0xf] %vm3166_vm4, %v3647_v49  ;;  %v2898_v50 = vsel %vm708_vm1, %v4143_v40, 0.0  ;;  %v2940_v24 = vmul.f32 %v4143_v40, %v4143_v40  ;;  %v3000_v23 = vadd.f32 %v2999_v28, %v2998_v21 }
 0x22d   : > { %v2971_v55 = vadd.f32 %v2970_v63, %v2969_v60  ;;  %v2899_v12 = vadd.f32 %v2898_v50, %v2897_v36  ;;  %v2942_v9 = vmul.f32 %v4142_v47, %v4142_v47  ;;  %3613 = vst.msk [vmem:[%s5677_s18 + $0x68] sm:$0xf] %vm3166_vm4, %v3650_v18  ;;  %v3648_v26 = vpack.c.bf16 %v4143_v40, %v4143_v40 }
 0x22e   : > { %v3001_v45 = vsel %vm708_vm1, %v2940_v24, 0.0  ;;  %v4112_v27 = vpop.f32.mrb[12].mxu0  ;;  %v2870_v19 = vadd.f32 %v2869_v53, %v2868_v31 }
 0x22f   : > { %v3002_v5 = vadd.f32 %v3001_v45, %v3000_v23  ;;  %v4144_v0 = vadd.f32 %v4112_v27, %v5664_v51  ;;  %v2708_v20 = vpop.f32.mrb[13].mxu0  ;;  %v2973_v22 = vadd.f32 %v2972_v56, %v2971_v55  ;;  %v2901_v29 = vadd.f32 %v2900_v35, %v2899_v12  ;;  %3611 = vst.msk [vmem:[%s5677_s18 + $0x58] sm:$0xf] %vm3166_vm4, %v3648_v26 }
 0x230   : > { %v4145_v34 = vadd.f32 %v2708_v20, %v5666_v3  ;;  %v4113_v15 = vpop.f32.mrb[14].mxu0  ;;  %v3003_v6 = vsel %vm708_vm1, %v2942_v9, 0.0 }
 0x231   : > { %v2945_v16 = vmul.f32 %v4144_v0, %v4144_v0  ;;  %v3653_v59 = vpack.c.bf16 %v4144_v0, %v4144_v0  ;;  %v4146_v61 = vadd.f32 %v4113_v15, %v5668_v48  ;;  %v2711_v11 = vpop.f32.mrb[15].mxu0  ;;  %v2873_v1 = vsel %vm708_vm1, %v4144_v0, 0.0 }
 0x232   : > { %v2871_v41 = vsel %vm708_vm1, %v4145_v34, 0.0  ;;  %v2943_v44 = vmul.f32 %v4145_v34, %v4145_v34  ;;  %v3651_v51 = vpack.c.bf16 %v4145_v34, %v4145_v34  ;;  %v4147_v14 = vadd.f32 %v2711_v11, %v5670_v38 }
 0x233   : > { %v2976_v3 = vsel %vm708_vm1, %v2945_v16, 0.0  ;;  %3616 = vst.msk [vmem:[%s5677_s18 + $0x84] sm:$0xf] %vm3166_vm4, %v3653_v59  ;;  %v2872_v30 = vadd.f32 %v2871_v41, %v2870_v19  ;;  %v3654_v42 = vpack.c.bf16 %v4146_v61, %v4146_v61  ;;  %v2904_v4 = vsel %vm708_vm1, %v4146_v61, 0.0 }
 0x234   : > { %v3980_v33 = vpop.f32.mrb[16].mxu1  ;;  %v2974_v32 = vsel %vm708_vm1, %v2943_v44, 0.0  ;;  %3614 = vst.msk [vmem:[%s5677_s18 + $0x74] sm:$0xf] %vm3166_vm4, %v3651_v51  ;;  %v2902_v46 = vsel %vm708_vm1, %v4147_v14, 0.0  ;;  %v2944_v38 = vmul.f32 %v4147_v14, %v4147_v14  ;;  %v3004_v17 = vadd.f32 %v3003_v6, %v3002_v5 }
 0x235   : > { %v1881_v37 = vpop.f32.mrb[17].mxu1  ;;  %v2975_v2 = vadd.f32 %v2974_v32, %v2973_v22  ;;  %v2903_v13 = vadd.f32 %v2902_v46, %v2901_v29  ;;  %v2946_v25 = vmul.f32 %v4146_v61, %v4146_v61  ;;  %3617 = vst.msk [vmem:[%s5677_s18 + $0x88] sm:$0xf] %vm3166_vm4, %v3654_v42  ;;  %v3652_v62 = vpack.c.bf16 %v4147_v14, %v4147_v14 }
 0x236   : > { %v3981_v48 = vpop.f32.mrb[18].mxu1  ;;  %v3005_v21 = vsel %vm708_vm1, %v2944_v38, 0.0  ;;  %v4116_v7 = vpop.f32.mrb[16].mxu0  ;;  %v2874_v60 = vadd.f32 %v2873_v1, %v2872_v30 }
 0x237   : > { %v1884_v39 = vpop.f32.mrb[19].mxu1  ;;  %v3006_v36 = vadd.f32 %v3005_v21, %v3004_v17  ;;  %v4148_v52 = vadd.f32 %v4116_v7, %v3980_v33  ;;  %v2724_v57 = vpop.f32.mrb[17].mxu0  ;;  %v2977_v8 = vadd.f32 %v2976_v3, %v2975_v2  ;;  %v2905_v58 = vadd.f32 %v2904_v4, %v2903_v13  ;;  %3615 = vst.msk [vmem:[%s5677_s18 + $0x78] sm:$0xf] %vm3166_vm4, %v3652_v62 }
 0x238   : > { %v4149_v47 = vadd.f32 %v2724_v57, %v1881_v37  ;;  %v4117_v43 = vpop.f32.mrb[18].mxu0  ;;  %v3007_v50 = vsel %vm708_vm1, %v2946_v25, 0.0 }
 0x239   : > { %v2949_v54 = vmul.f32 %v4148_v52, %v4148_v52  ;;  %v3657_v10 = vpack.c.bf16 %v4148_v52, %v4148_v52  ;;  %v4150_v49 = vadd.f32 %v4117_v43, %v3981_v48  ;;  %v2727_v40 = vpop.f32.mrb[19].mxu0  ;;  %v2877_v24 = vsel %vm708_vm1, %v4148_v52, 0.0 }
 0x23a   : > { %v2875_v53 = vsel %vm708_vm1, %v4149_v47, 0.0  ;;  %v2947_v56 = vmul.f32 %v4149_v47, %v4149_v47  ;;  %v3655_v31 = vpack.c.bf16 %v4149_v47, %v4149_v47  ;;  %v4151_v63 = vadd.f32 %v2727_v40, %v1884_v39 }
 0x23b   : > { %v2980_v55 = vsel %vm708_vm1, %v2949_v54, 0.0  ;;  %3620 = vst.msk [vmem:[%s5677_s18 + $0xa4] sm:$0xf] %vm3166_vm4, %v3657_v10  ;;  %v2876_v35 = vadd.f32 %v2875_v53, %v2874_v60  ;;  %v3658_v9 = vpack.c.bf16 %v4150_v49, %v4150_v49  ;;  %v2908_v5 = vsel %vm708_vm1, %v4150_v49, 0.0 }
 0x23c   : > { %v3984_v28 = vpop.f32.mrb[20].mxu1  ;;  %v2978_v23 = vsel %vm708_vm1, %v2947_v56, 0.0  ;;  %3618 = vst.msk [vmem:[%s5677_s18 + $0x94] sm:$0xf] %vm3166_vm4, %v3655_v31  ;;  %v2906_v45 = vsel %vm708_vm1, %v4151_v63, 0.0  ;;  %v2948_v26 = vmul.f32 %v4151_v63, %v4151_v63  ;;  %v3008_v20 = vadd.f32 %v3007_v50, %v3006_v36 }
 0x23d   : > { %v1897_v18 = vpop.f32.mrb[21].mxu1  ;;  %v2979_v19 = vadd.f32 %v2978_v23, %v2977_v8  ;;  %v2907_v0 = vadd.f32 %v2906_v45, %v2905_v58  ;;  %v2950_v22 = vmul.f32 %v4150_v49, %v4150_v49  ;;  %3621 = vst.msk [vmem:[%s5677_s18 + $0xa8] sm:$0xf] %vm3166_vm4, %v3658_v9  ;;  %v3656_v34 = vpack.c.bf16 %v4151_v63, %v4151_v63 }
 0x23e   : > { %v3985_v12 = vpop.f32.mrb[22].mxu1  ;;  %v3009_v29 = vsel %vm708_vm1, %v2948_v26, 0.0  ;;  %v4120_v15 = vpop.f32.mrb[20].mxu0  ;;  %v2878_v16 = vadd.f32 %v2877_v24, %v2876_v35 }
 0x23f   : > { %v1900_v27 = vpop.f32.mrb[23].mxu1  ;;  %v3010_v59 = vadd.f32 %v3009_v29, %v3008_v20  ;;  %v4152_v61 = vadd.f32 %v4120_v15, %v3984_v28  ;;  %v2740_v11 = vpop.f32.mrb[21].mxu0  ;;  %v2981_v33 = vadd.f32 %v2980_v55, %v2979_v19  ;;  %v2909_v41 = vadd.f32 %v2908_v5, %v2907_v0  ;;  %3619 = vst.msk [vmem:[%s5677_s18 + $0x98] sm:$0xf] %vm3166_vm4, %v3656_v34 }
 0x240   : > { %v4153_v44 = vadd.f32 %v2740_v11, %v1897_v18  ;;  %v4121_v51 = vpop.f32.mrb[22].mxu0  ;;  %v3011_v38 = vsel %vm708_vm1, %v2950_v22, 0.0 }
 0x241   : > { %v2953_v14 = vmul.f32 %v4152_v61, %v4152_v61  ;;  %v3661_v37 = vpack.c.bf16 %v4152_v61, %v4152_v61  ;;  %v4154_v6 = vadd.f32 %v4121_v51, %v3985_v12  ;;  %v2743_v1 = vpop.f32.mrb[23].mxu0  ;;  %v2881_v39 = vsel %vm708_vm1, %v4152_v61, 0.0 }
 0x242   : > { %v2879_v30 = vsel %vm708_vm1, %v4153_v44, 0.0  ;;  %v2951_v48 = vmul.f32 %v4153_v44, %v4153_v44  ;;  %v3659_v32 = vpack.c.bf16 %v4153_v44, %v4153_v44  ;;  %v4155_v42 = vadd.f32 %v2743_v1, %v1900_v27 }
 0x243   : > { %v2984_v2 = vsel %vm708_vm1, %v2953_v14, 0.0  ;;  %3624 = vst.msk [vmem:[%s5677_s18 + $0xc4] sm:$0xf] %vm3166_vm4, %v3661_v37  ;;  %v2880_v4 = vadd.f32 %v2879_v30, %v2878_v16  ;;  %v3662_v25 = vpack.c.bf16 %v4154_v6, %v4154_v6  ;;  %v2912_v36 = vsel %vm708_vm1, %v4154_v6, 0.0 }
 0x244   : > { %v3988_v3 = vpop.f32.mrb[24].mxu1  ;;  %v2982_v17 = vsel %vm708_vm1, %v2951_v48, 0.0  ;;  %3622 = vst.msk [vmem:[%s5677_s18 + $0xb4] sm:$0xf] %vm3166_vm4, %v3659_v32  ;;  %v2910_v21 = vsel %vm708_vm1, %v4155_v42, 0.0  ;;  %v2952_v62 = vmul.f32 %v4155_v42, %v4155_v42  ;;  %v3012_v57 = vadd.f32 %v3011_v38, %v3010_v59 }
 0x245   : > { %v1913_v46 = vpop.f32.mrb[25].mxu1  ;;  %v2983_v60 = vadd.f32 %v2982_v17, %v2981_v33  ;;  %v2911_v52 = vadd.f32 %v2910_v21, %v2909_v41  ;;  %v2954_v8 = vmul.f32 %v4154_v6, %v4154_v6  ;;  %3625 = vst.msk [vmem:[%s5677_s18 + $0xc8] sm:$0xf] %vm3166_vm4, %v3662_v25  ;;  %v3660_v47 = vpack.c.bf16 %v4155_v42, %v4155_v42 }
 0x246   : > { %v3989_v13 = vpop.f32.mrb[26].mxu1  ;;  %v3013_v58 = vsel %vm708_vm1, %v2952_v62, 0.0  ;;  %v4124_v43 = vpop.f32.mrb[24].mxu0  ;;  %v2882_v54 = vadd.f32 %v2881_v39, %v2880_v4 }
 0x247   : > { %v1916_v7 = vpop.f32.mrb[27].mxu1  ;;  %v3014_v10 = vadd.f32 %v3013_v58, %v3012_v57  ;;  %v4156_v49 = vadd.f32 %v4124_v43, %v3988_v3  ;;  %v2756_v40 = vpop.f32.mrb[25].mxu0  ;;  %v2985_v28 = vadd.f32 %v2984_v2, %v2983_v60  ;;  %v2913_v53 = vadd.f32 %v2912_v36, %v2911_v52  ;;  %3623 = vst.msk [vmem:[%s5677_s18 + $0xb8] sm:$0xf] %vm3166_vm4, %v3660_v47 }
 0x248   : > { %v4157_v56 = vadd.f32 %v2756_v40, %v1913_v46  ;;  %v4125_v31 = vpop.f32.mrb[26].mxu0  ;;  %v3015_v26 = vsel %vm708_vm1, %v2954_v8, 0.0 }
 0x249   : > { %v2957_v63 = vmul.f32 %v4156_v49, %v4156_v49  ;;  %v3665_v18 = vpack.c.bf16 %v4156_v49, %v4156_v49  ;;  %v4158_v50 = vadd.f32 %v4125_v31, %v3989_v13  ;;  %v2759_v24 = vpop.f32.mrb[27].mxu0  ;;  %v2885_v27 = vsel %vm708_vm1, %v4156_v49, 0.0 }
 0x24a   : > { %v2883_v35 = vsel %vm708_vm1, %v4157_v56, 0.0  ;;  %v2955_v12 = vmul.f32 %v4157_v56, %v4157_v56  ;;  %v3663_v23 = vpack.c.bf16 %v4157_v56, %v4157_v56  ;;  %v4159_v9 = vadd.f32 %v2759_v24, %v1916_v7 }
 0x24b   : > { %v2988_v19 = vsel %vm708_vm1, %v2957_v63, 0.0  ;;  %3628 = vst.msk [vmem:[%s5677_s18 + $0xe4] sm:$0xf] %vm3166_vm4, %v3665_v18  ;;  %v2884_v5 = vadd.f32 %v2883_v35, %v2882_v54  ;;  %v3666_v22 = vpack.c.bf16 %v4158_v50, %v4158_v50  ;;  %v2916_v59 = vsel %vm708_vm1, %v4158_v50, 0.0 }
 0x24c   : > { %v3992_v55 = vpop.f32.mrb[28].mxu1  ;;  %v2986_v20 = vsel %vm708_vm1, %v2955_v12, 0.0  ;;  %3626 = vst.msk [vmem:[%s5677_s18 + $0xd4] sm:$0xf] %vm3166_vm4, %v3663_v23  ;;  %v2914_v29 = vsel %vm708_vm1, %v4159_v9, 0.0  ;;  %v2956_v34 = vmul.f32 %v4159_v9, %v4159_v9  ;;  %v3016_v11 = vadd.f32 %v3015_v26, %v3014_v10 }
 0x24d   : > { %v1929_v45 = vpop.f32.mrb[29].mxu1  ;;  %v2987_v16 = vadd.f32 %v2986_v20, %v2985_v28  ;;  %v2915_v61 = vadd.f32 %v2914_v29, %v2913_v53  ;;  %v2958_v33 = vmul.f32 %v4158_v50, %v4158_v50  ;;  %3629 = vst.msk [vmem:[%s5677_s18 + $0xe8] sm:$0xf] %vm3166_vm4, %v3666_v22  ;;  %v3664_v44 = vpack.c.bf16 %v4159_v9, %v4159_v9 }
 0x24e   : > { %v3993_v0 = vpop.f32.mrb[30].mxu1  ;;  %v3017_v41 = vsel %vm708_vm1, %v2956_v34, 0.0  ;;  %v4128_v51 = vpop.f32.mrb[28].mxu0  ;;  %v2886_v14 = vadd.f32 %v2885_v27, %v2884_v5 }
 0x24f   : > { %v1932_v15 = vpop.f32.mrb[31].mxu1  ;;  %v3018_v37 = vadd.f32 %v3017_v41, %v3016_v11  ;;  %v4160_v6 = vadd.f32 %v4128_v51, %v3992_v55  ;;  %v2772_v1 = vpop.f32.mrb[29].mxu0  ;;  %v2989_v3 = vadd.f32 %v2988_v19, %v2987_v16  ;;  %v2917_v30 = vadd.f32 %v2916_v59, %v2915_v61  ;;  %3627 = vst.msk [vmem:[%s5677_s18 + $0xd8] sm:$0xf] %vm3166_vm4, %v3664_v44 }
 0x250   : > { %v4161_v48 = vadd.f32 %v2772_v1, %v1929_v45  ;;  %v4129_v32 = vpop.f32.mrb[30].mxu0  ;;  %v3019_v25 = vsel %vm708_vm1, %v2958_v33, 0.0 }
 0x251   : > { %v2961_v42 = vmul.f32 %v4160_v6, %v4160_v6  ;;  %v3669_v46 = vpack.c.bf16 %v4160_v6, %v4160_v6  ;;  %v4162_v38 = vadd.f32 %v4129_v32, %v3993_v0  ;;  %v2775_v39 = vpop.f32.mrb[31].mxu0  ;;  %v2889_v21 = vsel %vm708_vm1, %v4160_v6, 0.0 }
 0x252   : > { %v2887_v2 = vsel %vm708_vm1, %v4161_v48, 0.0  ;;  %v2959_v4 = vmul.f32 %v4161_v48, %v4161_v48  ;;  %v3667_v13 = vpack.c.bf16 %v4161_v48, %v4161_v48  ;;  %v4163_v17 = vadd.f32 %v2775_v39, %v1932_v15 }
 0x253   : > { %v2992_v62 = vsel %vm708_vm1, %v2961_v42, 0.0  ;;  %3632 = vst.msk [vmem:[%s5677_s18 + $0x104] sm:$0xf] %vm3166_vm4, %v3669_v46  ;;  %v2888_v7 = vadd.f32 %v2887_v2, %v2886_v14  ;;  %v3670_v36 = vpack.c.bf16 %v4162_v38, %v4162_v38  ;;  %v2962_v47 = vmul.f32 %v4162_v38, %v4162_v38 }
 0x254   : > { %v2990_v60 = vsel %vm708_vm1, %v2959_v4, 0.0  ;;  %3630 = vst.msk [vmem:[%s5677_s18 + $0xf4] sm:$0xf] %vm3166_vm4, %v3667_v13  ;;  %v2918_v52 = vsel %vm708_vm1, %v4163_v17, 0.0  ;;  %v2960_v57 = vmul.f32 %v4163_v17, %v4163_v17  ;;  %v2920_v54 = vsel %vm708_vm1, %v4162_v38, 0.0 }
 0x255   : > { %v2890_v8 = vadd.f32 %v2889_v21, %v2888_v7  ;;  %v2991_v58 = vadd.f32 %v2990_v60, %v2989_v3  ;;  %v2919_v43 = vadd.f32 %v2918_v52, %v2917_v30  ;;  %3633 = vst.msk [vmem:[%s5677_s18 + $0x108] sm:$0xf] %vm3166_vm4, %v3670_v36  ;;  %v3020_v10 = vadd.f32 %v3019_v25, %v3018_v37 }
 0x256   : > { %v3021_v49 = vsel %vm708_vm1, %v2960_v57, 0.0  ;;  %v3668_v40 = vpack.c.bf16 %v4163_v17, %v4163_v17  ;;  %v3023_v63 = vsel %vm708_vm1, %v2962_v47, 0.0 }
 0x257   : > { %v2993_v28 = vadd.f32 %v2992_v62, %v2991_v58  ;;  %v2921_v53 = vadd.f32 %v2920_v54, %v2919_v43  ;;  %v3022_v56 = vadd.f32 %v3021_v49, %v3020_v10  ;;  %v2922_v31 = vsel %vm708_vm1, %v2890_v8, 0.0 }
 0x258   : > { %3631 = vst.msk [vmem:[%s5677_s18 + $0xf8] sm:$0xf] %vm3166_vm4, %v3668_v40 }
 0x259   : > { %v2923_v18 = vsel %vm708_vm1, %v2921_v53, 0.0 }
 0x25a   : > { %4612 = shalt.err (!%p4609_p7)
}
 0x25b   : > { %s4613_s28 = scalar_lea.hbm %s5810_s4, 4608  ;;  %s4617_s7 = scalar_lea.hbm %s5900_s2, 9216 }
 0x25c   : > { %p4614_p9 = scmp.ne.s32.totalorder %s5810_s4, %s4613_s28  ;;  %p4618_p5 = scmp.lt.u32.totalorder %s5810_s4, %s5900_s2 }
 0x25d   : > { %p4619_p13 = scmp.lt.u32.totalorder %s4617_s7, %s4613_s28  ;;  %p4621_p4 = scmp.lt.u32.totalorder %s4613_s28, %s5810_s4 }
 0x25e   : > { %p4615_p1 = pnand %p4614_p9, %p4825_p12 }
 0x25f   : > { %p4620_p2 = por %p4619_p13, %p4618_p5 }
 0x260   : > { %p4616_p0 = pneg %p4615_p1 }
 0x261   : > { %p4622_p6 = por %p4621_p4, %p4620_p2 }
 0x263   : > { %p4623_p8 = pnand %p4622_p6, %p4616_p0 }
 0x265   : > { %4626 = shalt.err (!%p4623_p8)
}
 0x266   : > { %s4708_s18 = smov 64   ;;  %s4709_s20 = smov 4   ;;  %v2924_v50 = vadd.f32 %v2923_v18, %v2922_v31  ;;  %v3024_v24 = vadd.f32 %v3023_v63, %v3022_v56  ;;  %v3025_v55 = vsel %vm708_vm1, %v2993_v28, 0.0  ;;  %vm3034_vm5 = vcmask 57344  }
 0x267   : > { %4408 = dma.vmem_to_hbm [thread:$0]  (%p4825_p12), %s5816_s8, 4608, %s5810_s4, %s3200_s5, %s4708_s18, %s4708_s18, %s4709_s20  }
 0x268   : > { %v2925_v35 = vrot.slane %v2924_v50, 4  ;;  %v3026_v12 = vsel %vm708_vm1, %v3024_v24, 0.0  ;;  %s3353_s9 = sshll.u32 %s4876_s6, 1  ;;  %s3636_s8 = sshll.u32 %s4752_s16, 5 }
 0x269   : > { %v3027_v23 = vadd.f32 %v3026_v12, %v3025_v55  ;;  %s214_s25 = scalar_lea.vmem [#allocation8], %s3353_s9  ;;  %s5854_s27 = scalar_lea.hbm %s5901_s3, %s3636_s8 }
 0x26a   : > { %v2926_v9 = vadd.f32 %v2925_v35, %v2924_v50  ;;  %s3234_s4 = sshll.u32 %s214_s25, 4  ;;  %s3205_s22 = scalar_lea.sflag [#allocation9], %s4876_s6  ;;  %s5856_s4 = int_to_ptr.vmem [resolvable:$true] %s3234_s4 }
 0x26b   : > { %v3028_v45 = vrot.slane %v3027_v23, 4  ;;  %s4627_s23 = scalar_lea.vmem %s5856_s4, 32  ;;  %s4710_s16 = smov [#allocation8]  }
 0x26c   : > { %v2927_v26 = vrot.slane %v2926_v9, 2  ;;  %p4628_p10 = scmp.ne.s32.totalorder %s5856_s4, %s4627_s23  ;;  %s4631_s28 = sshll.u32 %s4710_s16, 4  ;;  %s4632_s28 = int_to_ptr.vmem [resolvable:$false] %s4631_s28 }
 0x26d   : > { %v3029_v27 = vadd.f32 %v3028_v45, %v3027_v23  ;;  %s4633_s26 = scalar_lea.vmem %s4632_s28, 64  ;;  %p4634_p7 = scmp.lt.s32.totalorder %s5856_s4, %s4632_s28 }
 0x26e   : > { %v2928_v19 = vadd.f32 %v2927_v26, %v2926_v9  ;;  %p4629_p11 = pnand %p4628_p10, %p4825_p12  ;;  %p4635_p9 = scmp.lt.s32.totalorder %s4633_s26, %s4627_s23 }
 0x26f   : > { %v3030_v5 = vrot.slane %v3029_v27, 2 }
 0x270   : > { %v2929_v0 = vrot.slane %v2928_v19, 1  ;;  %p4630_p3 = pneg %p4629_p11  ;;  %p4636_p1 = por %p4635_p9, %p4634_p7 }
 0x271   : > { %v3031_v20 = vadd.f32 %v3030_v5, %v3029_v27 }
 0x272   : > { %v2930_v22 = vadd.f32 %v2929_v0, %v2928_v19  ;;  %p4637_p0 = pnand %p4636_p1, %p4630_p3 }
 0x273   : > { %v3032_v29 = vrot.slane %v3031_v20, 1 }
 0x274   : > { %3035 = vst.msk [vmem:[%s214_s25] sm:$0x1] %vm3034_vm5, %v2930_v22 }
 0x275   : > { %v3033_v34 = vadd.f32 %v3032_v29, %v3031_v20 }
 0x277   : > { %3036 = vst.msk [vmem:[%s214_s25 + $0x1] sm:$0x1] %vm3034_vm5, %v3033_v34 }
 0x278   : > { %4640 = shalt.err (!%p4637_p0)
}
 0x279   : > { %s4641_s6 = scalar_lea.hbm %s5854_s27, 32  ;;  %s4645_s10 = scalar_lea.hbm %s5901_s3, 64 }
 0x27a   : > { %p4642_p5 = scmp.ne.s32.totalorder %s5854_s27, %s4641_s6  ;;  %p4646_p4 = scmp.lt.u32.totalorder %s5854_s27, %s5901_s3 }
 0x27b   : > { %p4647_p6 = scmp.lt.u32.totalorder %s4645_s10, %s4641_s6  ;;  %p4649_p10 = scmp.lt.u32.totalorder %s4641_s6, %s5854_s27 }
 0x27c   : > { %p4643_p13 = pnand %p4642_p5, %p4825_p12 }
 0x27d   : > { %p4648_p8 = por %p4647_p6, %p4646_p4 }
 0x27e   : > { %p4644_p2 = pneg %p4643_p13 }
 0x27f   : > { %p4650_p11 = por %p4649_p10, %p4648_p8 }
 0x281   : > { %p4651_p3 = pnand %p4650_p11, %p4644_p2 }
 0x283   : > { %4654 = shalt.err (!%p4651_p3)
}
 0x284   : > { %4409 = dma.vmem_to_hbm [thread:$0]  (%p4825_p12), %s5856_s4, 32, %s5854_s27, %s3205_s22  }
 0x285 PF: > { %s3246_s20 = sand.u32 1, %s4689_s12   ;;  %p6000_p7 = scmp.ne.s32.totalorder %s5942_s19, 0 }
 0x286   : > { %p6001_p9 = scmp.ge.s32.totalorder %s4701_s15, 2  ;;  %s3247_s9 = scalar_lea.sflag [#allocation4], %s3246_s20 }
 0x288   : > { %p4421_p1 = pnand %p6001_p9, %p6000_p7 }
 0x28a   : > { %4680 = dma.done.wait (!%p4421_p1), %s3247_s9, 4608  }
 0x28b   : > { %4682 = vsyncadd (!%p4421_p1), %s3247_s9, 4294962688  ;;  %s3256_s8 = scalar_lea.sflag [#allocation9], %s3246_s20 }
 0x28c   : > { %4684 = dma.done.wait (!%p4421_p1), %s3256_s8, 32  }
 0x28d   : > { %4686 = vsyncadd (!%p4421_p1), %s3256_s8, 4294967264  ;;  %p21_p12 = scmp.ge.s32.totalorder %s4787_s24, 4   ;;  %s6002_s12 = smov %s4693_s13 }
 0x28e   : > { %s6003_s13 = smov %s4697_s14  ;;  %s6004_s14 = smov %s4821_s17 }
 0x28f   : > { %s6005_s15 = smov %s4787_s24  ;;  %23 = sbr.rel (!%p21_p12) target bundleno = 8 (0x8), region = 103 }
 0x296   :  { %3261 = vsyncpa [#allocation3], 1 }
 0x297   :  { %3263 = vsyncpa [#allocation3 + $0x1], 1 }
 0x298   :  { %3264 = vsyncpa [#allocation6], 1 }
 0x299   :  { %3265 = vsyncpa [#allocation4], 1 }
 0x29a   :  { %3267 = vsyncpa [#allocation4 + $0x1], 1 }
 0x29b   :  { %3268 = vsyncpa [#allocation9], 1 }
 0x29c   :  { %3270 = vsyncpa [#allocation9 + $0x1], 1 }

</bundles_post_ra>
